<compile_context>
chip_gen: v5e
topology: v5e:2x2
jax: 0.10.0
libtpu: 0.0.40
codegen_flags: <defaults>
</compile_context>

<pallas_src>
import jax
import jax.numpy as jnp
from jax.experimental import pallas as pl
from jax.experimental.pallas import tpu as pltpu

IN_DIM = 784
HID = 400
LATENT = 20
HEAD_PAD = 128          # fused encoder-head output width (4*20 -> padded to 128 lanes)


def _round_up(x, m):
    return (x + m - 1) // m * m


def vae_kernel(
    x_ref, nl_ref,
    w1_ref, b1_ref,
    w2_ref, b2_ref,        # fused fc21..fc24: (400, 128) / (1, 128)
    w3_ref, b3_ref,
    w4_ref, b4_ref,
    recon_ref, z_ref,
):
    # ---- encoder ----
    x = x_ref[...]                                                        # (TB, 784) bf16
    h1 = jnp.maximum(
        jnp.dot(x, w1_ref[...], preferred_element_type=jnp.float32) + b1_ref[...], 0.0)

    head = jnp.dot(h1.astype(jnp.bfloat16), w2_ref[...],
                   preferred_element_type=jnp.float32) + b2_ref[...]      # (TB, 128) f32

    alpha = jnp.clip(head[:, 0 * LATENT:1 * LATENT], 1e-5, 100.0)
    beta  = jnp.clip(head[:, 1 * LATENT:2 * LATENT], 1e-5, 1000.0)
    xi    = jnp.clip(head[:, 2 * LATENT:3 * LATENT], 1.0 + 1e-5, 3.0)
    gamma = jnp.clip(head[:, 3 * LATENT:4 * LATENT], -3.0, -1e-5)

    # ---- HardConcrete rsample (reparameterized; logistic noise precomputed) ----
    logits = (nl_ref[...] + jnp.log(alpha)) * pl.reciprocal(beta, approx=True)
    s = jax.nn.sigmoid(logits)
    z = jnp.clip(s * (xi - gamma) + gamma, 0.0, 1.0)                      # (TB, 20) f32
    z_ref[...] = z

    # ---- decoder ----
    h3 = jnp.maximum(
        jnp.dot(z.astype(jnp.bfloat16), w3_ref[...],
                preferred_element_type=jnp.float32) + b3_ref[...], 0.0)
    recon_ref[...] = jax.nn.sigmoid(
        jnp.dot(h3.astype(jnp.bfloat16), w4_ref[...],
                preferred_element_type=jnp.float32) + b4_ref[...])


def init_params(key):
    """Deterministic init mirroring nn.Linear default: U(-1/sqrt(fan_in), 1/sqrt(fan_in)).
    Weights stored transposed: (in_features, out_features); biases as (1, out)."""
    dims = [
        ("fc1", IN_DIM, HID),
        ("fc21", HID, LATENT),
        ("fc22", HID, LATENT),
        ("fc23", HID, LATENT),
        ("fc24", HID, LATENT),
        ("fc3", LATENT, HID),
        ("fc4", HID, IN_DIM),
    ]
    params = {}
    keys = jax.random.split(key, 2 * len(dims))
    for i, (name, fan_in, fan_out) in enumerate(dims):
        bound = 1.0 / jnp.sqrt(jnp.float32(fan_in))
        w = jax.random.uniform(keys[2 * i], (fan_in, fan_out), jnp.float32,
                               minval=-bound, maxval=bound)
        b = jax.random.uniform(keys[2 * i + 1], (1, fan_out), jnp.float32,
                               minval=-bound, maxval=bound)
        params[name] = (w, b)
    return params


def _fused_head(params):
    ws, bs = [], []
    for name in ("fc21", "fc22", "fc23", "fc24"):
        w, b = params[name]
        ws.append(w)
        bs.append(b)
    w2f = jnp.concatenate(ws, axis=1)                    # (400, 80)
    b2f = jnp.concatenate(bs, axis=1)                    # (1, 80)
    pad = HEAD_PAD - w2f.shape[1]
    w2f = jnp.pad(w2f, ((0, 0), (0, pad)))               # (400, 128)
    b2f = jnp.pad(b2f, ((0, 0), (0, pad)))               # (1, 128)
    return w2f, b2f


def vae_forward(x_nchw, params, noise_key):
    """x_nchw: (B, 1, 28, 28) float32.  Returns (recon (B, 784), z (B, 20))."""
    B = x_nchw.shape[0]
    x2d = x_nchw.reshape(B, IN_DIM)                      # same as torch .view(-1, 784)

    # Logistic noise term log(u) - log(1-u), bounded away from +/-inf.
    u = jax.random.uniform(noise_key, (B, LATENT), jnp.float32,
                           minval=1e-6, maxval=1.0 - 1e-6)
    noise_logit = jnp.log(u) - jnp.log(1.0 - u)

    # Batch tile: MXU row height for big batches, sublane-aligned otherwise.
    TB = 256 if B >= 256 else _round_up(B, 8)
    pB = _round_up(B, TB)
    if pB != B:
        x2d = jnp.pad(x2d, ((0, pB - B), (0, 0)))
        noise_logit = jnp.pad(noise_logit, ((0, pB - B), (0, 0)))
    x_b = x2d.astype(jnp.bfloat16)

    # Weights -> bf16 (halves HBM weight traffic, doubles MXU rate); biases stay f32.
    w1, b1 = params["fc1"]
    w2f, b2f = _fused_head(params)
    w3, b3 = params["fc3"]
    w4, b4 = params["fc4"]
    flat_args = [
        x_b, noise_logit,
        w1.astype(jnp.bfloat16), b1,
        w2f.astype(jnp.bfloat16), b2f,
        w3.astype(jnp.bfloat16), b3,
        w4.astype(jnp.bfloat16), b4,
    ]

    act_map = lambda i: (i, 0)     # batch-tiled arrays
    fixed_map = lambda i: (0, 0)   # weights/biases: same block every step -> VMEM resident
    in_specs = [
        pl.BlockSpec((TB, IN_DIM), act_map),
        pl.BlockSpec((TB, LATENT), act_map),
        pl.BlockSpec((IN_DIM, HID), fixed_map), pl.BlockSpec((1, HID), fixed_map),
        pl.BlockSpec((HID, HEAD_PAD), fixed_map), pl.BlockSpec((1, HEAD_PAD), fixed_map),
        pl.BlockSpec((LATENT, HID), fixed_map), pl.BlockSpec((1, HID), fixed_map),
        pl.BlockSpec((HID, IN_DIM), fixed_map), pl.BlockSpec((1, IN_DIM), fixed_map),
    ]
    out_specs = (
        pl.BlockSpec((TB, IN_DIM), act_map),
        pl.BlockSpec((TB, LATENT), act_map),
    )

    flops = 2 * pB * (IN_DIM * HID + HID * HEAD_PAD + LATENT * HID + HID * IN_DIM)
    weight_bytes = 2 * (IN_DIM * HID + HID * HEAD_PAD + LATENT * HID + HID * IN_DIM) \
        + 4 * (HID + HEAD_PAD + HID + IN_DIM)
    act_bytes = pB * (IN_DIM * 2 + LATENT * 4 + IN_DIM * 4 + LATENT * 4)
    cost = pl.CostEstimate(
        flops=flops,
        transcendentals=pB * (3 * LATENT + IN_DIM),
        bytes_accessed=weight_bytes + act_bytes,
    )

    recon, z = pl.pallas_call(
        vae_kernel,
        out_shape=(
            jax.ShapeDtypeStruct((pB, IN_DIM), jnp.float32),
            jax.ShapeDtypeStruct((pB, LATENT), jnp.float32),
        ),
        grid=(pB // TB,),
        in_specs=in_specs,
        out_specs=out_specs,
        compiler_params=pltpu.CompilerParams(
            dimension_semantics=("parallel",),
            vmem_limit_bytes=32 << 20,
        ),
        cost_estimate=cost,
    )(*flat_args)

    return recon[:B], z[:B]


if __name__ == "__main__":
    key = jax.random.PRNGKey(0)
    k_params, k_x, k_noise = jax.random.split(key, 3)

    params = init_params(k_params)
    # Small MNIST-like batch: NCHW (2, 1, 28, 28), values in [0, 1).
    x = jax.random.uniform(k_x, (2, 1, 28, 28), jnp.float32)

    recon, z = jax.jit(vae_forward)(x, params, k_noise)
    jax.block_until_ready((recon, z))

    assert recon.shape == (2, IN_DIM) and z.shape == (2, LATENT)
    assert bool(jnp.all(jnp.isfinite(recon))) and bool(jnp.all(jnp.isfinite(z)))
    assert bool(jnp.all((recon >= 0.0) & (recon <= 1.0)))
    assert bool(jnp.all((z >= 0.0) & (z <= 1.0)))
    print("KERNEL_OK")
</pallas_src>

<mosaic_0001>
module attributes {stable_mosaic.version = 11 : i64} {
  func.func @vae_kernel(%arg0: i32, %arg1: memref<8x784xbf16, #tpu.memory_space<vmem>>, %arg2: memref<8x20xf32, #tpu.memory_space<vmem>>, %arg3: memref<784x400xbf16, #tpu.memory_space<vmem>>, %arg4: memref<1x400xf32, #tpu.memory_space<vmem>>, %arg5: memref<400x128xbf16, #tpu.memory_space<vmem>>, %arg6: memref<1x128xf32, #tpu.memory_space<vmem>>, %arg7: memref<20x400xbf16, #tpu.memory_space<vmem>>, %arg8: memref<1x400xf32, #tpu.memory_space<vmem>>, %arg9: memref<400x784xbf16, #tpu.memory_space<vmem>>, %arg10: memref<1x784xf32, #tpu.memory_space<vmem>>, %arg11: memref<8x784xf32, #tpu.memory_space<vmem>>, %arg12: memref<8x20xf32, #tpu.memory_space<vmem>>) attributes {dimension_semantics = [#tpu.dimension_semantics<parallel>], iteration_bounds = array<i64: 1>, scalar_prefetch = 0 : i64, scratch_operands = 0 : i64, tpu.core_type = #tpu.core_type<tc>, window_params = [{transform_indices = @transform_0, window_bounds = array<i64: 8, 784>}, {transform_indices = @transform_1, window_bounds = array<i64: 8, 20>}, {pipeline_mode = #tpu.pipeline_mode<synchronous>, transform_indices = @transform_2, window_bounds = array<i64: 784, 400>}, {pipeline_mode = #tpu.pipeline_mode<synchronous>, transform_indices = @transform_3, window_bounds = array<i64: 1, 400>}, {pipeline_mode = #tpu.pipeline_mode<synchronous>, transform_indices = @transform_4, window_bounds = array<i64: 400, 128>}, {pipeline_mode = #tpu.pipeline_mode<synchronous>, transform_indices = @transform_5, window_bounds = array<i64: 1, 128>}, {pipeline_mode = #tpu.pipeline_mode<synchronous>, transform_indices = @transform_6, window_bounds = array<i64: 20, 400>}, {pipeline_mode = #tpu.pipeline_mode<synchronous>, transform_indices = @transform_7, window_bounds = array<i64: 1, 400>}, {pipeline_mode = #tpu.pipeline_mode<synchronous>, transform_indices = @transform_8, window_bounds = array<i64: 400, 784>}, {pipeline_mode = #tpu.pipeline_mode<synchronous>, transform_indices = @transform_9, window_bounds = array<i64: 1, 784>}, {transform_indices = @transform_10, window_bounds = array<i64: 8, 784>}, {transform_indices = @transform_11, window_bounds = array<i64: 8, 20>}]} {
    %c0 = arith.constant 0 : index
    %c0_0 = arith.constant 0 : index
    %0 = vector.load %arg1[%c0, %c0_0] : memref<8x784xbf16, #tpu.memory_space<vmem>>, vector<8x784xbf16>
    %c0_1 = arith.constant 0 : index
    %c0_2 = arith.constant 0 : index
    %1 = vector.load %arg3[%c0_1, %c0_2] : memref<784x400xbf16, #tpu.memory_space<vmem>>, vector<784x400xbf16>
    %cst = arith.constant dense<0.000000e+00> : vector<8x400xf32>
    %2 = tpu.matmul %0, %1, %cst {dimension_numbers = #tpu.dot_dimension_numbers<[1], [0], [0], [1], [0, 0, 1, 1], [], []>} : vector<8x784xbf16>, vector<784x400xbf16>, vector<8x400xf32> -> vector<8x400xf32>
    %c0_3 = arith.constant 0 : index
    %c0_4 = arith.constant 0 : index
    %3 = vector.load %arg4[%c0_3, %c0_4] : memref<1x400xf32, #tpu.memory_space<vmem>>, vector<1x400xf32>
    %4 = vector.broadcast %3 : vector<1x400xf32> to vector<8x400xf32>
    %5 = arith.addf %2, %4 : vector<8x400xf32>
    %cst_5 = arith.constant 0.000000e+00 : f32
    %6 = vector.broadcast %cst_5 : f32 to vector<8x400xf32>
    %7 = arith.maximumf %5, %6 : vector<8x400xf32>
    %8 = arith.truncf %7 : vector<8x400xf32> to vector<8x400xbf16>
    %c0_6 = arith.constant 0 : index
    %c0_7 = arith.constant 0 : index
    %9 = vector.load %arg5[%c0_6, %c0_7] : memref<400x128xbf16, #tpu.memory_space<vmem>>, vector<400x128xbf16>
    %cst_8 = arith.constant dense<0.000000e+00> : vector<8x128xf32>
    %10 = tpu.matmul %8, %9, %cst_8 {dimension_numbers = #tpu.dot_dimension_numbers<[1], [0], [0], [1], [0, 0, 1, 1], [], []>} : vector<8x400xbf16>, vector<400x128xbf16>, vector<8x128xf32> -> vector<8x128xf32>
    %c0_9 = arith.constant 0 : index
    %c0_10 = arith.constant 0 : index
    %11 = vector.load %arg6[%c0_9, %c0_10] : memref<1x128xf32, #tpu.memory_space<vmem>>, vector<1x128xf32>
    %12 = vector.broadcast %11 : vector<1x128xf32> to vector<8x128xf32>
    %13 = arith.addf %10, %12 : vector<8x128xf32>
    %14 = vector.extract_strided_slice %13 {offsets = [0, 0], sizes = [8, 20], strides = [1, 1]} : vector<8x128xf32> to vector<8x20xf32>
    %cst_11 = arith.constant 9.99999974E-6 : f32
    %cst_12 = arith.constant 1.000000e+02 : f32
    %15 = vector.broadcast %cst_11 : f32 to vector<8x20xf32>
    %16 = arith.maximumf %15, %14 : vector<8x20xf32>
    %17 = vector.broadcast %cst_12 : f32 to vector<8x20xf32>
    %18 = arith.minimumf %17, %16 : vector<8x20xf32>
    %19 = vector.extract_strided_slice %13 {offsets = [0, 20], sizes = [8, 20], strides = [1, 1]} : vector<8x128xf32> to vector<8x20xf32>
    %cst_13 = arith.constant 9.99999974E-6 : f32
    %cst_14 = arith.constant 1.000000e+03 : f32
    %20 = vector.broadcast %cst_13 : f32 to vector<8x20xf32>
    %21 = arith.maximumf %20, %19 : vector<8x20xf32>
    %22 = vector.broadcast %cst_14 : f32 to vector<8x20xf32>
    %23 = arith.minimumf %22, %21 : vector<8x20xf32>
    %24 = vector.extract_strided_slice %13 {offsets = [0, 40], sizes = [8, 20], strides = [1, 1]} : vector<8x128xf32> to vector<8x20xf32>
    %cst_15 = arith.constant 1.000010e+00 : f32
    %cst_16 = arith.constant 3.000000e+00 : f32
    %25 = vector.broadcast %cst_15 : f32 to vector<8x20xf32>
    %26 = arith.maximumf %25, %24 : vector<8x20xf32>
    %27 = vector.broadcast %cst_16 : f32 to vector<8x20xf32>
    %28 = arith.minimumf %27, %26 : vector<8x20xf32>
    %29 = vector.extract_strided_slice %13 {offsets = [0, 60], sizes = [8, 20], strides = [1, 1]} : vector<8x128xf32> to vector<8x20xf32>
    %cst_17 = arith.constant -3.000000e+00 : f32
    %cst_18 = arith.constant -9.99999974E-6 : f32
    %30 = vector.broadcast %cst_17 : f32 to vector<8x20xf32>
    %31 = arith.maximumf %30, %29 : vector<8x20xf32>
    %32 = vector.broadcast %cst_18 : f32 to vector<8x20xf32>
    %33 = arith.minimumf %32, %31 : vector<8x20xf32>
    %c0_19 = arith.constant 0 : index
    %c0_20 = arith.constant 0 : index
    %34 = vector.load %arg2[%c0_19, %c0_20] : memref<8x20xf32, #tpu.memory_space<vmem>>, vector<8x20xf32>
    %35 = math.log %18 : vector<8x20xf32>
    %36 = arith.addf %34, %35 : vector<8x20xf32>
    %37 = tpu.reciprocal %23 {approx = true} : vector<8x20xf32> -> vector<8x20xf32>
    %38 = arith.mulf %36, %37 : vector<8x20xf32>
    %39 = arith.negf %38 : vector<8x20xf32>
    %40 = math.exp %39 : vector<8x20xf32>
    %cst_21 = arith.constant 1.000000e+00 : f32
    %41 = vector.broadcast %cst_21 : f32 to vector<8x20xf32>
    %42 = arith.addf %41, %40 : vector<8x20xf32>
    %43 = arith.divf %41, %42 : vector<8x20xf32>
    %44 = arith.subf %28, %33 : vector<8x20xf32>
    %45 = arith.mulf %43, %44 : vector<8x20xf32>
    %46 = arith.addf %45, %33 : vector<8x20xf32>
    %cst_22 = arith.constant 0.000000e+00 : f32
    %cst_23 = arith.constant 1.000000e+00 : f32
    %47 = vector.broadcast %cst_22 : f32 to vector<8x20xf32>
    %48 = arith.maximumf %47, %46 : vector<8x20xf32>
    %49 = vector.broadcast %cst_23 : f32 to vector<8x20xf32>
    %50 = arith.minimumf %49, %48 : vector<8x20xf32>
    %c0_24 = arith.constant 0 : index
    %c0_25 = arith.constant 0 : index
    %51 = vector.load %arg12[%c0_24, %c0_25] : memref<8x20xf32, #tpu.memory_space<vmem>>, vector<8x20xf32>
    tpu.vector_store %arg12[%c0_24, %c0_25], %50 {strides = array<i32>} : memref<8x20xf32, #tpu.memory_space<vmem>>, vector<8x20xf32>,
    %52 = arith.truncf %50 : vector<8x20xf32> to vector<8x20xbf16>
    %c0_26 = arith.constant 0 : index
    %c0_27 = arith.constant 0 : index
    %53 = vector.load %arg7[%c0_26, %c0_27] : memref<20x400xbf16, #tpu.memory_space<vmem>>, vector<20x400xbf16>
    %cst_28 = arith.constant dense<0.000000e+00> : vector<8x400xf32>
    %54 = tpu.matmul %52, %53, %cst_28 {dimension_numbers = #tpu.dot_dimension_numbers<[1], [0], [0], [1], [0, 0, 1, 1], [], []>} : vector<8x20xbf16>, vector<20x400xbf16>, vector<8x400xf32> -> vector<8x400xf32>
    %c0_29 = arith.constant 0 : index
    %c0_30 = arith.constant 0 : index
    %55 = vector.load %arg8[%c0_29, %c0_30] : memref<1x400xf32, #tpu.memory_space<vmem>>, vector<1x400xf32>
    %56 = vector.broadcast %55 : vector<1x400xf32> to vector<8x400xf32>
    %57 = arith.addf %54, %56 : vector<8x400xf32>
    %cst_31 = arith.constant 0.000000e+00 : f32
    %58 = vector.broadcast %cst_31 : f32 to vector<8x400xf32>
    %59 = arith.maximumf %57, %58 : vector<8x400xf32>
    %60 = arith.truncf %59 : vector<8x400xf32> to vector<8x400xbf16>
    %c0_32 = arith.constant 0 : index
    %c0_33 = arith.constant 0 : index
    %61 = vector.load %arg9[%c0_32, %c0_33] : memref<400x784xbf16, #tpu.memory_space<vmem>>, vector<400x784xbf16>
    %cst_34 = arith.constant dense<0.000000e+00> : vector<8x784xf32>
    %62 = tpu.matmul %60, %61, %cst_34 {dimension_numbers = #tpu.dot_dimension_numbers<[1], [0], [0], [1], [0, 0, 1, 1], [], []>} : vector<8x400xbf16>, vector<400x784xbf16>, vector<8x784xf32> -> vector<8x784xf32>
    %c0_35 = arith.constant 0 : index
    %c0_36 = arith.constant 0 : index
    %63 = vector.load %arg10[%c0_35, %c0_36] : memref<1x784xf32, #tpu.memory_space<vmem>>, vector<1x784xf32>
    %64 = vector.broadcast %63 : vector<1x784xf32> to vector<8x784xf32>
    %65 = arith.addf %62, %64 : vector<8x784xf32>
    %66 = arith.negf %65 : vector<8x784xf32>
    %67 = math.exp %66 : vector<8x784xf32>
    %cst_37 = arith.constant 1.000000e+00 : f32
    %68 = vector.broadcast %cst_37 : f32 to vector<8x784xf32>
    %69 = arith.addf %68, %67 : vector<8x784xf32>
    %70 = arith.divf %68, %69 : vector<8x784xf32>
    %c0_38 = arith.constant 0 : index
    %c0_39 = arith.constant 0 : index
    %71 = vector.load %arg11[%c0_38, %c0_39] : memref<8x784xf32, #tpu.memory_space<vmem>>, vector<8x784xf32>
    tpu.vector_store %arg11[%c0_38, %c0_39], %70 {strides = array<i32>} : memref<8x784xf32, #tpu.memory_space<vmem>>, vector<8x784xf32>,
    return
  }
  func.func @transform_0(%arg0: i32) -> (i32, i32) {
    %c0_i32 = arith.constant 0 : i32
    %c0_i32_0 = arith.constant 0 : i32
    return %arg0, %c0_i32 : i32, i32
  }
  func.func @transform_1(%arg0: i32) -> (i32, i32) {
    %c0_i32 = arith.constant 0 : i32
    %c0_i32_0 = arith.constant 0 : i32
    return %arg0, %c0_i32 : i32, i32
  }
  func.func @transform_2(%arg0: i32) -> (i32, i32) {
    %c0_i32 = arith.constant 0 : i32
    %c0_i32_0 = arith.constant 0 : i32
    %c0_i32_1 = arith.constant 0 : i32
    return %c0_i32, %c0_i32_0 : i32, i32
  }
  func.func @transform_3(%arg0: i32) -> (i32, i32) {
    %c0_i32 = arith.constant 0 : i32
    %c0_i32_0 = arith.constant 0 : i32
    %c0_i32_1 = arith.constant 0 : i32
    return %c0_i32, %c0_i32_0 : i32, i32
  }
  func.func @transform_4(%arg0: i32) -> (i32, i32) {
    %c0_i32 = arith.constant 0 : i32
    %c0_i32_0 = arith.constant 0 : i32
    %c0_i32_1 = arith.constant 0 : i32
    return %c0_i32, %c0_i32_0 : i32, i32
  }
  func.func @transform_5(%arg0: i32) -> (i32, i32) {
    %c0_i32 = arith.constant 0 : i32
    %c0_i32_0 = arith.constant 0 : i32
    %c0_i32_1 = arith.constant 0 : i32
    return %c0_i32, %c0_i32_0 : i32, i32
  }
  func.func @transform_6(%arg0: i32) -> (i32, i32) {
    %c0_i32 = arith.constant 0 : i32
    %c0_i32_0 = arith.constant 0 : i32
    %c0_i32_1 = arith.constant 0 : i32
    return %c0_i32, %c0_i32_0 : i32, i32
  }
  func.func @transform_7(%arg0: i32) -> (i32, i32) {
    %c0_i32 = arith.constant 0 : i32
    %c0_i32_0 = arith.constant 0 : i32
    %c0_i32_1 = arith.constant 0 : i32
    return %c0_i32, %c0_i32_0 : i32, i32
  }
  func.func @transform_8(%arg0: i32) -> (i32, i32) {
    %c0_i32 = arith.constant 0 : i32
    %c0_i32_0 = arith.constant 0 : i32
    %c0_i32_1 = arith.constant 0 : i32
    return %c0_i32, %c0_i32_0 : i32, i32
  }
  func.func @transform_9(%arg0: i32) -> (i32, i32) {
    %c0_i32 = arith.constant 0 : i32
    %c0_i32_0 = arith.constant 0 : i32
    %c0_i32_1 = arith.constant 0 : i32
    return %c0_i32, %c0_i32_0 : i32, i32
  }
  func.func @transform_10(%arg0: i32) -> (i32, i32) {
    %c0_i32 = arith.constant 0 : i32
    %c0_i32_0 = arith.constant 0 : i32
    return %arg0, %c0_i32 : i32, i32
  }
  func.func @transform_11(%arg0: i32) -> (i32, i32) {
    %c0_i32 = arith.constant 0 : i32
    %c0_i32_0 = arith.constant 0 : i32
    return %arg0, %c0_i32 : i32, i32
  }
}

</mosaic_0001>

<bundles_post_ra>
// kernel: vae_forward.1
= control target key start
LH: loop header
LB: loop body
LE: loop exit
PB: predicated region body
PF: predicated region fallthrough
CT: control target
= control target key end

     0   :  { %vm1252_vm0 = vcmask 130048   ;;  %s5759_s28 = smov 108   ;;  %s5761_s29 = smov 68   ;;  %vm1991_vm1 = vcmask 1041408   ;;  %vm1939_vm6 = vcmask 162816   ;;  %s8347_s2 = inlined_call_operand.vmem [shape: bf16[784,400], index: 2, kind: input, shape index: {}]   ;;  %s8348_s0 = inlined_call_operand.vmem [shape: bf16[8,784], index: 0, kind: input, shape index: {}]   ;;  %s8349_s3 = inlined_call_operand.vmem [shape: f32[1,400], index: 3, kind: input, shape index: {}]   ;;  %s8350_s4 = inlined_call_operand.vmem [shape: bf16[400,128], index: 4, kind: input, shape index: {}]   ;;  %s8351_s5 = inlined_call_operand.vmem [shape: f32[1,128], index: 5, kind: input, shape index: {}]   ;;  %s8352_s1 = inlined_call_operand.vmem [shape: f32[8,20], index: 1, kind: input, shape index: {}]   ;;  %s8353_s6 = inlined_call_operand.vmem [shape: bf16[20,400], index: 6, kind: input, shape index: {}]   ;;  %s8354_s8 = inlined_call_operand.vmem [shape: bf16[400,784], index: 8, kind: input, shape index: {}]   ;;  %s8355_s11 = inlined_call_operand.vmem [shape: f32[8,20], index: 11, kind: output, shape index: {1}]   ;;  %s8356_s7 = inlined_call_operand.vmem [shape: f32[1,400], index: 7, kind: input, shape index: {}]   ;;  %s8357_s9 = inlined_call_operand.vmem [shape: f32[1,784], index: 9, kind: input, shape index: {}]   ;;  %s8358_s10 = inlined_call_operand.vmem [shape: f32[8,784], index: 10, kind: output, shape index: {0}]  }
   0x1   :  { %v3809_v0 = vld [vmem:[%s8347_s2 + $0xe0] sm:$0xf]  ;;  %v5349_v1 = vld [vmem:[%s8347_s2 + $0xec] sm:$0xf0] }
   0x2   :  { %v3937_v2 = vld [vmem:[%s8347_s2 + $0x1e0] sm:$0xf]  ;;  %v3810_v3 = vor.u32 %v5349_v1, %v3809_v0  ;;  %v5381_v4 = vld [vmem:[%s8347_s2 + $0x1ec] sm:$0xf0] }
   0x3   :  { %v4065_v5 = vld [vmem:[%s8347_s2 + $0x2e0] sm:$0xf]  ;;  %v5413_v6 = vld [vmem:[%s8347_s2 + $0x2ec] sm:$0xf0]  ;;  %v3938_v7 = vor.u32 %v5381_v4, %v3937_v2 }
   0x4   :  { %v4066_v8 = vor.u32 %v5413_v6, %v4065_v5  ;;  %v4193_v9 = vld [vmem:[%s8347_s2 + $0x3e0] sm:$0xf]  ;;  %v5445_v10 = vld [vmem:[%s8347_s2 + $0x3ec] sm:$0xf0]  ;;  %1256 = vmatpush.bf16.msra.mxu0 %v3810_v3 }
   0x5   :  { %v3793_v11 = vld [vmem:[%s8347_s2 + $0xc0] sm:$0xf]  ;;  %v4194_v12 = vor.u32 %v5445_v10, %v4193_v9  ;;  %v5345_v13 = vld [vmem:[%s8347_s2 + $0xcc] sm:$0xf0]  ;;  %1269 = vmatpush.bf16.msra.mxu1 %v3938_v7 }
   0x6   :  { %v3921_v14 = vld [vmem:[%s8347_s2 + $0x1c0] sm:$0xf]  ;;  %v5377_v15 = vld [vmem:[%s8347_s2 + $0x1cc] sm:$0xf0]  ;;  %1282 = vmatpush.bf16.msra.mxu2 %v4066_v8  ;;  %v3794_v16 = vor.u32 %v5345_v13, %v3793_v11 }
   0x7   :  { %v3922_v17 = vor.u32 %v5377_v15, %v3921_v14  ;;  %v4049_v18 = vld [vmem:[%s8347_s2 + $0x2c0] sm:$0xf]  ;;  %v5409_v19 = vld [vmem:[%s8347_s2 + $0x2cc] sm:$0xf0]  ;;  %1295 = vmatpush.bf16.msra.mxu3 %v4194_v12 }
   0x8   :  { %v4177_v20 = vld [vmem:[%s8347_s2 + $0x3c0] sm:$0xf]  ;;  %v4050_v21 = vor.u32 %v5409_v19, %v4049_v18  ;;  %v5441_v22 = vld [vmem:[%s8347_s2 + $0x3cc] sm:$0xf0]  ;;  %1257 = vmatpush.bf16.msra.mxu0 %v3794_v16 }
   0x9   :  { %v3777_v23 = vld [vmem:[%s8347_s2 + $0xa0] sm:$0xf]  ;;  %v5341_v24 = vld [vmem:[%s8347_s2 + $0xac] sm:$0xf0]  ;;  %v4178_v25 = vor.u32 %v5441_v22, %v4177_v20  ;;  %1270 = vmatpush.bf16.msra.mxu1 %v3922_v17 }
   0xa   :  { %v3905_v26 = vld [vmem:[%s8347_s2 + $0x1a0] sm:$0xf]  ;;  %v5373_v27 = vld [vmem:[%s8347_s2 + $0x1ac] sm:$0xf0]  ;;  %v3778_v29 = vor.u32 %v5341_v24, %v3777_v23  ;;  %1283 = vmatpush.bf16.msra.mxu2 %v4050_v21 }
   0xb   :  { %v4033_v28 = vld [vmem:[%s8347_s2 + $0x2a0] sm:$0xf]  ;;  %v5405_v30 = vld [vmem:[%s8347_s2 + $0x2ac] sm:$0xf0]  ;;  %v3906_v33 = vor.u32 %v5373_v27, %v3905_v26  ;;  %1296 = vmatpush.bf16.msra.mxu3 %v4178_v25  ;;  %v39_v25 = vld [vmem:[%s8348_s0 + $0x8] sm:$0xff] }
   0xc   :  { %v4161_v31 = vld [vmem:[%s8347_s2 + $0x3a0] sm:$0xf]  ;;  %v5437_v32 = vld [vmem:[%s8347_s2 + $0x3ac] sm:$0xf0]  ;;  %v4034_v34 = vor.u32 %v5405_v30, %v4033_v28  ;;  %1258 = vmatpush.bf16.msra.mxu0 %v3778_v29 }
   0xd   :  { %v3761_v35 = vld [vmem:[%s8347_s2 + $0x80] sm:$0xf]  ;;  %v5337_v36 = vld [vmem:[%s8347_s2 + $0x8c] sm:$0xf0]  ;;  %v4162_v38 = vor.u32 %v5437_v32, %v4161_v31  ;;  %1271 = vmatpush.bf16.msra.mxu1 %v3906_v33 }
   0xe   :  { %v3889_v37 = vld [vmem:[%s8347_s2 + $0x180] sm:$0xf]  ;;  %v5369_v39 = vld [vmem:[%s8347_s2 + $0x18c] sm:$0xf0]  ;;  %v3762_v44 = vor.u32 %v5337_v36, %v3761_v35  ;;  %1284 = vmatpush.bf16.msra.mxu2 %v4034_v34  ;;  %v5347_v34 = vld [vmem:[%s8347_s2 + $0xe4] sm:$0xf]  ;;  %v254_v36 = vunpack.c.l.b16 %v39_v25 }
   0xf   :  { %v4017_v40 = vld [vmem:[%s8347_s2 + $0x280] sm:$0xf]  ;;  %v5401_v41 = vld [vmem:[%s8347_s2 + $0x28c] sm:$0xf0]  ;;  %v3890_v45 = vor.u32 %v5369_v39, %v3889_v37  ;;  %1297 = vmatpush.bf16.msra.mxu3 %v4162_v38  ;;  %v3811_v35 = vld [vmem:[%s8347_s2 + $0xf0] sm:$0xf0] }
  0x10   :  { %v4145_v42 = vld [vmem:[%s8347_s2 + $0x380] sm:$0xf]  ;;  %v5433_v43 = vld [vmem:[%s8347_s2 + $0x38c] sm:$0xf0]  ;;  %v4018_v46 = vor.u32 %v5401_v41, %v4017_v40  ;;  %1259 = vmatpush.bf16.msra.mxu0 %v3762_v44 }
  0x11   :  { %v3745_v47 = vld [vmem:[%s8347_s2 + $0x60] sm:$0xf]  ;;  %v5333_v48 = vld [vmem:[%s8347_s2 + $0x6c] sm:$0xf0]  ;;  %v4146_v50 = vor.u32 %v5433_v43, %v4145_v42  ;;  %1272 = vmatpush.bf16.msra.mxu1 %v3890_v45  ;;  %v255_v42 = vunpack.c.h.b16 %v39_v25  ;;  %v5367_v25 = vld [vmem:[%s8347_s2 + $0x184] sm:$0xf] }
  0x12   :  { %v3873_v49 = vld [vmem:[%s8347_s2 + $0x160] sm:$0xf]  ;;  %v5365_v51 = vld [vmem:[%s8347_s2 + $0x16c] sm:$0xf0]  ;;  %v3746_v56 = vor.u32 %v5333_v48, %v3745_v47  ;;  %1285 = vmatpush.bf16.msra.mxu2 %v4018_v46  ;;  %v5379_v46 = vld [vmem:[%s8347_s2 + $0x1e4] sm:$0xf] }
  0x13   :  { %v4001_v52 = vld [vmem:[%s8347_s2 + $0x260] sm:$0xf]  ;;  %v5397_v53 = vld [vmem:[%s8347_s2 + $0x26c] sm:$0xf0]  ;;  %v3874_v57 = vor.u32 %v5365_v51, %v3873_v49  ;;  %1298 = vmatpush.bf16.msra.mxu3 %v4146_v50  ;;  %v3939_v47 = vld [vmem:[%s8347_s2 + $0x1f0] sm:$0xf0]  ;;  %v3814_v49 = vor.u32 %v5347_v34, %v3811_v35 }
  0x14   :  { %v4129_v54 = vld [vmem:[%s8347_s2 + $0x360] sm:$0xf]  ;;  %v5429_v55 = vld [vmem:[%s8347_s2 + $0x36c] sm:$0xf0]  ;;  %v4002_v58 = vor.u32 %v5397_v53, %v4001_v52  ;;  %1260 = vmatpush.bf16.msra.mxu0 %v3746_v56  ;;  %v6059_v53 = vpack.c.b16 %v254_v36, %v254_v36  ;;  %v3795_v56 = vld [vmem:[%s8347_s2 + $0xd0] sm:$0xf0] }
  0x15   :  { %v3729_v59 = vld [vmem:[%s8347_s2 + $0x40] sm:$0xf]  ;;  %v5329_v60 = vld [vmem:[%s8347_s2 + $0x4c] sm:$0xf0]  ;;  %v4130_v62 = vor.u32 %v5429_v55, %v4129_v54  ;;  %1273 = vmatpush.bf16.msra.mxu1 %v3874_v57  ;;  %v5343_v55 = vld [vmem:[%s8347_s2 + $0xc4] sm:$0xf] }
  0x16   :  { %v3857_v61 = vld [vmem:[%s8347_s2 + $0x140] sm:$0xf]  ;;  %v5361_v63 = vld [vmem:[%s8347_s2 + $0x14c] sm:$0xf0]  ;;  %v3730_v4 = vor.u32 %v5329_v60, %v3729_v59  ;;  %1286 = vmatpush.bf16.msra.mxu2 %v4002_v58  ;;  %v6072_v60 = vpack.c.b16 %v255_v42, %v255_v42  ;;  %v3747_v34 = vld [vmem:[%s8347_s2 + $0x70] sm:$0xf0] }
  0x17   :  { %v3985_v0 = vld [vmem:[%s8347_s2 + $0x240] sm:$0xf]  ;;  %v5393_v1 = vld [vmem:[%s8347_s2 + $0x24c] sm:$0xf0]  ;;  %v3858_v5 = vor.u32 %v5361_v63, %v3857_v61  ;;  %1299 = vmatpush.bf16.msra.mxu3 %v4130_v62  ;;  %v3942_v61 = vor.u32 %v5379_v46, %v3939_v47  ;;  %v5375_v63 = vld [vmem:[%s8347_s2 + $0x1c4] sm:$0xf] }
  0x18   :  { %v4113_v2 = vld [vmem:[%s8347_s2 + $0x340] sm:$0xf]  ;;  %v5425_v3 = vld [vmem:[%s8347_s2 + $0x34c] sm:$0xf0]  ;;  %v3986_v6 = vor.u32 %v5393_v1, %v3985_v0  ;;  %1261 = vmatpush.bf16.msra.mxu0 %v3730_v4  ;;  %v3923_v0 = vld [vmem:[%s8347_s2 + $0x1d0] sm:$0xf0] }
  0x19   :  { %v3713_v7 = vld [vmem:[%s8347_s2 + $0x20] sm:$0xf]  ;;  %v5325_v8 = vld [vmem:[%s8347_s2 + $0x2c] sm:$0xf0]  ;;  %v4114_v10 = vor.u32 %v5425_v3, %v4113_v2  ;;  %1274 = vmatpush.bf16.msra.mxu1 %v3858_v5  ;;  %v3798_v2 = vor.u32 %v5343_v55, %v3795_v56  ;;  %v5327_v46 = vld [vmem:[%s8347_s2 + $0x44] sm:$0xf] }
  0x1a   :  { %v3841_v9 = vld [vmem:[%s8347_s2 + $0x120] sm:$0xf]  ;;  %v5357_v11 = vld [vmem:[%s8347_s2 + $0x12c] sm:$0xf0]  ;;  %v3714_v17 = vor.u32 %v5325_v8, %v3713_v7  ;;  %1287 = vmatpush.bf16.msra.mxu2 %v3986_v6  ;;  %v5339_v7 = vld [vmem:[%s8347_s2 + $0xa4] sm:$0xf] }
  0x1b   :  { %v3969_v12 = vld [vmem:[%s8347_s2 + $0x220] sm:$0xf]  ;;  %v5389_v13 = vld [vmem:[%s8347_s2 + $0x22c] sm:$0xf0]  ;;  %v3842_v21 = vor.u32 %v5357_v11, %v3841_v9  ;;  %1300 = vmatpush.bf16.msra.mxu3 %v4114_v10  ;;  %v3779_v8 = vld [vmem:[%s8347_s2 + $0xb0] sm:$0xf0]  ;;  %v3926_v10 = vor.u32 %v5375_v63, %v3923_v0 }
  0x1c   :  { %v4097_v14 = vld [vmem:[%s8347_s2 + $0x320] sm:$0xf]  ;;  %v5421_v15 = vld [vmem:[%s8347_s2 + $0x32c] sm:$0xf0]  ;;  %v3970_v22 = vor.u32 %v5389_v13, %v3969_v12  ;;  %1262 = vmatpush.bf16.msra.mxu0 %v3714_v17  ;;  %v5371_v12 = vld [vmem:[%s8347_s2 + $0x1a4] sm:$0xf] }
  0x1d   :  { %v3697_v16 = vld [vmem:[%s8347_s2] sm:$0xf]  ;;  %v5321_v18 = vld [vmem:[%s8347_s2 + $0xc] sm:$0xf0]  ;;  %v4098_v26 = vor.u32 %v5421_v15, %v4097_v14  ;;  %1275 = vmatpush.bf16.msra.mxu1 %v3842_v21  ;;  %v3907_v13 = vld [vmem:[%s8347_s2 + $0x1b0] sm:$0xf0]  ;;  %v3782_v15 = vor.u32 %v5339_v7, %v3779_v8 }
  0x1e   :  { %v3825_v19 = vld [vmem:[%s8347_s2 + $0x100] sm:$0xf]  ;;  %v5353_v20 = vld [vmem:[%s8347_s2 + $0x10c] sm:$0xf0]  ;;  %v3698_v33 = vor.u32 %v5321_v18, %v3697_v16  ;;  %1288 = vmatpush.bf16.msra.mxu2 %v3970_v22  ;;  %v3763_v21 = vld [vmem:[%s8347_s2 + $0x90] sm:$0xf0] }
  0x1f   :  { %v3953_v23 = vld [vmem:[%s8347_s2 + $0x200] sm:$0xf]  ;;  %v5385_v24 = vld [vmem:[%s8347_s2 + $0x20c] sm:$0xf0]  ;;  %v3826_v38 = vor.u32 %v5353_v20, %v3825_v19  ;;  %1301 = vmatpush.bf16.msra.mxu3 %v4098_v26  ;;  %v5335_v20 = vld [vmem:[%s8347_s2 + $0x84] sm:$0xf] }
  0x20   :  { %v4081_v27 = vld [vmem:[%s8347_s2 + $0x300] sm:$0xf]  ;;  %v5417_v28 = vld [vmem:[%s8347_s2 + $0x30c] sm:$0xf0]  ;;  %v3954_v39 = vor.u32 %v5385_v24, %v3953_v23  ;;  %1263 = vmatpush.bf16.msra.mxu0 %v3698_v33  ;;  %v41_v22 = vld [vmem:[%s8348_s0 + $0x18] sm:$0xf]  ;;  %v3910_v23 = vor.u32 %v5371_v12, %v3907_v13 }
  0x21   :  { %v4321_v29 = vld [vmem:[%s8347_s2 + $0x4e0] sm:$0xf]  ;;  %v5477_v30 = vld [vmem:[%s8347_s2 + $0x4ec] sm:$0xf0]  ;;  %v4082_v43 = vor.u32 %v5417_v28, %v4081_v27  ;;  %1276 = vmatpush.bf16.msra.mxu1 %v3826_v38  ;;  %v3891_v26 = vld [vmem:[%s8347_s2 + $0x190] sm:$0xf0]  ;;  %v3766_v28 = vor.u32 %v5335_v20, %v3763_v21  ;;  %v258_v35 = vunpack.c.l.b16 %v41_v22 }
  0x22   :  { %v4449_v31 = vld [vmem:[%s8347_s2 + $0x5e0] sm:$0xf]  ;;  %v5509_v32 = vld [vmem:[%s8347_s2 + $0x5ec] sm:$0xf0]  ;;  %v4322_v44 = vor.u32 %v5477_v30, %v4321_v29  ;;  %1289 = vmatpush.bf16.msra.mxu2 %v3954_v39  ;;  %v5331_v33 = vld [vmem:[%s8347_s2 + $0x64] sm:$0xf]  ;;  %v3894_v36 = vor.u32 %v5367_v25, %v3891_v26 }
  0x23   :  { %v38_v37 = vld [vmem:[%s8348_s0] sm:$0xff]  ;;  %v5513_v45 = vld [vmem:[%s8347_s2 + $0x60c] sm:$0xf0]  ;;  %v4450_v48 = vor.u32 %v5509_v32, %v4449_v31  ;;  %1302 = vmatpush.bf16.msra.mxu3 %v4082_v43  ;;  %v3875_v39 = vld [vmem:[%s8347_s2 + $0x170] sm:$0xf0] }
  0x24   :  { %v4465_v40 = vld [vmem:[%s8347_s2 + $0x600] sm:$0xf]  ;;  %v252_v41 = vunpack.c.l.b16 %v38_v37  ;;  %v5473_v51 = vld [vmem:[%s8347_s2 + $0x4cc] sm:$0xf0]  ;;  %v253_v58 = vunpack.c.h.b16 %v38_v37  ;;  %1308 = vmatpush.bf16.msrb.mxu0 %v4322_v44  ;;  %v5363_v38 = vld [vmem:[%s8347_s2 + $0x164] sm:$0xf] }
  0x25   :  { %v4305_v50 = vld [vmem:[%s8347_s2 + $0x4c0] sm:$0xf]  ;;  %v5505_v54 = vld [vmem:[%s8347_s2 + $0x5cc] sm:$0xf0]  ;;  %v4466_v59 = vor.u32 %v5513_v45, %v4465_v40  ;;  %1321 = vmatpush.bf16.msrb.mxu1 %v4450_v48  ;;  %1290 = vmatmul.bf16.vlgmr.msra.gmra.mxu2 %v6059_v53  ;;  %v3731_v47 = vld [vmem:[%s8347_s2 + $0x50] sm:$0xf0]  ;;  %v6179_v48 = vpack.c.b16 %v258_v35, %v258_v35 }
  0x26   :  { %v4433_v52 = vld [vmem:[%s8347_s2 + $0x5c0] sm:$0xf]  ;;  %v6070_v57 = vpack.c.b16 %v252_v41, %v252_v41  ;;  %v4306_v62 = vor.u32 %v5473_v51, %v4305_v50  ;;  %v5469_v4 = vld [vmem:[%s8347_s2 + $0x4ac] sm:$0xf0]  ;;  %v6100_v9 = vpack.c.b16 %v253_v58, %v253_v58  ;;  %1303 = vmatmul.bf16.vlgmr.msra.gmra.mxu3 %v6072_v60  ;;  %v3750_v41 = vor.u32 %v5331_v33, %v3747_v34  ;;  %v5359_v51 = vld [vmem:[%s8347_s2 + $0x144] sm:$0xf] }
  0x27   :  { %1347 = vmatpush.bf16.msrb.mxu3 %v3814_v49  ;;  %v4434_v1 = vor.u32 %v5505_v54, %v4433_v52  ;;  %v4289_v3 = vld [vmem:[%s8347_s2 + $0x4a0] sm:$0xf]  ;;  %v5501_v6 = vld [vmem:[%s8347_s2 + $0x5ac] sm:$0xf0]  ;;  %1341 = vmatpush.bf16.msrb.mxu2 %v4466_v59  ;;  %v3878_v49 = vor.u32 %v5363_v38, %v3875_v39  ;;  %v3859_v52 = vld [vmem:[%s8347_s2 + $0x150] sm:$0xf0]  ;;  %v3734_v55 = vor.u32 %v5327_v46, %v3731_v47 }
  0x28   :  { %v4417_v5 = vld [vmem:[%s8347_s2 + $0x5a0] sm:$0xf]  ;;  %1264 = vmatmul.bf16.vlgmr.msra.gmra.mxu0 %v6070_v57  ;;  %v4290_v11 = vor.u32 %v5469_v4, %v4289_v3  ;;  %v5465_v17 = vld [vmem:[%s8347_s2 + $0x48c] sm:$0xf0]  ;;  %1277 = vmatmul.bf16.vlgmr.msra.gmra.mxu1 %v6100_v9  ;;  %v3715_v63 = vld [vmem:[%s8347_s2 + $0x30] sm:$0xf0] }
  0x29   :  { %1309 = vmatpush.bf16.msrb.mxu0 %v4306_v62  ;;  %1322 = vmatpush.bf16.msrb.mxu1 %v4434_v1  ;;  %v4418_v14 = vor.u32 %v5501_v6, %v4417_v5  ;;  %v4273_v16 = vld [vmem:[%s8347_s2 + $0x480] sm:$0xf]  ;;  %v5497_v19 = vld [vmem:[%s8347_s2 + $0x58c] sm:$0xf0]  ;;  %v5323_v62 = vld [vmem:[%s8347_s2 + $0x24] sm:$0xf]  ;;  %v3862_v1 = vor.u32 %v5359_v51, %v3859_v52 }
  0x2a   :  { %v4401_v18 = vld [vmem:[%s8347_s2 + $0x580] sm:$0xf]  ;;  %v4274_v24 = vor.u32 %v5465_v17, %v4273_v16  ;;  %v5461_v30 = vld [vmem:[%s8347_s2 + $0x46c] sm:$0xf0]  ;;  %v5355_v0 = vld [vmem:[%s8347_s2 + $0x124] sm:$0xf]  ;;  %v3718_v7 = vor.u32 %v5323_v62, %v3715_v63 }
  0x2b   :  { %1360 = vmatpush.bf16.msra.mxu2 %v3942_v61  ;;  %1348 = vmatpush.bf16.msrb.mxu3 %v3798_v2  ;;  %v4402_v27 = vor.u32 %v5497_v19, %v4401_v18  ;;  %v4257_v29 = vld [vmem:[%s8347_s2 + $0x460] sm:$0xf]  ;;  %v5493_v32 = vld [vmem:[%s8347_s2 + $0x56c] sm:$0xf0]  ;;  %v3843_v3 = vld [vmem:[%s8347_s2 + $0x130] sm:$0xf0] }
  0x2c   :  { %v4385_v31 = vld [vmem:[%s8347_s2 + $0x560] sm:$0xf]  ;;  %v4258_v37 = vor.u32 %v5461_v30, %v4257_v29  ;;  %v5457_v43 = vld [vmem:[%s8347_s2 + $0x44c] sm:$0xf0]  ;;  %v5319_v12 = vld [vmem:[%s8347_s2 + $0x4] sm:$0xf]  ;;  %v3846_v19 = vor.u32 %v5355_v0, %v3843_v3 }
  0x2d   :  { %1310 = vmatpush.bf16.msrb.mxu0 %v4290_v11  ;;  %1323 = vmatpush.bf16.msrb.mxu1 %v4418_v14  ;;  %v4386_v40 = vor.u32 %v5493_v32, %v4385_v31  ;;  %v4241_v42 = vld [vmem:[%s8347_s2 + $0x440] sm:$0xf]  ;;  %v5489_v45 = vld [vmem:[%s8347_s2 + $0x54c] sm:$0xf0]  ;;  %v3699_v13 = vld [vmem:[%s8347_s2 + $0x10] sm:$0xf0] }
  0x2e   :  { %v4369_v44 = vld [vmem:[%s8347_s2 + $0x540] sm:$0xf]  ;;  %v4242_v50 = vor.u32 %v5457_v43, %v4241_v42  ;;  %v5453_v58 = vld [vmem:[%s8347_s2 + $0x42c] sm:$0xf0]  ;;  %v5411_v14 = vld [vmem:[%s8347_s2 + $0x2e4] sm:$0xf]  ;;  %v3702_v25 = vor.u32 %v5319_v12, %v3699_v13 }
  0x2f   :  { %1361 = vmatpush.bf16.msra.mxu2 %v3926_v10  ;;  %1349 = vmatpush.bf16.msrb.mxu3 %v3782_v15  ;;  %v4370_v54 = vor.u32 %v5489_v45, %v4369_v44  ;;  %v4225_v56 = vld [vmem:[%s8347_s2 + $0x420] sm:$0xf]  ;;  %v5485_v61 = vld [vmem:[%s8347_s2 + $0x52c] sm:$0xf0]  ;;  %v4067_v15 = vld [vmem:[%s8347_s2 + $0x2f0] sm:$0xf0] }
  0x30   :  { %v4353_v59 = vld [vmem:[%s8347_s2 + $0x520] sm:$0xf]  ;;  %v4226_v2 = vor.u32 %v5453_v58, %v4225_v56  ;;  %v40_v5 = vld [vmem:[%s8348_s0 + $0x10] sm:$0xff]  ;;  %v5443_v16 = vld [vmem:[%s8347_s2 + $0x3e4] sm:$0xf] }
  0x31   :  { %1311 = vmatpush.bf16.msrb.mxu0 %v4274_v24  ;;  %1324 = vmatpush.bf16.msrb.mxu1 %v4402_v27  ;;  %v4209_v4 = vld [vmem:[%s8347_s2 + $0x400] sm:$0xf]  ;;  %v4354_v6 = vor.u32 %v5485_v61, %v4353_v59  ;;  %v5449_v8 = vld [vmem:[%s8347_s2 + $0x40c] sm:$0xf0]  ;;  %v4195_v17 = vld [vmem:[%s8347_s2 + $0x3f0] sm:$0xf0]  ;;  %v256_v18 = vunpack.c.l.b16 %v40_v5 }
  0x32   :  { %v4337_v10 = vld [vmem:[%s8347_s2 + $0x500] sm:$0xf]  ;;  %v5481_v11 = vld [vmem:[%s8347_s2 + $0x50c] sm:$0xf0]  ;;  %v4210_v20 = vor.u32 %v5449_v8, %v4209_v4  ;;  %v5475_v21 = vld [vmem:[%s8347_s2 + $0x4e4] sm:$0xf]  ;;  %v4198_v29 = vor.u32 %v5443_v16, %v4195_v17 }
  0x33   :  { %1362 = vmatpush.bf16.msra.mxu2 %v3910_v23  ;;  %1350 = vmatpush.bf16.msrb.mxu3 %v3766_v28  ;;  %v4323_v22 = vld [vmem:[%s8347_s2 + $0x4f0] sm:$0xf0]  ;;  %v257_v23 = vunpack.c.h.b16 %v40_v5  ;;  %v4338_v24 = vor.u32 %v5481_v11, %v4337_v10  ;;  %v5351_v26 = vld [vmem:[%s8347_s2 + $0x104] sm:$0xf]  ;;  %v4070_v28 = vor.u32 %v5411_v14, %v4067_v15  ;;  %v6267_v34 = vpack.c.b16 %v256_v18, %v256_v18 }
  0x34   :  { %v3827_v27 = vld [vmem:[%s8347_s2 + $0x110] sm:$0xf0]  ;;  %v5507_v30 = vld [vmem:[%s8347_s2 + $0x5e4] sm:$0xf]  ;;  %v4326_v33 = vor.u32 %v5475_v21, %v4323_v22 }
  0x35   :  { %1312 = vmatpush.bf16.msrb.mxu0 %v4258_v37  ;;  %1325 = vmatpush.bf16.msrb.mxu1 %v4386_v40  ;;  %v4451_v31 = vld [vmem:[%s8347_s2 + $0x5f0] sm:$0xf0]  ;;  %v5407_v32 = vld [vmem:[%s8347_s2 + $0x2c4] sm:$0xf]  ;;  %v3830_v38 = vor.u32 %v5351_v26, %v3827_v27  ;;  %v6278_v39 = vpack.c.b16 %v257_v23, %v257_v23 }
  0x36   :  { %4479 = vmatmul.msk.bf16.vlgmr.msrb.gmra.mxu2 %vm1252_vm0, %v6179_v48  ;;  %v4051_v35 = vld [vmem:[%s8347_s2 + $0x2d0] sm:$0xf0]  ;;  %v5471_v40 = vld [vmem:[%s8347_s2 + $0x4c4] sm:$0xf]  ;;  %v4454_v42 = vor.u32 %v5507_v30, %v4451_v31 }
  0x37   :  { %1363 = vmatpush.bf16.msra.mxu2 %v3894_v36  ;;  %1351 = vmatpush.bf16.msrb.mxu3 %v3750_v41  ;;  %v5439_v36 = vld [vmem:[%s8347_s2 + $0x3c4] sm:$0xf]  ;;  %v4179_v37 = vld [vmem:[%s8347_s2 + $0x3d0] sm:$0xf0]  ;;  %v4054_v43 = vor.u32 %v5407_v32, %v4051_v35 }
  0x38   :  { %v4307_v41 = vld [vmem:[%s8347_s2 + $0x4d0] sm:$0xf0]  ;;  %v4182_v44 = vor.u32 %v5439_v36, %v4179_v37  ;;  %v5503_v45 = vld [vmem:[%s8347_s2 + $0x5c4] sm:$0xf] }
  0x39   :  { %1313 = vmatpush.bf16.msrb.mxu0 %v4242_v50  ;;  %1326 = vmatpush.bf16.msrb.mxu1 %v4370_v54  ;;  %v4435_v46 = vld [vmem:[%s8347_s2 + $0x5d0] sm:$0xf0]  ;;  %v5403_v47 = vld [vmem:[%s8347_s2 + $0x2a4] sm:$0xf] }
  0x3a   :  { %v4035_v50 = vld [vmem:[%s8347_s2 + $0x2b0] sm:$0xf0]  ;;  %v5435_v51 = vld [vmem:[%s8347_s2 + $0x3a4] sm:$0xf]  ;;  %v4438_v56 = vor.u32 %v5503_v45, %v4435_v46 }
  0x3b   :  { %1364 = vmatpush.bf16.msra.mxu2 %v3878_v49  ;;  %1352 = vmatpush.bf16.msrb.mxu3 %v3734_v55  ;;  %v4310_v49 = vor.u32 %v5471_v40, %v4307_v41  ;;  %v4163_v52 = vld [vmem:[%s8347_s2 + $0x3b0] sm:$0xf0]  ;;  %v5467_v54 = vld [vmem:[%s8347_s2 + $0x4a4] sm:$0xf]  ;;  %v4038_v58 = vor.u32 %v5403_v47, %v4035_v50 }
  0x3c   :  { %v4291_v55 = vld [vmem:[%s8347_s2 + $0x4b0] sm:$0xf0]  ;;  %v4166_v59 = vor.u32 %v5435_v51, %v4163_v52  ;;  %v5499_v61 = vld [vmem:[%s8347_s2 + $0x5a4] sm:$0xf] }
  0x3d   :  { %1314 = vmatpush.bf16.msrb.mxu0 %v4226_v2  ;;  %1327 = vmatpush.bf16.msrb.mxu1 %v4354_v6  ;;  %v4419_v62 = vld [vmem:[%s8347_s2 + $0x5b0] sm:$0xf0]  ;;  %v5399_v63 = vld [vmem:[%s8347_s2 + $0x284] sm:$0xf]  ;;  %v4294_v0 = vor.u32 %v5467_v54, %v4291_v55 }
  0x3e   :  { %v5431_v2 = vld [vmem:[%s8347_s2 + $0x384] sm:$0xf]  ;;  %v4147_v3 = vld [vmem:[%s8347_s2 + $0x390] sm:$0xf0]  ;;  %v4422_v6 = vor.u32 %v5499_v61, %v4419_v62  ;;  %v3817_v61 = vld [vmem:[%s8347_s2 + $0xe8] sm:$0xf] }
  0x3f   :  { %1365 = vmatpush.bf16.msra.mxu2 %v3862_v1  ;;  %1353 = vmatpush.bf16.msrb.mxu3 %v3718_v7  ;;  %v4019_v1 = vld [vmem:[%s8347_s2 + $0x290] sm:$0xf0]  ;;  %v5463_v4 = vld [vmem:[%s8347_s2 + $0x484] sm:$0xf]  ;;  %v4150_v8 = vor.u32 %v5431_v2, %v4147_v3  ;;  %v5350_v62 = vld [vmem:[%s8347_s2 + $0xf4] sm:$0xf0] }
  0x40   :  { %v4275_v5 = vld [vmem:[%s8347_s2 + $0x490] sm:$0xf0]  ;;  %v4022_v7 = vor.u32 %v5399_v63, %v4019_v1  ;;  %v5495_v10 = vld [vmem:[%s8347_s2 + $0x584] sm:$0xf]  ;;  %v3945_v63 = vld [vmem:[%s8347_s2 + $0x1e8] sm:$0xf] }
  0x41   :  { %1315 = vmatpush.bf16.msrb.mxu0 %v4210_v20  ;;  %1328 = vmatpush.bf16.msrb.mxu1 %v4338_v24  ;;  %v4403_v11 = vld [vmem:[%s8347_s2 + $0x590] sm:$0xf0]  ;;  %v5395_v12 = vld [vmem:[%s8347_s2 + $0x264] sm:$0xf]  ;;  %v4278_v13 = vor.u32 %v5463_v4, %v4275_v5  ;;  %v5382_v1 = vld [vmem:[%s8347_s2 + $0x1f4] sm:$0xf0] }
  0x42   :  { %v4003_v14 = vld [vmem:[%s8347_s2 + $0x270] sm:$0xf0]  ;;  %v5427_v15 = vld [vmem:[%s8347_s2 + $0x364] sm:$0xf] }
  0x43   :  { %1366 = vmatpush.bf16.msra.mxu2 %v3846_v19  ;;  %1354 = vmatpush.bf16.msrb.mxu3 %v3702_v25  ;;  %v4131_v16 = vld [vmem:[%s8347_s2 + $0x370] sm:$0xf0]  ;;  %v5459_v17 = vld [vmem:[%s8347_s2 + $0x464] sm:$0xf]  ;;  %v4406_v19 = vor.u32 %v5495_v10, %v4403_v11  ;;  %v4006_v20 = vor.u32 %v5395_v12, %v4003_v14  ;;  %v3818_v11 = vor.u32 %v5350_v62, %v3817_v61  ;;  %v5414_v12 = vld [vmem:[%s8347_s2 + $0x2f4] sm:$0xf0] }
  0x44   :  { %1316 = vmatmul.bf16.vlgmr.msrb.gmra.mxu0 %v6267_v34  ;;  %1329 = vmatmul.bf16.vlgmr.msrb.gmra.mxu1 %v6278_v39  ;;  %v4259_v18 = vld [vmem:[%s8347_s2 + $0x470] sm:$0xf0]  ;;  %v4134_v21 = vor.u32 %v5427_v15, %v4131_v16  ;;  %v5491_v22 = vld [vmem:[%s8347_s2 + $0x564] sm:$0xf]  ;;  %v5446_v14 = vld [vmem:[%s8347_s2 + $0x3f4] sm:$0xf0]  ;;  %v3946_v15 = vor.u32 %v5382_v1, %v3945_v63 }
  0x45   :  { %1373 = vmatpush.bf16.msra.mxu0 %v4070_v28  ;;  %1386 = vmatpush.bf16.msra.mxu1 %v4198_v29  ;;  %v4387_v23 = vld [vmem:[%s8347_s2 + $0x570] sm:$0xf0]  ;;  %v5391_v24 = vld [vmem:[%s8347_s2 + $0x244] sm:$0xf]  ;;  %v4262_v25 = vor.u32 %v5459_v17, %v4259_v18  ;;  %v3801_v17 = vld [vmem:[%s8347_s2 + $0xc8] sm:$0xf] }
  0x46   :  { %1355 = vmatmul.bf16.vlgmr.msrb.gmra.mxu3 %v6070_v57  ;;  %v3987_v26 = vld [vmem:[%s8347_s2 + $0x250] sm:$0xf0]  ;;  %v5423_v27 = vld [vmem:[%s8347_s2 + $0x344] sm:$0xf]  ;;  %v4390_v31 = vor.u32 %v5491_v22, %v4387_v23  ;;  %v5346_v18 = vld [vmem:[%s8347_s2 + $0xd4] sm:$0xf0] }
  0x47   :  { %1399 = vmatpush.bf16.msra.mxu3 %v4326_v33  ;;  %1367 = vmatpush.bf16.msra.mxu2 %v3830_v38  ;;  %v4115_v28 = vld [vmem:[%s8347_s2 + $0x350] sm:$0xf0]  ;;  %v5455_v29 = vld [vmem:[%s8347_s2 + $0x444] sm:$0xf]  ;;  %v3990_v32 = vor.u32 %v5391_v24, %v3987_v26  ;;  %v4057_v24 = vld [vmem:[%s8347_s2 + $0x2c8] sm:$0xf] }
  0x48   :  { %v4243_v30 = vld [vmem:[%s8347_s2 + $0x450] sm:$0xf0]  ;;  %v4118_v33 = vor.u32 %v5423_v27, %v4115_v28  ;;  %v5487_v35 = vld [vmem:[%s8347_s2 + $0x544] sm:$0xf]  ;;  %v5410_v26 = vld [vmem:[%s8347_s2 + $0x2d4] sm:$0xf0] }
  0x49   :  { %1374 = vmatpush.bf16.msra.mxu0 %v4054_v43  ;;  %1387 = vmatpush.bf16.msra.mxu1 %v4182_v44  ;;  %v4371_v36 = vld [vmem:[%s8347_s2 + $0x550] sm:$0xf0]  ;;  %v5387_v37 = vld [vmem:[%s8347_s2 + $0x224] sm:$0xf]  ;;  %v4246_v38 = vor.u32 %v5455_v29, %v4243_v30  ;;  %v4185_v27 = vld [vmem:[%s8347_s2 + $0x3c8] sm:$0xf] }
  0x4a   :  { %1368 = vmatmul.bf16.vlgmr.msra.gmra.mxu2 %v6100_v9  ;;  %v3971_v40 = vld [vmem:[%s8347_s2 + $0x230] sm:$0xf0]  ;;  %v5419_v41 = vld [vmem:[%s8347_s2 + $0x324] sm:$0xf]  ;;  %v4374_v45 = vor.u32 %v5487_v35, %v4371_v36  ;;  %v5442_v28 = vld [vmem:[%s8347_s2 + $0x3d4] sm:$0xf0]  ;;  %v4058_v35 = vor.u32 %v5410_v26, %v4057_v24 }
  0x4b   :  { %1412 = vmatpush.bf16.msrb.mxu2 %v4454_v42  ;;  %1400 = vmatpush.bf16.msra.mxu3 %v4310_v49  ;;  %v4099_v42 = vld [vmem:[%s8347_s2 + $0x330] sm:$0xf0]  ;;  %v5451_v43 = vld [vmem:[%s8347_s2 + $0x424] sm:$0xf]  ;;  %v3974_v49 = vor.u32 %v5387_v37, %v3971_v40  ;;  %v3785_v30 = vld [vmem:[%s8347_s2 + $0xa8] sm:$0xf]  ;;  %v4186_v36 = vor.u32 %v5442_v28, %v4185_v27 }
  0x4c   :  { %v4227_v44 = vld [vmem:[%s8347_s2 + $0x430] sm:$0xf0]  ;;  %v5483_v46 = vld [vmem:[%s8347_s2 + $0x524] sm:$0xf]  ;;  %v4102_v50 = vor.u32 %v5419_v41, %v4099_v42  ;;  %v4041_v37 = vld [vmem:[%s8347_s2 + $0x2a8] sm:$0xf] }
  0x4d   :  { %1375 = vmatpush.bf16.msra.mxu0 %v4038_v58  ;;  %1388 = vmatpush.bf16.msra.mxu1 %v4166_v59  ;;  %v4355_v47 = vld [vmem:[%s8347_s2 + $0x530] sm:$0xf0]  ;;  %v5383_v51 = vld [vmem:[%s8347_s2 + $0x204] sm:$0xf]  ;;  %v4230_v55 = vor.u32 %v5451_v43, %v4227_v44  ;;  %v5406_v40 = vld [vmem:[%s8347_s2 + $0x2b4] sm:$0xf0] }
  0x4e   :  { %v3955_v52 = vld [vmem:[%s8347_s2 + $0x210] sm:$0xf0]  ;;  %v5415_v54 = vld [vmem:[%s8347_s2 + $0x304] sm:$0xf]  ;;  %v4169_v41 = vld [vmem:[%s8347_s2 + $0x3a8] sm:$0xf] }
  0x4f   :  { %1413 = vmatpush.bf16.msrb.mxu2 %v4438_v56  ;;  %1401 = vmatpush.bf16.msra.mxu3 %v4294_v0  ;;  %v4083_v56 = vld [vmem:[%s8347_s2 + $0x310] sm:$0xf0]  ;;  %v5447_v58 = vld [vmem:[%s8347_s2 + $0x404] sm:$0xf]  ;;  %v4358_v0 = vor.u32 %v5483_v46, %v4355_v47  ;;  %v3958_v4 = vor.u32 %v5383_v51, %v3955_v52  ;;  %v5438_v42 = vld [vmem:[%s8347_s2 + $0x3b4] sm:$0xf0] }
  0x50   :  { %v4211_v59 = vld [vmem:[%s8347_s2 + $0x410] sm:$0xf0]  ;;  %v5511_v2 = vld [vmem:[%s8347_s2 + $0x604] sm:$0xf]  ;;  %v4086_v5 = vor.u32 %v5415_v54, %v4083_v56  ;;  %v3769_v44 = vld [vmem:[%s8347_s2 + $0x88] sm:$0xf] }
  0x51   :  { %1376 = vmatpush.bf16.msra.mxu0 %v4022_v7  ;;  %1389 = vmatpush.bf16.msra.mxu1 %v4150_v8  ;;  %v4467_v3 = vld [vmem:[%s8347_s2 + $0x610] sm:$0xf0]  ;;  %v4073_v8 = vld [vmem:[%s8347_s2 + $0x2e8] sm:$0xf]  ;;  %v4214_v10 = vor.u32 %v5447_v58, %v4211_v59  ;;  %v5370_v47 = vld [vmem:[%s8347_s2 + $0x194] sm:$0xf0] }
  0x52   :  { %v4339_v7 = vld [vmem:[%s8347_s2 + $0x510] sm:$0xf0]  ;;  %v4470_v16 = vor.u32 %v5511_v2, %v4467_v3  ;;  %v4074_v22 = vor.u32 %v5414_v12, %v4073_v8  ;;  %v3897_v46 = vld [vmem:[%s8347_s2 + $0x188] sm:$0xf]  ;;  %v5402_v54 = vld [vmem:[%s8347_s2 + $0x294] sm:$0xf0] }
  0x53   :  { %1414 = vmatpush.bf16.msrb.mxu2 %v4422_v6  ;;  %1402 = vmatpush.bf16.msra.mxu3 %v4278_v13  ;;  %v5479_v6 = vld [vmem:[%s8347_s2 + $0x504] sm:$0xf]  ;;  %v4201_v13 = vld [vmem:[%s8347_s2 + $0x3e8] sm:$0xf]  ;;  %v5434_v56 = vld [vmem:[%s8347_s2 + $0x394] sm:$0xf0]  ;;  %v3898_v58 = vor.u32 %v5370_v47, %v3897_v46 }
  0x54   :  { %v4202_v23 = vor.u32 %v5446_v14, %v4201_v13  ;;  %v4025_v51 = vld [vmem:[%s8347_s2 + $0x288] sm:$0xf]  ;;  %v5334_v61 = vld [vmem:[%s8347_s2 + $0x74] sm:$0xf0] }
  0x55   :  { %1377 = vmatpush.bf16.msra.mxu0 %v4006_v20  ;;  %1390 = vmatpush.bf16.msra.mxu1 %v4134_v21  ;;  %v3929_v20 = vld [vmem:[%s8347_s2 + $0x1c8] sm:$0xf]  ;;  %v5378_v21 = vld [vmem:[%s8347_s2 + $0x1d4] sm:$0xf0] }
  0x56   :  { %v3930_v29 = vor.u32 %v5378_v21, %v3929_v20  ;;  %v3753_v59 = vld [vmem:[%s8347_s2 + $0x68] sm:$0xf]  ;;  %v5366_v63 = vld [vmem:[%s8347_s2 + $0x174] sm:$0xf0] }
  0x57   :  { %1415 = vmatpush.bf16.msrb.mxu2 %v4406_v19  ;;  %1403 = vmatpush.bf16.msra.mxu3 %v4262_v25  ;;  %v4342_v19 = vor.u32 %v5479_v6, %v4339_v7  ;;  %v3802_v25 = vor.u32 %v5346_v18, %v3801_v17  ;;  %v3881_v62 = vld [vmem:[%s8347_s2 + $0x168] sm:$0xf]  ;;  %v3754_v3 = vor.u32 %v5334_v61, %v3753_v59  ;;  %v5430_v6 = vld [vmem:[%s8347_s2 + $0x374] sm:$0xf0] }
  0x58   :  { %v4009_v2 = vld [vmem:[%s8347_s2 + $0x268] sm:$0xf]  ;;  %v3882_v7 = vor.u32 %v5366_v63, %v3881_v62  ;;  %v5362_v12 = vld [vmem:[%s8347_s2 + $0x154] sm:$0xf0] }
  0x59   :  { %1378 = vmatpush.bf16.msra.mxu0 %v3990_v32  ;;  %1391 = vmatpush.bf16.msra.mxu1 %v4118_v33  ;;  %v3913_v32 = vld [vmem:[%s8347_s2 + $0x1a8] sm:$0xf]  ;;  %v5374_v33 = vld [vmem:[%s8347_s2 + $0x1b4] sm:$0xf0] }
  0x5a   :  { %v3914_v43 = vor.u32 %v5374_v33, %v3913_v32  ;;  %v3737_v8 = vld [vmem:[%s8347_s2 + $0x48] sm:$0xf]  ;;  %v5394_v17 = vld [vmem:[%s8347_s2 + $0x254] sm:$0xf0] }
  0x5b   :  { %1416 = vmatpush.bf16.msrb.mxu2 %v4390_v31  ;;  %1404 = vmatpush.bf16.msra.mxu3 %v4246_v38  ;;  %v5342_v31 = vld [vmem:[%s8347_s2 + $0xb4] sm:$0xf0]  ;;  %v4121_v18 = vld [vmem:[%s8347_s2 + $0x348] sm:$0xf] }
  0x5c   :  { %v3786_v38 = vor.u32 %v5342_v31, %v3785_v30  ;;  %v3721_v21 = vld [vmem:[%s8347_s2 + $0x28] sm:$0xf]  ;;  %v5358_v24 = vld [vmem:[%s8347_s2 + $0x134] sm:$0xf0] }
  0x5d   :  { %1379 = vmatpush.bf16.msra.mxu0 %v3974_v49  ;;  %1392 = vmatpush.bf16.msra.mxu1 %v4102_v50  ;;  %v4042_v49 = vor.u32 %v5406_v40, %v4041_v37  ;;  %v4170_v50 = vor.u32 %v5438_v42, %v4169_v41  ;;  %v3977_v27 = vld [vmem:[%s8347_s2 + $0x228] sm:$0xf]  ;;  %v5390_v28 = vld [vmem:[%s8347_s2 + $0x234] sm:$0xf0] }
  0x5e   :  { %v4105_v30 = vld [vmem:[%s8347_s2 + $0x328] sm:$0xf]  ;;  %v5422_v31 = vld [vmem:[%s8347_s2 + $0x334] sm:$0xf0]  ;;  %v3978_v42 = vor.u32 %v5390_v28, %v3977_v27 }
  0x5f   :  { %1417 = vmatpush.bf16.msrb.mxu2 %v4374_v45  ;;  %1405 = vmatpush.bf16.msra.mxu3 %v4230_v55  ;;  %v5338_v45 = vld [vmem:[%s8347_s2 + $0x94] sm:$0xf0]  ;;  %v4153_v55 = vld [vmem:[%s8347_s2 + $0x388] sm:$0xf] }
  0x60   :  { %v3770_v52 = vor.u32 %v5338_v45, %v3769_v44  ;;  %v4154_v1 = vor.u32 %v5434_v56, %v4153_v55  ;;  %v3705_v32 = vld [vmem:[%s8347_s2 + $0x8] sm:$0xf]  ;;  %v5354_v37 = vld [vmem:[%s8347_s2 + $0x114] sm:$0xf0]  ;;  %v3819_v55 = vld [vmem:[%s8347_s2 + $0xf8] sm:$0xf0] }
  0x61   :  { %1380 = vmatpush.bf16.msra.mxu0 %v3958_v4  ;;  %1393 = vmatpush.bf16.msra.mxu1 %v4086_v5  ;;  %v5398_v4 = vld [vmem:[%s8347_s2 + $0x274] sm:$0xf0]  ;;  %v4137_v5 = vld [vmem:[%s8347_s2 + $0x368] sm:$0xf] }
  0x62   :  { %v4010_v13 = vor.u32 %v5398_v4, %v4009_v2  ;;  %v4138_v14 = vor.u32 %v5430_v6, %v4137_v5  ;;  %v5478_v40 = vld [vmem:[%s8347_s2 + $0x4f4] sm:$0xf0]  ;;  %v4457_v41 = vld [vmem:[%s8347_s2 + $0x5e8] sm:$0xf]  ;;  %v5380_v5 = vld [vmem:[%s8347_s2 + $0x1ec] sm:$0xf] }
  0x63   :  { %1418 = vmatpush.bf16.msrb.mxu2 %v4358_v0  ;;  %1406 = vmatpush.bf16.msra.mxu3 %v4214_v10  ;;  %v4026_v0 = vor.u32 %v5402_v54, %v4025_v51  ;;  %v5330_v10 = vld [vmem:[%s8347_s2 + $0x54] sm:$0xf0]  ;;  %v3961_v45 = vld [vmem:[%s8347_s2 + $0x208] sm:$0xf]  ;;  %v5348_v51 = vld [vmem:[%s8347_s2 + $0xec] sm:$0xf] }
  0x64   :  { %1381 = vmatmul.bf16.vlgmr.msra.gmra.mxu0 %v6059_v53  ;;  %1394 = vmatmul.bf16.vlgmr.msra.gmra.mxu1 %v6072_v60  ;;  %v5510_v44 = vld [vmem:[%s8347_s2 + $0x5f4] sm:$0xf0]  ;;  %v4473_v56 = vld [vmem:[%s8347_s2 + $0x608] sm:$0xf]  ;;  %v3947_v6 = vld [vmem:[%s8347_s2 + $0x1f8] sm:$0xf0] }
  0x65   :  { %1438 = vmatpush.bf16.msrb.mxu1 %v3818_v11  ;;  %1432 = vmatpush.bf16.msrb.mxu0 %v4470_v16  ;;  %v3865_v11 = vld [vmem:[%s8347_s2 + $0x148] sm:$0xf]  ;;  %v3738_v16 = vor.u32 %v5330_v10, %v3737_v8  ;;  %v5386_v46 = vld [vmem:[%s8347_s2 + $0x214] sm:$0xf0]  ;;  %v4458_v59 = vor.u32 %v5510_v44, %v4457_v41  ;;  %v5344_v8 = vld [vmem:[%s8347_s2 + $0xcc] sm:$0xf] }
  0x66   :  { %1407 = vmatmul.bf16.vlgmr.msra.gmra.mxu3 %v6267_v34  ;;  %v3866_v20 = vor.u32 %v5362_v12, %v3865_v11  ;;  %v4313_v61 = vld [vmem:[%s8347_s2 + $0x4c8] sm:$0xf]  ;;  %v5474_v62 = vld [vmem:[%s8347_s2 + $0x4d4] sm:$0xf0]  ;;  %v3962_v63 = vor.u32 %v5386_v46, %v3961_v45  ;;  %v3803_v10 = vld [vmem:[%s8347_s2 + $0xd8] sm:$0xf0] }
  0x67   :  { %1451 = vmatpush.bf16.msrb.mxu3 %v3946_v15  ;;  %1419 = vmatpush.bf16.msrb.mxu2 %v4342_v19  ;;  %v3993_v15 = vld [vmem:[%s8347_s2 + $0x248] sm:$0xf]  ;;  %v5426_v19 = vld [vmem:[%s8347_s2 + $0x354] sm:$0xf0]  ;;  %v5368_v44 = vld [vmem:[%s8347_s2 + $0x18c] sm:$0xf] }
  0x68   :  { %v4122_v26 = vor.u32 %v5426_v19, %v4121_v18  ;;  %v5506_v2 = vld [vmem:[%s8347_s2 + $0x5d4] sm:$0xf0]  ;;  %v4297_v12 = vld [vmem:[%s8347_s2 + $0x4a8] sm:$0xf]  ;;  %v5376_v18 = vld [vmem:[%s8347_s2 + $0x1cc] sm:$0xf] }
  0x69   :  { %1464 = vmatpush.bf16.msra.mxu0 %v4074_v22  ;;  %1439 = vmatpush.bf16.msrb.mxu1 %v3802_v25  ;;  %v5326_v22 = vld [vmem:[%s8347_s2 + $0x34] sm:$0xf0]  ;;  %v3994_v25 = vor.u32 %v5394_v17, %v3993_v15  ;;  %v4425_v15 = vld [vmem:[%s8347_s2 + $0x5a8] sm:$0xf]  ;;  %v3806_v17 = vor.u32 %v5344_v8, %v3803_v10  ;;  %v3931_v19 = vld [vmem:[%s8347_s2 + $0x1d8] sm:$0xf0] }
  0x6a   :  { %1420 = vmatmul.bf16.vlgmr.msrb.gmra.mxu2 %v6278_v39  ;;  %v4409_v27 = vld [vmem:[%s8347_s2 + $0x588] sm:$0xf]  ;;  %v5498_v28 = vld [vmem:[%s8347_s2 + $0x594] sm:$0xf0]  ;;  %v3899_v45 = vld [vmem:[%s8347_s2 + $0x198] sm:$0xf0] }
  0x6b   :  { %1477 = vmatpush.bf16.msra.mxu2 %v4202_v23  ;;  %1452 = vmatpush.bf16.msrb.mxu3 %v3930_v29  ;;  %v3849_v23 = vld [vmem:[%s8347_s2 + $0x128] sm:$0xf]  ;;  %v3722_v29 = vor.u32 %v5326_v22, %v3721_v21  ;;  %v5340_v21 = vld [vmem:[%s8347_s2 + $0xac] sm:$0xf]  ;;  %v3787_v22 = vld [vmem:[%s8347_s2 + $0xb8] sm:$0xf0] }
  0x6c   :  { %v3850_v33 = vor.u32 %v5358_v24, %v3849_v23  ;;  %v4281_v24 = vld [vmem:[%s8347_s2 + $0x488] sm:$0xf]  ;;  %v5360_v8 = vld [vmem:[%s8347_s2 + $0x14c] sm:$0xf]  ;;  %v3867_v10 = vld [vmem:[%s8347_s2 + $0x158] sm:$0xf0] }
  0x6d   :  { %1465 = vmatpush.bf16.msra.mxu0 %v4058_v35  ;;  %1440 = vmatpush.bf16.msrb.mxu1 %v3786_v38  ;;  %v5322_v35 = vld [vmem:[%s8347_s2 + $0x14] sm:$0xf0]  ;;  %v4329_v38 = vld [vmem:[%s8347_s2 + $0x4e8] sm:$0xf] }
  0x6e   :  { %v3706_v47 = vor.u32 %v5322_v35, %v3705_v32  ;;  %v4330_v54 = vor.u32 %v5478_v40, %v4329_v38  ;;  %v3771_v35 = vld [vmem:[%s8347_s2 + $0x98] sm:$0xf0]  ;;  %v5462_v38 = vld [vmem:[%s8347_s2 + $0x474] sm:$0xf0]  ;;  %v4393_v41 = vld [vmem:[%s8347_s2 + $0x568] sm:$0xf] }
  0x6f   :  { %1478 = vmatpush.bf16.msra.mxu2 %v4186_v36  ;;  %1453 = vmatpush.bf16.msrb.mxu3 %v3914_v43  ;;  %v3833_v36 = vld [vmem:[%s8347_s2 + $0x108] sm:$0xf]  ;;  %v4106_v43 = vor.u32 %v5422_v31, %v4105_v30  ;;  %v5372_v30 = vld [vmem:[%s8347_s2 + $0x1ac] sm:$0xf]  ;;  %v3915_v31 = vld [vmem:[%s8347_s2 + $0x1b8] sm:$0xf0] }
  0x70   :  { %v3918_v40 = vor.u32 %v5372_v30, %v3915_v31 }
  0x71   :  { %1466 = vmatpush.bf16.msra.mxu0 %v4042_v49  ;;  %1441 = vmatpush.bf16.msrb.mxu1 %v3770_v52  ;;  %v4089_v49 = vld [vmem:[%s8347_s2 + $0x308] sm:$0xf]  ;;  %v3834_v52 = vor.u32 %v5354_v37, %v3833_v36  ;;  %v4410_v36 = vor.u32 %v5498_v28, %v4409_v27  ;;  %v5320_v28 = vld [vmem:[%s8347_s2 + $0xc] sm:$0xf] }
  0x72   :  { %v4265_v37 = vld [vmem:[%s8347_s2 + $0x468] sm:$0xf] }
  0x73   :  { %1479 = vmatpush.bf16.msra.mxu2 %v4170_v50  ;;  %1454 = vmatpush.bf16.msrb.mxu3 %v3898_v58  ;;  %v5418_v50 = vld [vmem:[%s8347_s2 + $0x314] sm:$0xf0]  ;;  %v4266_v46 = vor.u32 %v5462_v38, %v4265_v37  ;;  %v5408_v37 = vld [vmem:[%s8347_s2 + $0x2cc] sm:$0xf]  ;;  %v4059_v38 = vld [vmem:[%s8347_s2 + $0x2d8] sm:$0xf0] }
  0x74   :  { %4480 = vmatmul.msk.bf16.vlgmr.msrb.gmra.mxu0 %vm1252_vm0, %v6179_v48  ;;  %v5514_v58 = vld [vmem:[%s8347_s2 + $0x614] sm:$0xf0] }
  0x75   :  { %1467 = vmatpush.bf16.msra.mxu0 %v4026_v0  ;;  %1442 = vmatpush.bf16.msrb.mxu1 %v3754_v3  ;;  %v4090_v0 = vor.u32 %v5418_v50, %v4089_v49  ;;  %v3822_v3 = vor.u32 %v5348_v51, %v3819_v55  ;;  %v4474_v4 = vor.u32 %v5514_v58, %v4473_v56  ;;  %v3755_v49 = vld [vmem:[%s8347_s2 + $0x78] sm:$0xf0]  ;;  %v4249_v51 = vld [vmem:[%s8347_s2 + $0x448] sm:$0xf]  ;;  %v5490_v56 = vld [vmem:[%s8347_s2 + $0x554] sm:$0xf0] }
  0x76   :  { %v4377_v55 = vld [vmem:[%s8347_s2 + $0x548] sm:$0xf] }
  0x77   :  { %1480 = vmatpush.bf16.msra.mxu2 %v4154_v1  ;;  %1455 = vmatpush.bf16.msrb.mxu3 %v3882_v7  ;;  %v4441_v1 = vld [vmem:[%s8347_s2 + $0x5c8] sm:$0xf]  ;;  %v4314_v7 = vor.u32 %v5474_v62, %v4313_v61  ;;  %v3883_v61 = vld [vmem:[%s8347_s2 + $0x178] sm:$0xf0] }
  0x78   :  { %v4442_v11 = vor.u32 %v5506_v2, %v4441_v1  ;;  %v4378_v1 = vor.u32 %v5490_v56, %v4377_v55  ;;  %v4233_v2 = vld [vmem:[%s8347_s2 + $0x428] sm:$0xf]  ;;  %v5404_v55 = vld [vmem:[%s8347_s2 + $0x2ac] sm:$0xf]  ;;  %v4043_v56 = vld [vmem:[%s8347_s2 + $0x2b8] sm:$0xf0] }
  0x79   :  { %1468 = vmatpush.bf16.msra.mxu0 %v4010_v13  ;;  %1443 = vmatpush.bf16.msrb.mxu1 %v3738_v16  ;;  %v5470_v13 = vld [vmem:[%s8347_s2 + $0x4b4] sm:$0xf0] }
  0x7a   :  { %v5502_v16 = vld [vmem:[%s8347_s2 + $0x5b4] sm:$0xf0] }
  0x7b   :  { %1481 = vmatpush.bf16.msra.mxu2 %v4138_v14  ;;  %1456 = vmatpush.bf16.msrb.mxu3 %v3866_v20  ;;  %v3950_v14 = vor.u32 %v5380_v5, %v3947_v6  ;;  %v4298_v20 = vor.u32 %v5470_v13, %v4297_v12  ;;  %v4426_v23 = vor.u32 %v5502_v16, %v4425_v15  ;;  %v4361_v5 = vld [vmem:[%s8347_s2 + $0x528] sm:$0xf]  ;;  %v5486_v6 = vld [vmem:[%s8347_s2 + $0x534] sm:$0xf0]  ;;  %v5324_v12 = vld [vmem:[%s8347_s2 + $0x2c] sm:$0xf] }
  0x7c   :  { %v3723_v13 = vld [vmem:[%s8347_s2 + $0x38] sm:$0xf0]  ;;  %v4362_v15 = vor.u32 %v5486_v6, %v4361_v5  ;;  %v5450_v16 = vld [vmem:[%s8347_s2 + $0x414] sm:$0xf0]  ;;  %v5400_v5 = vld [vmem:[%s8347_s2 + $0x28c] sm:$0xf] }
  0x7d   :  { %1469 = vmatpush.bf16.msra.mxu0 %v3994_v25  ;;  %1444 = vmatpush.bf16.msrb.mxu1 %v3722_v29  ;;  %v5466_v25 = vld [vmem:[%s8347_s2 + $0x494] sm:$0xf0]  ;;  %v3790_v29 = vor.u32 %v5340_v21, %v3787_v22  ;;  %v4075_v21 = vld [vmem:[%s8347_s2 + $0x2f8] sm:$0xf0]  ;;  %v5444_v22 = vld [vmem:[%s8347_s2 + $0x3ec] sm:$0xf] }
  0x7e   :  { %v4282_v32 = vor.u32 %v5466_v25, %v4281_v24  ;;  %v4203_v24 = vld [vmem:[%s8347_s2 + $0x3f8] sm:$0xf0]  ;;  %v5356_v25 = vld [vmem:[%s8347_s2 + $0x12c] sm:$0xf] }
  0x7f   :  { %1482 = vmatpush.bf16.msra.mxu2 %v4122_v26  ;;  %1457 = vmatpush.bf16.msrb.mxu3 %v3850_v33  ;;  %v3934_v26 = vor.u32 %v5376_v18, %v3931_v19  ;;  %v5336_v33 = vld [vmem:[%s8347_s2 + $0x8c] sm:$0xf]  ;;  %v5482_v18 = vld [vmem:[%s8347_s2 + $0x514] sm:$0xf0]  ;;  %v3870_v19 = vor.u32 %v5360_v8, %v3867_v10  ;;  %v4027_v6 = vld [vmem:[%s8347_s2 + $0x298] sm:$0xf0] }
  0x80   :  { %v5432_v8 = vld [vmem:[%s8347_s2 + $0x38c] sm:$0xf]  ;;  %v4155_v10 = vld [vmem:[%s8347_s2 + $0x398] sm:$0xf0] }
  0x81   :  { %1470 = vmatpush.bf16.msra.mxu0 %v3978_v42  ;;  %1445 = vmatpush.bf16.msrb.mxu1 %v3706_v47  ;;  %v5494_v42 = vld [vmem:[%s8347_s2 + $0x574] sm:$0xf0]  ;;  %v5332_v47 = vld [vmem:[%s8347_s2 + $0x6c] sm:$0xf] }
  0x82   :  { %v4394_v50 = vor.u32 %v5494_v42, %v4393_v41  ;;  %v3758_v58 = vor.u32 %v5332_v47, %v3755_v49  ;;  %v4187_v42 = vld [vmem:[%s8347_s2 + $0x3d8] sm:$0xf0]  ;;  %v4062_v49 = vor.u32 %v5408_v37, %v4059_v38  ;;  %v5492_v37 = vld [vmem:[%s8347_s2 + $0x56c] sm:$0xf] }
  0x83   :  { %1483 = vmatpush.bf16.msra.mxu2 %v4106_v43  ;;  %1458 = vmatpush.bf16.msrb.mxu3 %v3834_v52  ;;  %v3774_v43 = vor.u32 %v5336_v33, %v3771_v35  ;;  %v5458_v52 = vld [vmem:[%s8347_s2 + $0x454] sm:$0xf0]  ;;  %v4331_v33 = vld [vmem:[%s8347_s2 + $0x4f8] sm:$0xf0]  ;;  %v4206_v35 = vor.u32 %v5444_v22, %v4203_v24 }
  0x84   :  { %1446 = vmatmul.bf16.vlgmr.msrb.gmra.mxu1 %v6070_v57  ;;  %v4250_v62 = vor.u32 %v5458_v52, %v4249_v51  ;;  %v4459_v47 = vld [vmem:[%s8347_s2 + $0x5f8] sm:$0xf0] }
  0x85   :  { %1490 = vmatpush.bf16.msra.mxu1 %v4330_v54  ;;  %1471 = vmatpush.bf16.msra.mxu0 %v3962_v63  ;;  %v3902_v54 = vor.u32 %v5368_v44, %v3899_v45  ;;  %v5328_v63 = vld [vmem:[%s8347_s2 + $0x4c] sm:$0xf]  ;;  %v3835_v44 = vld [vmem:[%s8347_s2 + $0x118] sm:$0xf0] }
  0x86   :  { %1459 = vmatmul.bf16.vlgmr.msrb.gmra.mxu3 %v6100_v9  ;;  %v4315_v51 = vld [vmem:[%s8347_s2 + $0x4d8] sm:$0xf0] }
  0x87   :  { %1503 = vmatpush.bf16.msra.mxu3 %v4458_v59  ;;  %1484 = vmatpush.bf16.msra.mxu2 %v4090_v0  ;;  %v5364_v59 = vld [vmem:[%s8347_s2 + $0x16c] sm:$0xf]  ;;  %v3739_v0 = vld [vmem:[%s8347_s2 + $0x58] sm:$0xf0] }
  0x88   :  { %1472 = vmatmul.bf16.vlgmr.msra.gmra.mxu0 %v6059_v53  ;;  %v4411_v24 = vld [vmem:[%s8347_s2 + $0x598] sm:$0xf0] }
  0x89   :  { %1523 = vmatpush.bf16.msrb.mxu0 %v4474_v4  ;;  %1491 = vmatpush.bf16.msra.mxu1 %v4314_v7  ;;  %v3886_v4 = vor.u32 %v5364_v59, %v3883_v61  ;;  %v3742_v7 = vor.u32 %v5328_v63, %v3739_v0  ;;  %v5436_v59 = vld [vmem:[%s8347_s2 + $0x3ac] sm:$0xf]  ;;  %v4171_v61 = vld [vmem:[%s8347_s2 + $0x3b8] sm:$0xf0] }
  0x8a   :  { %1485 = vmatmul.bf16.vlgmr.msra.gmra.mxu2 %v6072_v60  ;;  %v5504_v63 = vld [vmem:[%s8347_s2 + $0x5cc] sm:$0xf]  ;;  %v4443_v0 = vld [vmem:[%s8347_s2 + $0x5d8] sm:$0xf0] }
  0x8b   :  { %1529 = vmatpush.bf16.msrb.mxu2 %v3822_v3  ;;  %1504 = vmatpush.bf16.msra.mxu3 %v4442_v11  ;;  %v5454_v3 = vld [vmem:[%s8347_s2 + $0x434] sm:$0xf0]  ;;  %v4395_v38 = vld [vmem:[%s8347_s2 + $0x578] sm:$0xf0] }
  0x8c   :  { %v4234_v11 = vor.u32 %v5454_v3, %v4233_v2  ;;  %v5468_v2 = vld [vmem:[%s8347_s2 + $0x4ac] sm:$0xf]  ;;  %v4299_v3 = vld [vmem:[%s8347_s2 + $0x4b8] sm:$0xf0] }
  0x8d   :  { %1542 = vmatpush.bf16.msra.mxu0 %v3950_v14  ;;  %1492 = vmatpush.bf16.msra.mxu1 %v4298_v20  ;;  %v4217_v14 = vld [vmem:[%s8347_s2 + $0x408] sm:$0xf]  ;;  %v5412_v20 = vld [vmem:[%s8347_s2 + $0x2ec] sm:$0xf] }
  0x8e   :  { %v4218_v27 = vor.u32 %v5450_v16, %v4217_v14  ;;  %v4078_v31 = vor.u32 %v5412_v20, %v4075_v21  ;;  %v4030_v14 = vor.u32 %v5400_v5, %v4027_v6  ;;  %v4158_v16 = vor.u32 %v5432_v8, %v4155_v10  ;;  %v5428_v20 = vld [vmem:[%s8347_s2 + $0x36c] sm:$0xf] }
  0x8f   :  { %1530 = vmatpush.bf16.msrb.mxu2 %v3806_v17  ;;  %1505 = vmatpush.bf16.msra.mxu3 %v4426_v23  ;;  %v4345_v17 = vld [vmem:[%s8347_s2 + $0x508] sm:$0xf]  ;;  %v3726_v23 = vor.u32 %v5324_v12, %v3723_v13  ;;  %v5500_v12 = vld [vmem:[%s8347_s2 + $0x5ac] sm:$0xf]  ;;  %v4427_v13 = vld [vmem:[%s8347_s2 + $0x5b8] sm:$0xf0] }
  0x90   :  { %v4346_v30 = vor.u32 %v5482_v18, %v4345_v17  ;;  %v5396_v17 = vld [vmem:[%s8347_s2 + $0x26c] sm:$0xf]  ;;  %v4011_v18 = vld [vmem:[%s8347_s2 + $0x278] sm:$0xf0] }
  0x91   :  { %1543 = vmatpush.bf16.msra.mxu0 %v3934_v26  ;;  %1493 = vmatpush.bf16.msra.mxu1 %v4282_v32  ;;  %v3851_v26 = vld [vmem:[%s8347_s2 + $0x138] sm:$0xf0]  ;;  %v5476_v32 = vld [vmem:[%s8347_s2 + $0x4ec] sm:$0xf] }
  0x92   :  { %v4334_v45 = vor.u32 %v5476_v32, %v4331_v33  ;;  %v5424_v33 = vld [vmem:[%s8347_s2 + $0x34c] sm:$0xf] }
  0x93   :  { %1531 = vmatpush.bf16.msrb.mxu2 %v3790_v29  ;;  %1506 = vmatpush.bf16.msra.mxu3 %v4410_v36  ;;  %v3707_v29 = vld [vmem:[%s8347_s2 + $0x18] sm:$0xf0]  ;;  %v3854_v36 = vor.u32 %v5356_v25, %v3851_v26  ;;  %v4014_v25 = vor.u32 %v5396_v17, %v4011_v18  ;;  %v5460_v26 = vld [vmem:[%s8347_s2 + $0x46c] sm:$0xf] }
  0x94   :  { %v3710_v41 = vor.u32 %v5320_v28, %v3707_v29  ;;  %v5392_v29 = vld [vmem:[%s8347_s2 + $0x24c] sm:$0xf] }
  0x95   :  { %1544 = vmatpush.bf16.msra.mxu0 %v3918_v40  ;;  %1494 = vmatpush.bf16.msra.mxu1 %v4266_v46  ;;  %v5440_v40 = vld [vmem:[%s8347_s2 + $0x3cc] sm:$0xf] }
  0x96   :  { %v5508_v46 = vld [vmem:[%s8347_s2 + $0x5ec] sm:$0xf]  ;;  %v4190_v52 = vor.u32 %v5440_v40, %v4187_v42 }
  0x97   :  { %1532 = vmatpush.bf16.msrb.mxu2 %v3774_v43  ;;  %1507 = vmatpush.bf16.msra.mxu3 %v4394_v50  ;;  %v5352_v43 = vld [vmem:[%s8347_s2 + $0x10c] sm:$0xf] }
  0x98   :  { %4481 = vmatmul.msk.bf16.vlgmr.msrb.gmra.mxu0 %vm1252_vm0, %v6179_v48  ;;  %v5472_v50 = vld [vmem:[%s8347_s2 + $0x4cc] sm:$0xf] }
  0x99   :  { %1545 = vmatpush.bf16.msra.mxu0 %v3902_v54  ;;  %1495 = vmatpush.bf16.msra.mxu1 %v4250_v62  ;;  %v3838_v54 = vor.u32 %v5352_v43, %v3835_v44  ;;  %v4318_v62 = vor.u32 %v5472_v50, %v4315_v51  ;;  %v5456_v42 = vld [vmem:[%s8347_s2 + $0x44c] sm:$0xf]  ;;  %v4251_v43 = vld [vmem:[%s8347_s2 + $0x458] sm:$0xf0] }
  0x9a   :  { %v5420_v50 = vld [vmem:[%s8347_s2 + $0x32c] sm:$0xf]  ;;  %v4107_v51 = vld [vmem:[%s8347_s2 + $0x338] sm:$0xf0] }
  0x9b   :  { %1533 = vmatpush.bf16.msrb.mxu2 %v3758_v58  ;;  %1508 = vmatpush.bf16.msra.mxu3 %v4378_v1  ;;  %v4462_v58 = vor.u32 %v5508_v46, %v4459_v47  ;;  %v4046_v1 = vor.u32 %v5404_v55, %v4043_v56  ;;  %v5388_v46 = vld [vmem:[%s8347_s2 + $0x22c] sm:$0xf]  ;;  %v3979_v47 = vld [vmem:[%s8347_s2 + $0x238] sm:$0xf0] }
  0x9c   :  { %v5488_v55 = vld [vmem:[%s8347_s2 + $0x54c] sm:$0xf]  ;;  %v4379_v56 = vld [vmem:[%s8347_s2 + $0x558] sm:$0xf0] }
  0x9d   :  { %1546 = vmatpush.bf16.msra.mxu0 %v3886_v4  ;;  %1496 = vmatpush.bf16.msra.mxu1 %v4234_v11  ;;  %v4174_v4 = vor.u32 %v5436_v59, %v4171_v61  ;;  %v4302_v11 = vor.u32 %v5468_v2, %v4299_v3  ;;  %v3982_v59 = vor.u32 %v5388_v46, %v3979_v47  ;;  %v5452_v61 = vld [vmem:[%s8347_s2 + $0x42c] sm:$0xf] }
  0x9e   :  { %v5416_v2 = vld [vmem:[%s8347_s2 + $0x30c] sm:$0xf]  ;;  %v4382_v3 = vor.u32 %v5488_v55, %v4379_v56 }
  0x9f   :  { %1534 = vmatpush.bf16.msrb.mxu2 %v3742_v7  ;;  %1509 = vmatpush.bf16.msra.mxu3 %v4362_v15  ;;  %v4446_v7 = vor.u32 %v5504_v63, %v4443_v0  ;;  %v5464_v15 = vld [vmem:[%s8347_s2 + $0x48c] sm:$0xf]  ;;  %v4110_v63 = vor.u32 %v5420_v50, %v4107_v51  ;;  %v5515_v50 = vld [vmem:[%s8350_s4] sm:$0xff] }
  0xa0   :  { %v5384_v0 = vld [vmem:[%s8347_s2 + $0x20c] sm:$0xf] }
  0xa1   :  { %1547 = vmatpush.bf16.msra.mxu0 %v3870_v19  ;;  %1497 = vmatpush.bf16.msra.mxu1 %v4218_v27  ;;  %v4430_v19 = vor.u32 %v5500_v12, %v4427_v13  ;;  %v4267_v27 = vld [vmem:[%s8347_s2 + $0x478] sm:$0xf0]  ;;  %v5512_v6 = vld [vmem:[%s8347_s2 + $0x60c] sm:$0xf] }
  0xa2   :  { %v5484_v10 = vld [vmem:[%s8347_s2 + $0x52c] sm:$0xf] }
  0xa3   :  { %1535 = vmatpush.bf16.msrb.mxu2 %v3726_v23  ;;  %1510 = vmatpush.bf16.msra.mxu3 %v4346_v30  ;;  %v5496_v23 = vld [vmem:[%s8347_s2 + $0x58c] sm:$0xf]  ;;  %v3995_v30 = vld [vmem:[%s8347_s2 + $0x258] sm:$0xf0] }
  0xa4   :  { %1498 = vmatmul.bf16.vlgmr.msra.gmra.mxu1 %v6267_v34  ;;  %v5516_v47 = vld [vmem:[%s8350_s4 + $0x8] sm:$0xff] }
  0xa5   :  { %1555 = vmatpush.bf16.msrb.mxu1 %v4078_v31  ;;  %1548 = vmatpush.bf16.msra.mxu0 %v3854_v36  ;;  %v6954_v21 = vpop.f32.mrf.mxu0  ;;  %v4414_v31 = vor.u32 %v5496_v23, %v4411_v24  ;;  %v6974_v32 = vpop.f32.mrf.mxu1  ;;  %v4270_v36 = vor.u32 %v5460_v26, %v4267_v27  ;;  %v4347_v23 = vld [vmem:[%s8347_s2 + $0x518] sm:$0xf0]  ;;  %v5521_v26 = vld [vmem:[%s8350_s4 + $0x30] sm:$0xff] }
  0xa6   :  { %1511 = vmatmul.bf16.vlgmr.msra.gmra.mxu3 %v6278_v39  ;;  %v5530_v24 = vld [vmem:[%s8350_s4 + $0x78] sm:$0xff] }
  0xa7   :  { %1568 = vmatpush.bf16.msrb.mxu3 %v4206_v35  ;;  %1536 = vmatpush.bf16.msrb.mxu2 %v3710_v41  ;;  %v4123_v35 = vld [vmem:[%s8347_s2 + $0x358] sm:$0xf0]  ;;  %v3998_v41 = vor.u32 %v5392_v29, %v3995_v30  ;;  %v5520_v30 = vld [vmem:[%s8350_s4 + $0x28] sm:$0xff] }
  0xa8   :  { %v6988_v40 = vpop.f32.mrf.mxu2  ;;  %v4126_v44 = vor.u32 %v5424_v33, %v4123_v35  ;;  %v5527_v35 = vld [vmem:[%s8350_s4 + $0x60] sm:$0xff] }
  0xa9   :  { %1556 = vmatpush.bf16.msrb.mxu1 %v4062_v49  ;;  %1549 = vmatpush.bf16.msra.mxu0 %v3838_v54  ;;  %v4398_v49 = vor.u32 %v5492_v37, %v4395_v38  ;;  %v4254_v54 = vor.u32 %v5456_v42, %v4251_v43  ;;  %v5526_v38 = vld [vmem:[%s8350_s4 + $0x58] sm:$0xff] }
  0xaa   :  { %1537 = vmatmul.bf16.vlgmr.msrb.gmra.mxu2 %v6070_v57  ;;  %v4283_v57 = vld [vmem:[%s8347_s2 + $0x498] sm:$0xf0] }
  0xab   :  { %1581 = vmatpush.bf16.msra.mxu2 %v4334_v45  ;;  %1569 = vmatpush.bf16.msrb.mxu3 %v4190_v52  ;;  %v4286_v22 = vor.u32 %v5464_v15, %v4283_v57  ;;  %v6996_v45 = vpop.f32.mrf.mxu3  ;;  %v4219_v15 = vld [vmem:[%s8347_s2 + $0x418] sm:$0xf0] }
  0xac   :  { %1550 = vmatmul.bf16.vlgmr.msra.gmra.mxu0 %v6100_v9  ;;  %v4139_v9 = vld [vmem:[%s8347_s2 + $0x378] sm:$0xf0] }
  0xad   :  { %1594 = vmatpush.bf16.msrb.mxu0 %v4462_v58  ;;  %1557 = vmatpush.bf16.msrb.mxu1 %v4046_v1  ;;  %v4142_v28 = vor.u32 %v5428_v20, %v4139_v9  ;;  %v1267_v52 = vpop.f32.mrf.mxu0  ;;  %v7019_v58 = vld [vmem:[%s8349_s3] sm:$0xf]  ;;  %v3963_v1 = vld [vmem:[%s8347_s2 + $0x218] sm:$0xf0]  ;;  %v1280_v5 = vpop.f32.mrf.mxu1 }
  0xae   :  { %v3966_v13 = vor.u32 %v5384_v0, %v3963_v1  ;;  %v240_v57 = vperm.slane %v7019_v58, 0  ;;  %v241_v56 = vperm.slane %v7019_v58, 1  ;;  %v5538_v5 = vld [vmem:[%s8350_s4 + $0xb8] sm:$0xff] }
  0xaf   :  { %1582 = vmatpush.bf16.msra.mxu2 %v4318_v62  ;;  %1570 = vmatpush.bf16.msrb.mxu3 %v4174_v4  ;;  %v4235_v62 = vld [vmem:[%s8347_s2 + $0x438] sm:$0xf0] }
  0xb0   :  { %v4091_v4 = vld [vmem:[%s8347_s2 + $0x318] sm:$0xf0]  ;;  %v4238_v8 = vor.u32 %v5452_v61, %v4235_v62  ;;  %v1293_v12 = vpop.f32.mrf.mxu2 }
  0xb1   :  { %1595 = vmatpush.bf16.msrb.mxu0 %v4446_v7  ;;  %1558 = vmatpush.bf16.msrb.mxu1 %v4030_v14  ;;  %v4475_v7 = vld [vmem:[%s8347_s2 + $0x618] sm:$0xf0]  ;;  %v5448_v14 = vld [vmem:[%s8347_s2 + $0x40c] sm:$0xf] }
  0xb2   :  { %v4478_v17 = vor.u32 %v5512_v6, %v4475_v7  ;;  %v4222_v9 = vor.u32 %v5448_v14, %v4219_v15  ;;  %v5536_v12 = vld [vmem:[%s8350_s4 + $0xa8] sm:$0xff] }
  0xb3   :  { %1583 = vmatpush.bf16.msra.mxu2 %v4302_v11  ;;  %1571 = vmatpush.bf16.msrb.mxu3 %v4158_v16  ;;  %v4363_v11 = vld [vmem:[%s8347_s2 + $0x538] sm:$0xf0]  ;;  %v4094_v16 = vor.u32 %v5416_v2, %v4091_v4  ;;  %v1306_v18 = vpop.f32.mrf.mxu3 }
  0xb4   :  { %v4366_v20 = vor.u32 %v5484_v10, %v4363_v11 }
  0xb5   :  { %1596 = vmatpush.bf16.msrb.mxu0 %v4430_v19  ;;  %1559 = vmatpush.bf16.msrb.mxu1 %v4014_v25  ;;  %v5522_v19 = vld [vmem:[%s8350_s4 + $0x38] sm:$0xff]  ;;  %v1266_v25 = vadd.f32 %v6954_v21, %v240_v57  ;;  %v5529_v21 = vld [vmem:[%s8350_s4 + $0x70] sm:$0xff] }
  0xb7   :  { %1584 = vmatpush.bf16.msra.mxu2 %v4286_v22  ;;  %1572 = vmatpush.bf16.msrb.mxu3 %v4142_v28  ;;  %v5480_v22 = vld [vmem:[%s8347_s2 + $0x50c] sm:$0xf]  ;;  %v1279_v29 = vadd.f32 %v6974_v32, %v1266_v25 }
  0xb8   :  { %v4350_v27 = vor.u32 %v5480_v22, %v4347_v23 }
  0xb9   :  { %1597 = vmatpush.bf16.msrb.mxu0 %v4414_v31  ;;  %1560 = vmatpush.bf16.msrb.mxu1 %v3998_v41  ;;  %v1343_v28 = vpop.f32.mrf.mxu2  ;;  %v5519_v31 = vld [vmem:[%s8350_s4 + $0x20] sm:$0xff] }
  0xbb   :  { %1585 = vmatpush.bf16.msra.mxu2 %v4270_v36  ;;  %1573 = vmatpush.bf16.msrb.mxu3 %v4126_v44 }
  0xbd   :  { %1598 = vmatpush.bf16.msrb.mxu0 %v4398_v49  ;;  %1561 = vmatpush.bf16.msrb.mxu1 %v3982_v59 }
  0xbf   :  { %1586 = vmatpush.bf16.msra.mxu2 %v4254_v54  ;;  %1574 = vmatpush.bf16.msrb.mxu3 %v4110_v63  ;;  %v5523_v54 = vld [vmem:[%s8350_s4 + $0x40] sm:$0xff] }
  0xc1   :  { %1599 = vmatpush.bf16.msrb.mxu0 %v4382_v3  ;;  %1562 = vmatpush.bf16.msrb.mxu1 %v3966_v13  ;;  %v1330_v32 = vpop.f32.mrf.mxu1  ;;  %v1345_v33 = vpop.f32.mrf.mxu2 }
  0xc3   :  { %1587 = vmatpush.bf16.msra.mxu2 %v4238_v8  ;;  %1575 = vmatpush.bf16.msrb.mxu3 %v4094_v16  ;;  %v5537_v8 = vld [vmem:[%s8350_s4 + $0xb0] sm:$0xff]  ;;  %v5535_v16 = vld [vmem:[%s8350_s4 + $0xa0] sm:$0xff] }
  0xc4   :  { %1563 = vmatmul.bf16.vlgmr.msrb.gmra.mxu1 %v6059_v53  ;;  %v5528_v53 = vld [vmem:[%s8350_s4 + $0x68] sm:$0xff] }
  0xc5   :  { %1614 = vmatpush.bf16.msra.mxu1 %v4478_v17  ;;  %1600 = vmatpush.bf16.msrb.mxu0 %v4366_v20  ;;  %v5534_v20 = vld [vmem:[%s8350_s4 + $0x98] sm:$0xff] }
  0xc6   :  { %1576 = vmatmul.bf16.vlgmr.msrb.gmra.mxu3 %v6072_v60  ;;  %v1292_v60 = vadd.f32 %v6988_v40, %v1279_v29  ;;  %v5517_v40 = vld [vmem:[%s8350_s4 + $0x10] sm:$0xff] }
  0xc7   :  { %1835 = vmatpush.bf16.msra.mxu3 %v5522_v19  ;;  %1588 = vmatpush.bf16.msra.mxu2 %v4222_v9  ;;  %v5533_v9 = vld [vmem:[%s8350_s4 + $0x90] sm:$0xff] }
  0xc8   :  { %v1305_v36 = vadd.f32 %v6996_v45, %v1292_v60  ;;  %v5525_v45 = vld [vmem:[%s8350_s4 + $0x50] sm:$0xff] }
  0xc9   :  { %1848 = vmatpush.bf16.msrb.mxu1 %v5530_v24  ;;  %1601 = vmatpush.bf16.msrb.mxu0 %v4350_v27  ;;  %v1356_v43 = vpop.f32.mrf.mxu3  ;;  %v1332_v44 = vpop.f32.mrf.mxu1  ;;  %v5532_v24 = vld [vmem:[%s8350_s4 + $0x88] sm:$0xff] }
  0xca   :  { %1589 = vmatmul.bf16.vlgmr.msra.gmra.mxu2 %v6267_v34  ;;  %v1317_v34 = vpop.f32.mrf.mxu0  ;;  %v1357_v61 = vadd.f32 %v1356_v43, %v241_v56 }
  0xcb   :  { %1836 = vmatpush.bf16.msra.mxu3 %v5521_v26  ;;  %v1318_v37 = vadd.f32 %v1317_v34, %v1305_v36  ;;  %1861 = vmatpush.bf16.msrb.mxu2 %v5538_v5  ;;  %v5531_v26 = vld [vmem:[%s8350_s4 + $0x80] sm:$0xff] }
  0xcc   :  { %1602 = vmatmul.bf16.vlgmr.msrb.gmra.mxu0 %v6278_v39  ;;  %v5518_v39 = vld [vmem:[%s8350_s4 + $0x18] sm:$0xff] }
  0xcd   :  { %1849 = vmatpush.bf16.msrb.mxu1 %v5529_v21  ;;  %v1331_v41 = vadd.f32 %v1330_v32, %v1318_v37  ;;  %v1369_v46 = vpop.f32.mrf.mxu2 }
  0xce   :  { %v1370_v62 = vadd.f32 %v1369_v46, %v1357_v61 }
  0xcf   :  { %1837 = vmatpush.bf16.msra.mxu3 %v5520_v30  ;;  %v1344_v49 = vadd.f32 %v1343_v28, %v1331_v41  ;;  %1862 = vmatpush.bf16.msrb.mxu2 %v5537_v8  ;;  %v242_v30 = vperm.slane %v7019_v58, 2 }
  0xd1   :  { %1850 = vmatpush.bf16.msrb.mxu1 %v5528_v53  ;;  %v1620_v51 = vmax.f32 %v1344_v49, 0.0  ;;  %v1358_v52 = vpop.f32.mrf.mxu3  ;;  %v5539_v49 = vld [vmem:[%s8350_s4 + $0xc0] sm:$0xff] }
  0xd2   :  { %v1319_v42 = vpop.f32.mrf.mxu0  ;;  %1881 = vmatpush.bf16.msra.mxu0 %v5539_v49 }
  0xd3   :  { %1838 = vmatpush.bf16.msra.mxu3 %v5519_v31  ;;  %v1624_v59 = vpack.c.bf16 %v1620_v51, %v1620_v51  ;;  %1863 = vmatpush.bf16.msrb.mxu2 %v5536_v12  ;;  %v5722_v12 = vld [vmem:[%s8351_s5] ss:$0 sm:$0xff]  ;;  %s5760_s5 = smov 88  }
  0xd4   :  { %4482 = vmatmul.msk.bf16.vlgmr.msra.gmra.mxu1 %vm1252_vm0, %v6179_v48  ;;  %v5524_v48 = vld [vmem:[%s8350_s4 + $0x48] sm:$0xff] }
  0xd5   :  { %1851 = vmatpush.bf16.msrb.mxu1 %v5527_v35  ;;  %v1371_v55 = vpop.f32.mrf.mxu2 }
  0xd7   :  { %1839 = vmatpush.bf16.msra.mxu3 %v5518_v39  ;;  %1864 = vmatpush.bf16.msrb.mxu2 %v5535_v16 }
  0xd9   :  { %1852 = vmatpush.bf16.msrb.mxu1 %v5526_v38 }
  0xdb   :  { %1840 = vmatpush.bf16.msra.mxu3 %v5517_v40  ;;  %1865 = vmatpush.bf16.msrb.mxu2 %v5534_v20 }
  0xdd   :  { %1853 = vmatpush.bf16.msrb.mxu1 %v5525_v45 }
  0xdf   :  { %1841 = vmatpush.bf16.msra.mxu3 %v5516_v47  ;;  %1866 = vmatpush.bf16.msrb.mxu2 %v5533_v9 }
  0xe1   :  { %1854 = vmatpush.bf16.msrb.mxu1 %v5524_v48  ;;  %v1382_v63 = vpop.f32.mrf.mxu0  ;;  %v1395_v1 = vpop.f32.mrf.mxu1 }
  0xe2   :  { %v1383_v0 = vadd.f32 %v1382_v63, %v1370_v62 }
  0xe3   :  { %1842 = vmatpush.bf16.msra.mxu3 %v5515_v50  ;;  %1867 = vmatpush.bf16.msrb.mxu2 %v5532_v24  ;;  %v243_v50 = vperm.slane %v7019_v58, 3 }
  0xe4   :  { %v1396_v2 = vadd.f32 %v1395_v1, %v1383_v0 }
  0xe5   :  { %1855 = vmatpush.bf16.msrb.mxu1 %v5523_v54 }
  0xe6   :  { %1843 = vmatmul.bf16.vlgmr.msra.gmra.mxu3 %v1624_v59 }
  0xe7   :  { %1868 = vmatpush.bf16.msrb.mxu2 %v5531_v26 }
  0xe9   :  { %v1384_v3 = vpop.f32.mrf.mxu0  ;;  %v1408_v4 = vpop.f32.mrf.mxu3 }
  0xea   :  { %v1409_v6 = vadd.f32 %v1408_v4, %v1396_v2  ;;  %v1397_v10 = vpop.f32.mrf.mxu1 }
  0xed   :  { %v1421_v7 = vpop.f32.mrf.mxu2 }
  0xee   :  { %v1422_v11 = vadd.f32 %v1421_v7, %v1409_v6 }
  0xf1   :  { %v1434_v13 = vpop.f32.mrf.mxu0  ;;  %v1410_v14 = vpop.f32.mrf.mxu3 }
  0xf2   :  { %v1435_v15 = vadd.f32 %v1434_v13, %v1422_v11 }
  0xf4   :  { %v1621_v17 = vmax.f32 %v1435_v15, 0.0 }
  0xf5   :  { %v1423_v57 = vpop.f32.mrf.mxu2 }
  0xf6   :  { %v1625_v18 = vpack.c.bf16 %v1621_v17, %v1621_v17 }
  0xf8   :  { %1856 = vmatmul.bf16.vlgmr.msrb.gmra.mxu1 %v1625_v18 }
  0xf9   :  { %v1436_v19 = vpop.f32.mrf.mxu0 }
 0x101   :  { %v1447_v23 = vpop.f32.mrf.mxu1 }
 0x102   :  { %v1448_v31 = vadd.f32 %v1447_v23, %v242_v30 }
 0x105   :  { %v1473_v22 = vpop.f32.mrf.mxu0 }
 0x109   :  { %v1460_v25 = vpop.f32.mrf.mxu3  ;;  %v1449_v21 = vpop.f32.mrf.mxu1 }
 0x10a   :  { %v1461_v34 = vadd.f32 %v1460_v25, %v1448_v31  ;;  %v1894_v31 = vld [vmem:[%s8352_s1] sm:$0xff] }
 0x10c   :  { %v1474_v33 = vadd.f32 %v1473_v22, %v1461_v34 }
 0x10d   :  { %v1475_v27 = vpop.f32.mrf.mxu0  ;;  %v1486_v28 = vpop.f32.mrf.mxu2 }
 0x10e   :  { %v1487_v36 = vadd.f32 %v1486_v28, %v1474_v33 }
 0x111   :  { %v1462_v29 = vpop.f32.mrf.mxu3 }
 0x115   :  { %v1525_v53 = vpop.f32.mrf.mxu0  ;;  %v1488_v60 = vpop.f32.mrf.mxu2 }
 0x11d   :  { %v1527_v32 = vpop.f32.mrf.mxu0 }
 0x121   :  { %v1499_v35 = vpop.f32.mrf.mxu1 }
 0x122   :  { %v1500_v39 = vadd.f32 %v1499_v35, %v1487_v36 }
 0x129   :  { %v1551_v37 = vpop.f32.mrf.mxu0  ;;  %v1512_v38 = vpop.f32.mrf.mxu3 }
 0x12a   :  { %v1513_v40 = vadd.f32 %v1512_v38, %v1500_v39  ;;  %v1501_v41 = vpop.f32.mrf.mxu1  ;;  %v1947_v38 = vld [vmem:[%s8353_s6 + $0x28] sm:$0x33] }
 0x12c   :  { %v1526_v42 = vadd.f32 %v1525_v53, %v1513_v40 }
 0x12d   :  { %v1538_v43 = vpop.f32.mrf.mxu2 }
 0x12e   :  { %v1622_v44 = vmax.f32 %v1526_v42, 0.0  ;;  %v1539_v51 = vadd.f32 %v1538_v43, %v243_v50  ;;  %v1974_v42 = vunpack.c.l.b16 %v1947_v38  ;;  %v1975_v43 = vunpack.c.h.b16 %v1947_v38  ;;  %v5568_v38 = vld [vmem:[%s8354_s8 + $0xc0] sm:$0xf0] }
 0x130   :  { %v1626_v45 = vpack.c.bf16 %v1622_v44, %v1622_v44  ;;  %v1552_v54 = vadd.f32 %v1551_v37, %v1539_v51  ;;  %v1946_v37 = vld [vmem:[%s8353_s6 + $0x20] sm:$0x33] }
 0x131   :  { %v1553_v46 = vpop.f32.mrf.mxu0  ;;  %v1514_v47 = vpop.f32.mrf.mxu3  ;;  %v1972_v40 = vunpack.c.l.b16 %v1946_v37  ;;  %v1973_v41 = vunpack.c.h.b16 %v1946_v37  ;;  %v4691_v37 = vld [vmem:[%s8354_s8 + $0xa8] sm:$0xf] }
 0x132   :  { %1869 = vmatmul.bf16.vlgmr.msrb.gmra.mxu2 %v1626_v45  ;;  %v1982_v46 = vpack.c.b16 %v1974_v42, %v1974_v42  ;;  %v1983_v47 = vpack.c.b16 %v1975_v43, %v1975_v43  ;;  %v4915_v43 = vld [vmem:[%s8354_s8 + $0x268] sm:$0xf] }
 0x133   :  { %v1980_v44 = vpack.c.b16 %v1972_v40, %v1972_v40  ;;  %v1981_v45 = vpack.c.b16 %v1973_v41, %v1973_v41 }
 0x134   :  { %v1999_v50 = vsel %vm1991_vm1, %v1982_v46, 0  ;;  %v2002_v51 = vsel %vm1991_vm1, %v1983_v47, 0 }
 0x135   :  { %v1540_v48 = vpop.f32.mrf.mxu2  ;;  %v1993_v49 = vsel %vm1991_vm1, %v1980_v44, 0  ;;  %2036 = vmatpush.bf16.msra.mxu1 %v1999_v50  ;;  %2049 = vmatpush.bf16.msra.mxu2 %v2002_v51  ;;  %v5624_v44 = vld [vmem:[%s8354_s8 + $0x280] sm:$0xf0]  ;;  %v5167_v50 = vld [vmem:[%s8354_s8 + $0x460] sm:$0xf] }
 0x136   :  { %v1996_v48 = vsel %vm1991_vm1, %v1981_v45, 0  ;;  %2010 = vmatpush.bf16.msrb.mxu3 %v1993_v49  ;;  %v5687_v51 = vld [vmem:[%s8354_s8 + $0x478] sm:$0xf0] }
 0x137   :  { %2023 = vmatpush.bf16.msrb.mxu0 %v1996_v48  ;;  %v4692_v48 = vor.u32 %v5568_v38, %v4691_v37 }
 0x141   :  { %v1564_v52 = vpop.f32.mrf.mxu1 }
 0x142   :  { %v1565_v55 = vadd.f32 %v1564_v52, %v1552_v54  ;;  %v4587_v52 = vld [vmem:[%s8353_s6] sm:$0xf]  ;;  %v5542_v54 = vld [vmem:[%s8353_s6 + $0xc] sm:$0xf0] }
 0x149   :  { %v1577_v56 = vpop.f32.mrf.mxu3  ;;  %v1603_v59 = vpop.f32.mrf.mxu0 }
 0x14a   :  { %v1578_v61 = vadd.f32 %v1577_v56, %v1565_v55  ;;  %v1566_v62 = vpop.f32.mrf.mxu1  ;;  %v5540_v55 = vld [vmem:[%s8353_s6 + $0x4] sm:$0xf]  ;;  %v4588_v56 = vor.u32 %v5542_v54, %v4587_v52  ;;  %v4663_v54 = vld [vmem:[%s8354_s8 + $0x70] sm:$0xf] }
 0x14b   :  { %v5543_v62 = vld [vmem:[%s8353_s6 + $0x14] sm:$0xf0] }
 0x14c   :  { %2011 = vmatpush.bf16.msrb.mxu3 %v4588_v56 }
 0x14d   :  { %v1590_v63 = vpop.f32.mrf.mxu2 }
 0x14e   :  { %v1591_v0 = vadd.f32 %v1590_v63, %v1578_v61  ;;  %v4595_v61 = vld [vmem:[%s8353_s6 + $0x8] sm:$0xf] }
 0x150   :  { %v1604_v3 = vadd.f32 %v1603_v59, %v1591_v0  ;;  %v4589_v59 = vld [vmem:[%s8353_s6 + $0x10] sm:$0xf0]  ;;  %v4596_v0 = vor.u32 %v5543_v62, %v4595_v61  ;;  %v5617_v61 = vld [vmem:[%s8354_s8 + $0x248] sm:$0xf0] }
 0x151   :  { %v1579_v1 = vpop.f32.mrf.mxu3  ;;  %v1605_v2 = vpop.f32.mrf.mxu0  ;;  %v4592_v63 = vor.u32 %v5540_v55, %v4589_v59  ;;  %v4916_v55 = vor.u32 %v5624_v44, %v4915_v43  ;;  %v4887_v59 = vld [vmem:[%s8354_s8 + $0x230] sm:$0xf]  ;;  %v5579_v44 = vld [vmem:[%s8354_s8 + $0x11c] sm:$0xf] }
 0x152   :  { %v1616_v4 = vpop.f32.mrf.mxu1  ;;  %v5541_v1 = vld [vmem:[%s8353_s6 + $0xc] sm:$0xf]  ;;  %v4597_v2 = vld [vmem:[%s8353_s6 + $0x18] sm:$0xf0]  ;;  %2037 = vmatpush.bf16.msra.mxu1 %v4596_v0 }
 0x153   :  { %v1617_v5 = vadd.f32 %v1616_v4, %v1604_v3  ;;  %v4600_v4 = vor.u32 %v5541_v1, %v4597_v2  ;;  %2024 = vmatpush.bf16.msrb.mxu0 %v4592_v63  ;;  %v5168_v63 = vor.u32 %v5687_v51, %v5167_v50  ;;  %v5139_v1 = vld [vmem:[%s8354_s8 + $0x428] sm:$0xf]  ;;  %v5680_v2 = vld [vmem:[%s8354_s8 + $0x440] sm:$0xf0]  ;;  %v5197_v50 = vld [vmem:[%s8354_s8 + $0x4b4] sm:$0xf0] }
 0x155   :  { %v1592_v6 = vpop.f32.mrf.mxu2  ;;  %v1623_v7 = vmax.f32 %v1617_v5, 0.0  ;;  %2050 = vmatpush.bf16.msra.mxu2 %v4600_v4  ;;  %v4803_v5 = vld [vmem:[%s8354_s8 + $0x188] sm:$0xf]  ;;  %v4635_v4 = vld [vmem:[%s8354_s8 + $0x38] sm:$0xf] }
 0x156   :  { %v5596_v6 = vld [vmem:[%s8354_s8 + $0x1a0] sm:$0xf0] }
 0x157   :  { %v1627_v8 = vpack.c.bf16 %v1623_v7, %v1623_v7  ;;  %v4775_v7 = vld [vmem:[%s8354_s8 + $0x150] sm:$0xf] }
 0x159   :  { %4583 = vmatmul.msk.bf16.vlgmr.msra.gmra.mxu0 %vm1252_vm0, %v1627_v8 }
 0x15a   :  { %v1618_v58 = vpop.f32.mrf.mxu1 }
 0x15b   :  { %v4804_v58 = vor.u32 %v5596_v6, %v4803_v5  ;;  %v5554_v5 = vld [vmem:[%s8354_s8 + $0x50] sm:$0xf0]  ;;  %v4888_v6 = vor.u32 %v5617_v61, %v4887_v59 }
 0x15d   :  { %3183 = vmatpush.bf16.msra.mxu3 %v4804_v58  ;;  %v5610_v58 = vld [vmem:[%s8354_s8 + $0x210] sm:$0xf0] }
 0x169   :  { %v1844_v10 = vpop.f32.mrf.mxu3 }
 0x16a   :  { %v1845_v13 = vadd.f32 %v5722_v12, %v1844_v10  ;;  %v5589_v10 = vld [vmem:[%s8354_s8 + $0x168] sm:$0xf0]  ;;  %v5652_v12 = vld [vmem:[%s8354_s8 + $0x360] sm:$0xf0] }
 0x171   :  { %v1846_v11 = vpop.f32.mrf.mxu3 }
 0x172   :  { %v5027_v11 = vld [vmem:[%s8354_s8 + $0x348] sm:$0xf] }
 0x175   :  { %v1857_v14 = vpop.f32.mrf.mxu1 }
 0x176   :  { %v1858_v15 = vadd.f32 %v1857_v14, %v1845_v13  ;;  %v5028_v13 = vor.u32 %v5652_v12, %v5027_v11  ;;  %v4999_v14 = vld [vmem:[%s8354_s8 + $0x310] sm:$0xf]  ;;  %v5140_v11 = vor.u32 %v5680_v2, %v5139_v1  ;;  %v5621_v1 = vld [vmem:[%s8354_s8 + $0x26c] sm:$0xf] }
 0x178   :  { %3196 = vmatpush.bf16.msra.mxu0 %v5028_v13  ;;  %v4636_v13 = vor.u32 %v5554_v5, %v4635_v4  ;;  %v5055_v5 = vld [vmem:[%s8354_s8 + $0x380] sm:$0xf] }
 0x17d   :  { %v1859_v57 = vpop.f32.mrf.mxu1 }
 0x17e   :  { %v5645_v57 = vld [vmem:[%s8354_s8 + $0x328] sm:$0xf0] }
 0x1b5   :  { %v1870_v16 = vpop.f32.mrf.mxu2 }
 0x1b6   :  { %v1871_v18 = vadd.f32 %v1870_v16, %v1858_v15  ;;  %v4776_v15 = vor.u32 %v5589_v10, %v4775_v7  ;;  %v4747_v16 = vld [vmem:[%s8354_s8 + $0x118] sm:$0xf] }
 0x1b8   :  { %3184 = vmatpush.bf16.msra.mxu3 %v4776_v15  ;;  %v5673_v15 = vld [vmem:[%s8354_s8 + $0x408] sm:$0xf0] }
 0x1bd   :  { %v1872_v17 = vpop.f32.mrf.mxu2 }
 0x1be   :  { %v5582_v17 = vld [vmem:[%s8354_s8 + $0x130] sm:$0xf0] }
 0x1d6   :  { %v1883_v19 = vpop.f32.mrf.mxu0 }
 0x1d7   :  { %v1884_v20 = vadd.f32 %v1883_v19, %v1871_v18  ;;  %v5000_v18 = vor.u32 %v5645_v57, %v4999_v14  ;;  %v5111_v14 = vld [vmem:[%s8354_s8 + $0x3f0] sm:$0xf]  ;;  %v4607_v57 = vld [vmem:[%s8354_s8] sm:$0xf] }
 0x1d9   :  { %v1887_v9 = vmax.f32 %v1884_v20, 1e-05  ;;  %v1892_v22 = vmax.f32 %v1884_v20, -3.0  ;;  %v1890_v27 = vmax.f32 %v1884_v20, 1.00001  ;;  %3197 = vmatpush.bf16.msra.mxu0 %v5000_v18 }
 0x1da   :  { %v4971_v20 = vld [vmem:[%s8354_s8 + $0x2d8] sm:$0xf] }
 0x1db   :  { %v1889_v23 = vmin.f32 %v1887_v9, 1000.0  ;;  %v1893_v24 = vmin.f32 %v1892_v22, -1e-05  ;;  %v1891_v28 = vmin.f32 %v1890_v27, 3.0  ;;  %v1888_v30 = vmin.f32 %v1887_v9, 100.0 }
 0x1dc   :  { %v5638_v9 = vld [vmem:[%s8354_s8 + $0x2f0] sm:$0xf0]  ;;  %v5251_v22 = vld [vmem:[%s8354_s8 + $0x508] sm:$0xf] }
 0x1dd   :  { %5723 = vrcp.f32 %v1889_v23  ;;  %1924 = vrot.lane.b32.xlu0 %v1893_v24, %s5759_s28  ;;  %v4748_v23 = vor.u32 %v5582_v17, %v4747_v16  ;;  %v4972_v27 = vor.u32 %v5638_v9, %v4971_v20  ;;  %v5547_v16 = vld [vmem:[%s8354_s8 + $0x18] sm:$0xf0]  ;;  %v4805_v20 = vld [vmem:[%s8354_s8 + $0x1a4] sm:$0xf0]  ;;  %v5649_v9 = vld [vmem:[%s8354_s8 + $0x34c] sm:$0xf] }
 0x1de   :  { %v1885_v25 = vpop.f32.mrf.mxu0  ;;  %5725 = vlog2.f32 %v1888_v30  ;;  %v4943_v30 = vld [vmem:[%s8354_s8 + $0x2a0] sm:$0xf] }
 0x1df   :  { %v4719_v25 = vld [vmem:[%s8354_s8 + $0xe0] sm:$0xf]  ;;  %3185 = vmatpush.bf16.msra.mxu3 %v4748_v23  ;;  %3198 = vmatpush.bf16.msra.mxu0 %v4972_v27  ;;  %v5705_v27 = vld [vmem:[%s8354_s8 + $0x50c] sm:$0xf] }
 0x1e0   :  { %v4831_v23 = vld [vmem:[%s8354_s8 + $0x1c0] sm:$0xf] }
 0x1e3   :  { %v5724_v26 = vpop.eup %5723 }
 0x1e4   :  { %v5726_v53 = vpop.eup %5725 }
 0x1e5   :  { %1900 = vrot.lane.b32.xlu0 %v5724_v26, %s5759_s28  ;;  %v1896_v60 = vmul.f32 0.6931472, %v5726_v53  ;;  %v5575_v26 = vld [vmem:[%s8354_s8 + $0xf8] sm:$0xf0] }
 0x1e6   :  { %v5631_v53 = vld [vmem:[%s8354_s8 + $0x2b8] sm:$0xf0] }
 0x1e7   :  { %v1897_v32 = vadd.f32 %v1896_v60, %v1894_v31  ;;  %v5701_v60 = vld [vmem:[%s8354_s8 + $0x4e8] sm:$0xf0]  ;;  %v4944_v40 = vor.u32 %v5631_v53, %v4943_v30  ;;  %v4608_v53 = vor.u32 %v5547_v16, %v4607_v57  ;;  %v5712_v16 = vld [vmem:[%s8354_s8 + $0x544] sm:$0xf] }
 0x1e9   :  { %3199 = vmatpush.bf16.msra.mxu0 %v4944_v40  ;;  %v5698_v40 = vld [vmem:[%s8354_s8 + $0x4d4] sm:$0xf] }
 0x1ed   :  { %3200 = vmatpush.bf16.msra.mxu0 %v4916_v55  ;;  %v5628_v55 = vld [vmem:[%s8354_s8 + $0x2a4] sm:$0xf] }
 0x1f1   :  { %3201 = vmatpush.bf16.msra.mxu0 %v4888_v6  ;;  %v5659_v6 = vld [vmem:[%s8354_s8 + $0x398] sm:$0xf0] }
 0x24f   :  { %v1925_v21 = vpop.permute.xlu0 %1924 }
 0x250   :  { %v1927_v29 = vsub.f32 %v1891_v28, %v1925_v21  ;;  %v5223_v21 = vld [vmem:[%s8354_s8 + $0x4d0] sm:$0xf] }
 0x251   :  { %v5224_v31 = vor.u32 %v5701_v60, %v5223_v21  ;;  %v5083_v21 = vld [vmem:[%s8354_s8 + $0x3b8] sm:$0xf] }
 0x252   :  { %1929 = vrot.lane.b32.xlu1 %v1927_v29, %s5760_s5 }
 0x257   :  { %v1901_v34 = vpop.permute.xlu0 %1900 }
 0x258   :  { %v1903_v33 = vmul.f32 %v1901_v34, %v1897_v32  ;;  %v5195_v34 = vld [vmem:[%s8354_s8 + $0x498] sm:$0xf]  ;;  %v4720_v32 = vor.u32 %v5575_v26, %v4719_v25  ;;  %v5603_v26 = vld [vmem:[%s8354_s8 + $0x1d8] sm:$0xf0] }
 0x25a   :  { %1933 = vrot.lane.b32.xlu1 %v1893_v24, %s5761_s29  ;;  %v4584_v35 = vmul.f32 -1.442695, %v1903_v33  ;;  %v5708_v24 = vld [vmem:[%s8354_s8 + $0x520] sm:$0xf0]  ;;  %v5694_v33 = vld [vmem:[%s8354_s8 + $0x4b0] sm:$0xf0]  ;;  %3186 = vmatpush.bf16.msra.mxu3 %v4720_v32 }
 0x25b   :  { %v5252_v28 = vor.u32 %v5708_v24, %v5251_v22  ;;  %v5196_v47 = vor.u32 %v5694_v33, %v5195_v34  ;;  %v5029_v22 = vld [vmem:[%s8354_s8 + $0x364] sm:$0xf0]  ;;  %v5112_v24 = vor.u32 %v5673_v15, %v5111_v14  ;;  %v5586_v34 = vld [vmem:[%s8354_s8 + $0x154] sm:$0xf]  ;;  %v4777_v32 = vld [vmem:[%s8354_s8 + $0x16c] sm:$0xf0]  ;;  %v4832_v33 = vor.u32 %v5603_v26, %v4831_v23 }
 0x25c   :  { %5727 = vpow2.f32 %v4584_v35  ;;  %v5279_v35 = vld [vmem:[%s8354_s8 + $0x540] sm:$0xf]  ;;  %v5614_v14 = vld [vmem:[%s8354_s8 + $0x234] sm:$0xf]  ;;  %v4889_v15 = vld [vmem:[%s8354_s8 + $0x24c] sm:$0xf0] }
 0x25d   :  { %3209 = vmatpush.bf16.msrb.mxu1 %v5252_v28  ;;  %v5253_v28 = vld [vmem:[%s8354_s8 + $0x524] sm:$0xf0]  ;;  %v4892_v57 = vor.u32 %v5614_v14, %v4889_v15  ;;  %v4637_v23 = vld [vmem:[%s8354_s8 + $0x54] sm:$0xf0]  ;;  %v4755_v15 = vld [vmem:[%s8354_s8 + $0x120] sm:$0xf] }
 0x25e   :  { %3187 = vmatpush.bf16.msra.mxu3 %v4692_v48  ;;  %v5256_v37 = vor.u32 %v5705_v27, %v5253_v28  ;;  %v5691_v48 = vld [vmem:[%s8354_s8 + $0x49c] sm:$0xf]  ;;  %v4861_v26 = vld [vmem:[%s8354_s8 + $0x214] sm:$0xf0]  ;;  %v5670_v28 = vld [vmem:[%s8354_s8 + $0x3f4] sm:$0xf] }
 0x25f   :  { %v5200_v59 = vor.u32 %v5691_v48, %v5197_v50  ;;  %v4811_v50 = vld [vmem:[%s8354_s8 + $0x190] sm:$0xf] }
 0x261   :  { %3210 = vmatpush.bf16.msrb.mxu1 %v5224_v31  ;;  %v5032_v31 = vor.u32 %v5649_v9, %v5029_v22  ;;  %v5551_v22 = vld [vmem:[%s8354_s8 + $0x3c] sm:$0xf] }
 0x262   :  { %v5728_v36 = vpop.eup %5727 }
 0x263   :  { %v7159_v39 = vadd.f32 1.0, %v5728_v36  ;;  %v5715_v36 = vld [vmem:[%s8354_s8 + $0x558] sm:$0xf0] }
 0x264   :  { %v5280_v41 = vor.u32 %v5715_v36, %v5279_v35  ;;  %v5642_v35 = vld [vmem:[%s8354_s8 + $0x314] sm:$0xf]  ;;  %v5001_v36 = vld [vmem:[%s8354_s8 + $0x32c] sm:$0xf0] }
 0x265   :  { %5729 = vrcp.f32 %v7159_v39  ;;  %v1919_v46 = vand.u32 2147483648, %v7159_v39  ;;  %vm1913_vm3 = vweird.f32 %v7159_v39  ;;  %v1917_v49 = vand.u32 2147483647, %v7159_v39  ;;  %3211 = vmatpush.bf16.msrb.mxu1 %v5196_v47  ;;  %v4973_v47 = vld [vmem:[%s8354_s8 + $0x2f4] sm:$0xf0] }
 0x266   :  { %3229 = vmatpush.bf16.msrb.mxu2 %v5280_v41  ;;  %v5225_v41 = vld [vmem:[%s8354_s8 + $0x4ec] sm:$0xf0]  ;;  %v5004_v43 = vor.u32 %v5642_v35, %v5001_v36  ;;  %v5085_v35 = vld [vmem:[%s8354_s8 + $0x3d4] sm:$0xf0] }
 0x267   :  { %v1920_v62 = vor.u32 1.1754944e-38, %v1919_v46  ;;  %vm1918_vm5 = vcmp.eq.f32.partialorder %v1917_v49, 8.507059e+37  ;;  %v5635_v46 = vld [vmem:[%s8354_s8 + $0x2dc] sm:$0xf]  ;;  %v5228_v49 = vor.u32 %v5698_v40, %v5225_v41  ;;  %v1948_v41 = vld [vmem:[%s8356_s7] sm:$0xf] }
 0x268   :  { %v4976_v52 = vor.u32 %v5635_v46, %v4973_v47  ;;  %v5287_v47 = vld [vmem:[%s8354_s8 + $0x548] sm:$0xf] }
 0x269   :  { %3212 = vmatpush.bf16.msrb.mxu1 %v5168_v63  ;;  %v5565_v63 = vld [vmem:[%s8354_s8 + $0xac] sm:$0xf] }
 0x26b   :  { %v7192_v3 = vpop.eup %5729 }
 0x26c   :  { %v1909_v8 = vmul.f32 %v7192_v3, %v7159_v39  ;;  %vm1914_vm2 = vweird.f32 %v7192_v3  ;;  %v5561_v39 = vld [vmem:[%s8354_s8 + $0x88] sm:$0xf0] }
 0x26d   :  { %vm7292_vm4 = vmor %vm1913_vm3, %vm1914_vm2  ;;  %v4664_v0 = vor.u32 %v5561_v39, %v4663_v54  ;;  %3213 = vmatpush.bf16.msrb.mxu1 %v5140_v11  ;;  %v5572_v54 = vld [vmem:[%s8354_s8 + $0xe4] sm:$0xf]  ;;  %v4721_v39 = vld [vmem:[%s8354_s8 + $0xfc] sm:$0xf0] }
 0x26e   :  { %v1910_v19 = vsub.f32 1.0, %v1909_v8  ;;  %v4859_v8 = vld [vmem:[%s8354_s8 + $0x1f8] sm:$0xf]  ;;  %v4724_v61 = vor.u32 %v5572_v54, %v4721_v39  ;;  %v4665_v11 = vld [vmem:[%s8354_s8 + $0x8c] sm:$0xf0]  ;;  %v1950_v54 = vperm.slane %v1948_v41, 0 }
 0x26f   :  { %3188 = vmatpush.bf16.msra.mxu3 %v4664_v0  ;;  %v4860_v17 = vor.u32 %v5610_v58, %v4859_v8  ;;  %v4693_v0 = vld [vmem:[%s8354_s8 + $0xc4] sm:$0xf0]  ;;  %v5056_v8 = vor.u32 %v5659_v6, %v5055_v5  ;;  %v5169_v58 = vld [vmem:[%s8354_s8 + $0x47c] sm:$0xf0]  ;;  %v5709_v5 = vld [vmem:[%s8354_s8 + $0x528] sm:$0xf0] }
 0x270   :  { %v1911_v29 = vmul.f32 %v7192_v3, %v1910_v19  ;;  %v5593_v19 = vld [vmem:[%s8354_s8 + $0x18c] sm:$0xf]  ;;  %v4696_v2 = vor.u32 %v5565_v63, %v4693_v0  ;;  %v4783_v0 = vld [vmem:[%s8354_s8 + $0x158] sm:$0xf] }
 0x271   :  { %3202 = vmatpush.bf16.msra.mxu0 %v4860_v17  ;;  %v4808_v60 = vor.u32 %v5593_v19, %v4805_v20  ;;  %3214 = vmatpush.bf16.msrb.mxu1 %v5112_v24  ;;  %v5281_v17 = vld [vmem:[%s8354_s8 + $0x55c] sm:$0xf0]  ;;  %v5677_v19 = vld [vmem:[%s8354_s8 + $0x42c] sm:$0xf]  ;;  %v5141_v20 = vld [vmem:[%s8354_s8 + $0x444] sm:$0xf0] }
 0x272   :  { %v1912_v42 = vadd.f32 %v7192_v3, %v1911_v29  ;;  %v5666_v29 = vld [vmem:[%s8354_s8 + $0x3d0] sm:$0xf0]  ;;  %v5144_v9 = vor.u32 %v5677_v19, %v5141_v20  ;;  %v5607_v24 = vld [vmem:[%s8354_s8 + $0x1fc] sm:$0xf] }
 0x273   :  { %3189 = vmatpush.bf16.msra.mxu3 %v4636_v13  ;;  %v5084_v38 = vor.u32 %v5666_v29, %v5083_v21  ;;  %v4864_v27 = vor.u32 %v5607_v24, %v4861_v26  ;;  %v5113_v21 = vld [vmem:[%s8354_s8 + $0x40c] sm:$0xf0]  ;;  %v5702_v19 = vld [vmem:[%s8354_s8 + $0x4f0] sm:$0xf0]  ;;  %v4727_v26 = vld [vmem:[%s8354_s8 + $0xe8] sm:$0xf] }
 0x274   :  { %v1916_v56 = vsel %vm7292_vm4, %v7192_v3, %v1912_v42  ;;  %v4780_v42 = vor.u32 %v5586_v34, %v4777_v32  ;;  %v5116_v29 = vor.u32 %v5670_v28, %v5113_v21  ;;  %v4833_v34 = vld [vmem:[%s8354_s8 + $0x1dc] sm:$0xf0] }
 0x275   :  { %v1921_v3 = vsel %vm1918_vm5, %v1920_v62, %v1916_v56  ;;  %3203 = vmatpush.bf16.msra.mxu0 %v4832_v33  ;;  %3215 = vmatpush.bf16.msrb.mxu1 %v5084_v38  ;;  %v4945_v56 = vld [vmem:[%s8354_s8 + $0x2bc] sm:$0xf0]  ;;  %v5663_v33 = vld [vmem:[%s8354_s8 + $0x3bc] sm:$0xf] }
 0x276   :  { %v4948_v62 = vor.u32 %v5628_v55, %v4945_v56  ;;  %v5088_v36 = vor.u32 %v5663_v33, %v5085_v35  ;;  %v5057_v38 = vld [vmem:[%s8354_s8 + $0x39c] sm:$0xf0]  ;;  %v1953_v55 = vperm.slane %v1948_v41, 3  ;;  %v4699_v35 = vld [vmem:[%s8354_s8 + $0xb0] sm:$0xf] }
 0x277   :  { %3190 = vmatpush.bf16.msra.mxu3 %v4608_v53  ;;  %v4609_v53 = vld [vmem:[%s8354_s8 + $0x1c] sm:$0xf0] }
 0x279   :  { %3216 = vmatpush.bf16.msrb.mxu1 %v5056_v8  ;;  %v5035_v8 = vld [vmem:[%s8354_s8 + $0x350] sm:$0xf] }
 0x2c4   :  { %v1930_v45 = vpop.permute.xlu1 %1929 }
 0x2c5   :  { %v1932_v7 = vmul.f32 %v1930_v45, %v1921_v3  ;;  %v4749_v45 = vld [vmem:[%s8354_s8 + $0x134] sm:$0xf0]  ;;  %v4917_v3 = vld [vmem:[%s8354_s8 + $0x284] sm:$0xf0] }
 0x2c6   :  { %v4752_v51 = vor.u32 %v5579_v44, %v4749_v45  ;;  %v4920_v4 = vor.u32 %v5621_v1, %v4917_v3  ;;  %v5590_v1 = vld [vmem:[%s8354_s8 + $0x170] sm:$0xf0] }
 0x2cc   :  { %v1934_v10 = vpop.permute.xlu1 %1933 }
 0x2cd   :  { %v1936_v12 = vadd.f32 %v1934_v10, %v1932_v7  ;;  %v5684_v7 = vld [vmem:[%s8354_s8 + $0x464] sm:$0xf]  ;;  %v5558_v10 = vld [vmem:[%s8354_s8 + $0x74] sm:$0xf] }
 0x2ce   :  { %v4668_v13 = vor.u32 %v5558_v10, %v4665_v11 }
 0x2cf   :  { %v1937_v18 = vmax.f32 %v1936_v12, 0.0  ;;  %v5172_v12 = vor.u32 %v5684_v7, %v5169_v58  ;;  %v5653_v58 = vld [vmem:[%s8354_s8 + $0x368] sm:$0xf0] }
 0x2d1   :  { %v1938_v25 = vmin.f32 %v1937_v18, 1.0  ;;  %v5284_v18 = vor.u32 %v5712_v16, %v5281_v17  ;;  %v5036_v17 = vor.u32 %v5653_v58, %v5035_v8  ;;  %v5618_v8 = vld [vmem:[%s8354_s8 + $0x250] sm:$0xf0] }
 0x2d3   :  { %v1941_v30 = vpack.c.bf16 %v1938_v25, %v1938_v25  ;;  %1940 = vst.msk [vmem:[%s8355_s11] sm:$0xff] %vm1939_vm6, %v1938_v25  ;;  %v4640_v25 = vor.u32 %v5551_v22, %v4637_v23  ;;  %v5646_v22 = vld [vmem:[%s8354_s8 + $0x330] sm:$0xf0] }
 0x2d5   :  { %4601 = vmatmul.msk.bf16.vlgmr.msrb.gmra.mxu3 %vm1939_vm6, %v1941_v30  ;;  %4602 = vmatmul.msk.bf16.vlgmr.msrb.gmra.mxu0 %vm1939_vm6, %v1941_v30 }
 0x2d6   :  { %4603 = vmatmul.msk.bf16.vlgmr.msra.gmra.mxu1 %vm1939_vm6, %v1941_v30  ;;  %4604 = vmatmul.msk.bf16.vlgmr.msra.gmra.mxu2 %vm1939_vm6, %v1941_v30  ;;  %v5544_v30 = vld [vmem:[%s8354_s8 + $0x4] sm:$0xf] }
 0x2d7   :  { %3235 = vmatpush.bf16.msra.mxu2 %v4808_v60  ;;  %3248 = vmatpush.bf16.msrb.mxu3 %v5032_v31  ;;  %v4612_v60 = vor.u32 %v5544_v30, %v4609_v53  ;;  %v5600_v31 = vld [vmem:[%s8354_s8 + $0x1c4] sm:$0xf]  ;;  %v5695_v30 = vld [vmem:[%s8354_s8 + $0x4b8] sm:$0xf0]  ;;  %v4979_v53 = vld [vmem:[%s8354_s8 + $0x2e0] sm:$0xf] }
 0x2d8   :  { %3261 = vmatpush.bf16.msrb.mxu0 %v5256_v37  ;;  %3281 = vmatpush.bf16.msra.mxu1 %v5284_v18  ;;  %v4836_v32 = vor.u32 %v5600_v31, %v4833_v34  ;;  %v5656_v37 = vld [vmem:[%s8354_s8 + $0x384] sm:$0xf]  ;;  %v5231_v18 = vld [vmem:[%s8354_s8 + $0x4d8] sm:$0xf]  ;;  %v5594_v34 = vld [vmem:[%s8354_s8 + $0x194] sm:$0xf] }
 0x2d9   :  { %v5060_v40 = vor.u32 %v5656_v37, %v5057_v38  ;;  %v5175_v38 = vld [vmem:[%s8354_s8 + $0x468] sm:$0xf] }
 0x2db   :  { %3236 = vmatpush.bf16.msra.mxu2 %v4780_v42  ;;  %3249 = vmatpush.bf16.msrb.mxu3 %v5004_v43  ;;  %v1951_v42 = vperm.slane %v1948_v41, 1  ;;  %v1952_v43 = vperm.slane %v1948_v41, 2 }
 0x2dc   :  { %3262 = vmatpush.bf16.msrb.mxu0 %v5228_v49  ;;  %v5716_v49 = vld [vmem:[%s8354_s8 + $0x560] sm:$0xf0] }
 0x2dd   :  { %v5288_v56 = vor.u32 %v5716_v49, %v5287_v47  ;;  %v4671_v49 = vld [vmem:[%s8354_s8 + $0x78] sm:$0xf] }
 0x2df   :  { %3237 = vmatpush.bf16.msra.mxu2 %v4752_v51  ;;  %3250 = vmatpush.bf16.msrb.mxu3 %v4976_v52  ;;  %v5597_v51 = vld [vmem:[%s8354_s8 + $0x1a8] sm:$0xf0] }
 0x2e0   :  { %3263 = vmatpush.bf16.msrb.mxu0 %v5200_v59 }
 0x2e3   :  { %3238 = vmatpush.bf16.msra.mxu2 %v4724_v61  ;;  %3251 = vmatpush.bf16.msrb.mxu3 %v4948_v62  ;;  %v4812_v61 = vor.u32 %v5597_v51, %v4811_v50  ;;  %v5147_v51 = vld [vmem:[%s8354_s8 + $0x430] sm:$0xf] }
 0x2e4   :  { %3264 = vmatpush.bf16.msrb.mxu0 %v5172_v12  ;;  %v4784_v12 = vor.u32 %v5590_v1, %v4783_v0  ;;  %v4643_v1 = vld [vmem:[%s8354_s8 + $0x40] sm:$0xf] }
 0x2e7   :  { %3239 = vmatpush.bf16.msra.mxu2 %v4696_v2  ;;  %3252 = vmatpush.bf16.msrb.mxu3 %v4920_v4  ;;  %v5259_v4 = vld [vmem:[%s8354_s8 + $0x510] sm:$0xf] }
 0x2e8   :  { %3265 = vmatpush.bf16.msrb.mxu0 %v5144_v9  ;;  %v5260_v14 = vor.u32 %v5709_v5, %v5259_v4  ;;  %v5007_v9 = vld [vmem:[%s8354_s8 + $0x318] sm:$0xf]  ;;  %v5674_v5 = vld [vmem:[%s8354_s8 + $0x410] sm:$0xf0] }
 0x2e9   :  { %v5008_v21 = vor.u32 %v5646_v22, %v5007_v9  ;;  %v5119_v4 = vld [vmem:[%s8354_s8 + $0x3f8] sm:$0xf]  ;;  %v4867_v22 = vld [vmem:[%s8354_s8 + $0x200] sm:$0xf] }
 0x2eb   :  { %3240 = vmatpush.bf16.msra.mxu2 %v4668_v13  ;;  %3253 = vmatpush.bf16.msrb.mxu3 %v4892_v57  ;;  %v5583_v57 = vld [vmem:[%s8354_s8 + $0x138] sm:$0xf0] }
 0x2ec   :  { %3266 = vmatpush.bf16.msrb.mxu0 %v5116_v29  ;;  %v4756_v23 = vor.u32 %v5583_v57, %v4755_v15  ;;  %v5203_v29 = vld [vmem:[%s8354_s8 + $0x4a0] sm:$0xf]  ;;  %v5650_v15 = vld [vmem:[%s8354_s8 + $0x354] sm:$0xf] }
 0x2ed   :  { %v5204_v33 = vor.u32 %v5695_v30, %v5203_v29  ;;  %v5009_v29 = vld [vmem:[%s8354_s8 + $0x334] sm:$0xf0]  ;;  %v4839_v30 = vld [vmem:[%s8354_s8 + $0x1c8] sm:$0xf] }
 0x2ef   :  { %3241 = vmatpush.bf16.msra.mxu2 %v4640_v25  ;;  %3254 = vmatpush.bf16.msrb.mxu3 %v4864_v27  ;;  %v5232_v25 = vor.u32 %v5702_v19, %v5231_v18  ;;  %v5576_v27 = vld [vmem:[%s8354_s8 + $0x100] sm:$0xf0]  ;;  %v5091_v18 = vld [vmem:[%s8354_s8 + $0x3c0] sm:$0xf]  ;;  %v5667_v19 = vld [vmem:[%s8354_s8 + $0x3d8] sm:$0xf0] }
 0x2f0   :  { %3267 = vmatpush.bf16.msrb.mxu0 %v5088_v36  ;;  %v4728_v31 = vor.u32 %v5576_v27, %v4727_v26  ;;  %v5569_v36 = vld [vmem:[%s8354_s8 + $0xc8] sm:$0xf0]  ;;  %v4701_v26 = vld [vmem:[%s8354_s8 + $0xcc] sm:$0xf0] }
 0x2f3   :  { %3242 = vmatpush.bf16.msra.mxu2 %v4612_v60  ;;  %3255 = vmatpush.bf16.msrb.mxu3 %v4836_v32  ;;  %v5639_v60 = vld [vmem:[%s8354_s8 + $0x2f8] sm:$0xf0]  ;;  %v4813_v32 = vld [vmem:[%s8354_s8 + $0x1ac] sm:$0xf0] }
 0x2f4   :  { %3268 = vmatpush.bf16.msrb.mxu0 %v5060_v40  ;;  %v4980_v37 = vor.u32 %v5639_v60, %v4979_v53  ;;  %v5688_v40 = vld [vmem:[%s8354_s8 + $0x480] sm:$0xf0]  ;;  %v4816_v41 = vor.u32 %v5594_v34, %v4813_v32 }
 0x2f5   :  { %v5176_v47 = vor.u32 %v5688_v40, %v5175_v38  ;;  %v5604_v60 = vld [vmem:[%s8354_s8 + $0x1e0] sm:$0xf0]  ;;  %v5559_v38 = vld [vmem:[%s8354_s8 + $0x7c] sm:$0xf]  ;;  %v4673_v40 = vld [vmem:[%s8354_s8 + $0x94] sm:$0xf0] }
 0x2f6   :  { %v5660_v34 = vld [vmem:[%s8354_s8 + $0x3a0] sm:$0xf0] }
 0x352   :  { %v2026_v44 = vpop.f32.mrf.mxu0 }
 0x353   :  { %v2027_v45 = vadd.f32 %v2026_v44, %v1951_v42  ;;  %v2039_v46 = vpop.f32.mrf.mxu1  ;;  %v4951_v42 = vld [vmem:[%s8354_s8 + $0x2a8] sm:$0xf]  ;;  %v4700_v44 = vor.u32 %v5569_v36, %v4699_v35  ;;  %v5713_v35 = vld [vmem:[%s8354_s8 + $0x54c] sm:$0xf] }
 0x354   :  { %v2040_v48 = vadd.f32 %v2039_v46, %v1952_v43  ;;  %v5632_v43 = vld [vmem:[%s8354_s8 + $0x2c0] sm:$0xf0]  ;;  %v4785_v46 = vld [vmem:[%s8354_s8 + $0x174] sm:$0xf0]  ;;  %v5289_v36 = vld [vmem:[%s8354_s8 + $0x564] sm:$0xf0] }
 0x355   :  { %v2057_v52 = vmax.f32 %v2027_v45, 0.0  ;;  %v5587_v45 = vld [vmem:[%s8354_s8 + $0x15c] sm:$0xf]  ;;  %v4952_v50 = vor.u32 %v5632_v43, %v4951_v42  ;;  %v4840_v43 = vor.u32 %v5604_v60, %v4839_v30  ;;  %v5149_v60 = vld [vmem:[%s8354_s8 + $0x44c] sm:$0xf0] }
 0x356   :  { %v2058_v39 = vmax.f32 %v2040_v48, 0.0  ;;  %v5562_v48 = vld [vmem:[%s8354_s8 + $0x90] sm:$0xf0] }
 0x357   :  { %v7532_v59 = vpack.c.bf16 %v2057_v52, %v2057_v52  ;;  %v5681_v52 = vld [vmem:[%s8354_s8 + $0x448] sm:$0xf0] }
 0x358   :  { %v7534_v62 = vpack.c.bf16 %v2058_v39, %v2058_v39  ;;  %v2013_v63 = vpop.f32.mrf.mxu3  ;;  %v4923_v39 = vld [vmem:[%s8354_s8 + $0x270] sm:$0xf]  ;;  %v5148_v0 = vor.u32 %v5681_v52, %v5147_v51  ;;  %v5699_v51 = vld [vmem:[%s8354_s8 + $0x4dc] sm:$0xf]  ;;  %v5233_v52 = vld [vmem:[%s8354_s8 + $0x4f4] sm:$0xf0] }
 0x359   :  { %v2014_v2 = vadd.f32 %v2013_v63, %v1950_v54  ;;  %v2052_v3 = vpop.f32.mrf.mxu2  ;;  %3204 = vmatmul.bf16.vlgmr.msra.gmra.mxu0 %v7532_v59  ;;  %v4788_v54 = vor.u32 %v5587_v45, %v4785_v46  ;;  %v4757_v63 = vld [vmem:[%s8354_s8 + $0x13c] sm:$0xf0]  ;;  %v5292_v46 = vor.u32 %v5713_v35, %v5289_v36  ;;  %v5608_v35 = vld [vmem:[%s8354_s8 + $0x204] sm:$0xf] }
 0x35a   :  { %v2053_v6 = vadd.f32 %v2052_v3, %v1953_v55  ;;  %3217 = vmatmul.bf16.vlgmr.msrb.gmra.mxu1 %v7534_v62  ;;  %v2028_v7 = vpop.f32.mrf.mxu0  ;;  %3333 = vmatpush.bf16.msra.mxu0 %v5288_v56  ;;  %v5625_v55 = vld [vmem:[%s8354_s8 + $0x288] sm:$0xf0]  ;;  %v4672_v56 = vor.u32 %v5562_v48, %v4671_v49  ;;  %v4981_v45 = vld [vmem:[%s8354_s8 + $0x2fc] sm:$0xf0]  ;;  %v4676_v49 = vor.u32 %v5559_v38, %v4673_v40  ;;  %v4819_v48 = vld [vmem:[%s8354_s8 + $0x198] sm:$0xf] }
 0x35b   :  { %v2056_v10 = vmax.f32 %v2014_v2, 0.0  ;;  %3287 = vmatpush.bf16.msrb.mxu1 %v4812_v61  ;;  %v2041_v11 = vpop.f32.mrf.mxu1  ;;  %v5580_v61 = vld [vmem:[%s8354_s8 + $0x124] sm:$0xf]  ;;  %v5555_v2 = vld [vmem:[%s8354_s8 + $0x58] sm:$0xf0]  ;;  %v4924_v3 = vor.u32 %v5625_v55, %v4923_v39 }
 0x35c   :  { %v2059_v13 = vmax.f32 %v2053_v6, 0.0  ;;  %v4760_v6 = vor.u32 %v5580_v61, %v4757_v63  ;;  %v4895_v7 = vld [vmem:[%s8354_s8 + $0x238] sm:$0xf]  ;;  %v4644_v58 = vor.u32 %v5555_v2, %v4643_v1  ;;  %v4729_v11 = vld [vmem:[%s8354_s8 + $0x104] sm:$0xf0] }
 0x35d   :  { %v7562_v16 = vpack.c.bf16 %v2056_v10, %v2056_v10  ;;  %v5573_v10 = vld [vmem:[%s8354_s8 + $0xec] sm:$0xf]  ;;  %v4896_v57 = vor.u32 %v5618_v8, %v4895_v7  ;;  %v4645_v39 = vld [vmem:[%s8354_s8 + $0x5c] sm:$0xf0]  ;;  %v4953_v63 = vld [vmem:[%s8354_s8 + $0x2c4] sm:$0xf0] }
 0x35e   :  { %v7570_v20 = vpack.c.bf16 %v2059_v13, %v2059_v13  ;;  %v4615_v13 = vld [vmem:[%s8354_s8 + $0x8] sm:$0xf]  ;;  %v4732_v9 = vor.u32 %v5573_v10, %v4729_v11  ;;  %v5629_v61 = vld [vmem:[%s8354_s8 + $0x2ac] sm:$0xf]  ;;  %v4791_v2 = vld [vmem:[%s8354_s8 + $0x160] sm:$0xf] }
 0x35f   :  { %3288 = vmatpush.bf16.msrb.mxu1 %v4784_v12  ;;  %3191 = vmatmul.bf16.vlgmr.msra.gmra.mxu3 %v7562_v16  ;;  %v5120_v12 = vor.u32 %v5674_v5, %v5119_v4  ;;  %v5692_v4 = vld [vmem:[%s8354_s8 + $0x4a4] sm:$0xf]  ;;  %v5205_v5 = vld [vmem:[%s8354_s8 + $0x4bc] sm:$0xf0]  ;;  %v4617_v7 = vld [vmem:[%s8354_s8 + $0x24] sm:$0xf0]  ;;  %v4956_v8 = vor.u32 %v5629_v61, %v4953_v63 }
 0x360   :  { %5305 = vmatmul.msk.bf16.vlgmr.msrb.gmra.mxu2 %vm1252_vm0, %v7570_v20  ;;  %3313 = vmatpush.bf16.msra.mxu3 %v5260_v14  ;;  %v2015_v24 = vpop.f32.mrf.mxu3  ;;  %v5548_v14 = vld [vmem:[%s8354_s8 + $0x20] sm:$0xf0]  ;;  %v5654_v10 = vld [vmem:[%s8354_s8 + $0x370] sm:$0xf0]  ;;  %v4869_v36 = vld [vmem:[%s8354_s8 + $0x21c] sm:$0xf0] }
 0x361   :  { %3300 = vmatpush.bf16.msrb.mxu2 %v5036_v17  ;;  %v2054_v28 = vpop.f32.mrf.mxu2  ;;  %v5037_v17 = vld [vmem:[%s8354_s8 + $0x36c] sm:$0xf0]  ;;  %v4616_v24 = vor.u32 %v5548_v14, %v4615_v13  ;;  %v5208_v14 = vor.u32 %v5692_v4, %v5205_v5  ;;  %v4707_v38 = vld [vmem:[%s8354_s8 + $0xb8] sm:$0xf]  ;;  %v5570_v40 = vld [vmem:[%s8354_s8 + $0xd0] sm:$0xf0] }
 0x362   :  { %v5040_v27 = vor.u32 %v5650_v15, %v5037_v17  ;;  %v5092_v28 = vor.u32 %v5667_v19, %v5091_v18  ;;  %v4925_v13 = vld [vmem:[%s8354_s8 + $0x28c] sm:$0xf0]  ;;  %v5584_v17 = vld [vmem:[%s8354_s8 + $0x140] sm:$0xf0]  ;;  %v5685_v19 = vld [vmem:[%s8354_s8 + $0x46c] sm:$0xf] }
 0x363   :  { %3289 = vmatpush.bf16.msrb.mxu1 %v4756_v23  ;;  %v5611_v23 = vld [vmem:[%s8354_s8 + $0x218] sm:$0xf0]  ;;  %v5093_v61 = vld [vmem:[%s8354_s8 + $0x3dc] sm:$0xf0]  ;;  %v4651_v4 = vld [vmem:[%s8354_s8 + $0x48] sm:$0xf] }
 0x364   :  { %3314 = vmatpush.bf16.msra.mxu3 %v5232_v25  ;;  %v5566_v25 = vld [vmem:[%s8354_s8 + $0xb4] sm:$0xf]  ;;  %v4868_v53 = vor.u32 %v5611_v23, %v4867_v22  ;;  %v5015_v23 = vld [vmem:[%s8354_s8 + $0x320] sm:$0xf] }
 0x365   :  { %3301 = vmatpush.bf16.msrb.mxu2 %v5008_v21  ;;  %v5643_v21 = vld [vmem:[%s8354_s8 + $0x31c] sm:$0xf]  ;;  %v4704_v32 = vor.u32 %v5566_v25, %v4701_v26 }
 0x366   :  { %v5615_v26 = vld [vmem:[%s8354_s8 + $0x23c] sm:$0xf] }
 0x367   :  { %3290 = vmatpush.bf16.msrb.mxu1 %v4728_v31  ;;  %v5063_v31 = vld [vmem:[%s8354_s8 + $0x388] sm:$0xf] }
 0x368   :  { %3315 = vmatpush.bf16.msra.mxu3 %v5204_v33  ;;  %v5706_v33 = vld [vmem:[%s8354_s8 + $0x514] sm:$0xf]  ;;  %v5064_v42 = vor.u32 %v5660_v34, %v5063_v31  ;;  %v4987_v34 = vld [vmem:[%s8354_s8 + $0x2e8] sm:$0xf] }
 0x369   :  { %3302 = vmatpush.bf16.msrb.mxu2 %v4980_v37  ;;  %3269 = vmatmul.bf16.vlgmr.msrb.gmra.mxu0 %v7534_v62  ;;  %v5261_v37 = vld [vmem:[%s8354_s8 + $0x52c] sm:$0xf0] }
 0x36a   :  { %5306 = vmatmul.msk.bf16.vlgmr.msra.gmra.mxu1 %vm1252_vm0, %v7570_v20  ;;  %3339 = vmatpush.bf16.msrb.mxu0 %v4816_v41  ;;  %v5012_v41 = vor.u32 %v5643_v21, %v5009_v29  ;;  %v4735_v21 = vld [vmem:[%s8354_s8 + $0xf0] sm:$0xf]  ;;  %v5577_v29 = vld [vmem:[%s8354_s8 + $0x108] sm:$0xf0] }
 0x36b   :  { %3291 = vmatpush.bf16.msrb.mxu1 %v4700_v44  ;;  %v5636_v44 = vld [vmem:[%s8354_s8 + $0x2e4] sm:$0xf] }
 0x36c   :  { %3316 = vmatpush.bf16.msra.mxu3 %v5176_v47  ;;  %v5264_v47 = vor.u32 %v5706_v33, %v5261_v37  ;;  %v4984_v55 = vor.u32 %v5636_v44, %v4981_v45  ;;  %v4736_v33 = vor.u32 %v5577_v29, %v4735_v21  ;;  %v4872_v44 = vor.u32 %v5608_v35, %v4869_v36  ;;  %v4959_v45 = vld [vmem:[%s8354_s8 + $0x2b0] sm:$0xf]  ;;  %v5045_v21 = vld [vmem:[%s8354_s8 + $0x374] sm:$0xf0]  ;;  %v4875_v29 = vld [vmem:[%s8354_s8 + $0x208] sm:$0xf] }
 0x36d   :  { %3303 = vmatpush.bf16.msrb.mxu2 %v4952_v50  ;;  %v5598_v50 = vld [vmem:[%s8354_s8 + $0x1b0] sm:$0xf0]  ;;  %v5588_v36 = vld [vmem:[%s8354_s8 + $0x164] sm:$0xf] }
 0x36e   :  { %3340 = vmatpush.bf16.msrb.mxu0 %v4788_v54  ;;  %v5552_v54 = vld [vmem:[%s8354_s8 + $0x44] sm:$0xf] }
 0x36f   :  { %3292 = vmatpush.bf16.msrb.mxu1 %v4672_v56  ;;  %3256 = vmatmul.bf16.vlgmr.msrb.gmra.mxu3 %v7532_v59  ;;  %v4820_v56 = vor.u32 %v5598_v50, %v4819_v48  ;;  %v4648_v1 = vor.u32 %v5552_v54, %v4645_v39  ;;  %v4841_v48 = vld [vmem:[%s8354_s8 + $0x1e4] sm:$0xf0]  ;;  %v4679_v50 = vld [vmem:[%s8354_s8 + $0x80] sm:$0xf]  ;;  %v5267_v54 = vld [vmem:[%s8354_s8 + $0x518] sm:$0xf] }
 0x370   :  { %3243 = vmatmul.bf16.vlgmr.msra.gmra.mxu2 %v7562_v16  ;;  %3317 = vmatpush.bf16.msra.mxu3 %v5148_v0  ;;  %v5236_v0 = vor.u32 %v5699_v51, %v5233_v52  ;;  %v5563_v52 = vld [vmem:[%s8354_s8 + $0x98] sm:$0xf0]  ;;  %v5710_v39 = vld [vmem:[%s8354_s8 + $0x530] sm:$0xf0] }
 0x371   :  { %3304 = vmatpush.bf16.msrb.mxu2 %v4924_v3  ;;  %v5591_v3 = vld [vmem:[%s8354_s8 + $0x178] sm:$0xf0] }
 0x372   :  { %3341 = vmatpush.bf16.msrb.mxu0 %v4760_v6  ;;  %v5545_v6 = vld [vmem:[%s8354_s8 + $0xc] sm:$0xf]  ;;  %v4792_v11 = vor.u32 %v5591_v3, %v4791_v2  ;;  %v4680_v2 = vor.u32 %v5563_v52, %v4679_v50  ;;  %v5268_v3 = vor.u32 %v5710_v39, %v5267_v54  ;;  %v5682_v50 = vld [vmem:[%s8354_s8 + $0x450] sm:$0xf0]  ;;  %v4765_v52 = vld [vmem:[%s8354_s8 + $0x144] sm:$0xf0] }
 0x373   :  { %3293 = vmatpush.bf16.msrb.mxu1 %v4644_v58  ;;  %v5043_v58 = vld [vmem:[%s8354_s8 + $0x358] sm:$0xf]  ;;  %v4620_v15 = vor.u32 %v5545_v6, %v4617_v7  ;;  %v5556_v6 = vld [vmem:[%s8354_s8 + $0x60] sm:$0xf0]  ;;  %v5239_v7 = vld [vmem:[%s8354_s8 + $0x4e0] sm:$0xf] }
 0x374   :  { %3318 = vmatpush.bf16.msra.mxu3 %v5120_v12  ;;  %v5622_v12 = vld [vmem:[%s8354_s8 + $0x274] sm:$0xf]  ;;  %v5044_v18 = vor.u32 %v5654_v10, %v5043_v58  ;;  %v5657_v10 = vld [vmem:[%s8354_s8 + $0x38c] sm:$0xf] }
 0x375   :  { %3305 = vmatpush.bf16.msrb.mxu2 %v4896_v57  ;;  %v4763_v57 = vld [vmem:[%s8354_s8 + $0x128] sm:$0xf]  ;;  %v4928_v22 = vor.u32 %v5622_v12, %v4925_v13  ;;  %v4903_v12 = vld [vmem:[%s8354_s8 + $0x240] sm:$0xf]  ;;  %v5619_v13 = vld [vmem:[%s8354_s8 + $0x258] sm:$0xf0] }
 0x376   :  { %3342 = vmatpush.bf16.msrb.mxu0 %v4732_v9  ;;  %v5177_v9 = vld [vmem:[%s8354_s8 + $0x484] sm:$0xf0]  ;;  %v4764_v25 = vor.u32 %v5584_v17, %v4763_v57  ;;  %v4652_v57 = vor.u32 %v5556_v6, %v4651_v4  ;;  %v5637_v39 = vld [vmem:[%s8354_s8 + $0x2ec] sm:$0xf]  ;;  %v5574_v4 = vld [vmem:[%s8354_s8 + $0xf4] sm:$0xf] }
 0x377   :  { %3294 = vmatpush.bf16.msrb.mxu1 %v4616_v24  ;;  %v5647_v24 = vld [vmem:[%s8354_s8 + $0x338] sm:$0xf0] }
 0x378   :  { %3319 = vmatpush.bf16.msra.mxu3 %v5092_v28  ;;  %v5180_v28 = vor.u32 %v5685_v19, %v5177_v9  ;;  %v5016_v30 = vor.u32 %v5647_v24, %v5015_v23  ;;  %v5549_v9 = vld [vmem:[%s8354_s8 + $0x28] sm:$0xf0]  ;;  %v5696_v23 = vld [vmem:[%s8354_s8 + $0x4c0] sm:$0xf0]  ;;  %v4904_v24 = vor.u32 %v5619_v13, %v4903_v12  ;;  %v5099_v13 = vld [vmem:[%s8354_s8 + $0x3c8] sm:$0xf] }
 0x379   :  { %3306 = vmatpush.bf16.msrb.mxu2 %v4868_v53  ;;  %5307 = vmatmul.msk.bf16.vlgmr.msra.gmra.mxu0 %vm1252_vm0, %v7570_v20  ;;  %v5678_v53 = vld [vmem:[%s8354_s8 + $0x434] sm:$0xf] }
 0x37a   :  { %3295 = vmatmul.bf16.vlgmr.msrb.gmra.mxu1 %v7562_v16  ;;  %3343 = vmatpush.bf16.msrb.mxu0 %v4704_v32  ;;  %v5640_v32 = vld [vmem:[%s8354_s8 + $0x300] sm:$0xf0]  ;;  %v5152_v37 = vor.u32 %v5678_v53, %v5149_v60 }
 0x37b   :  { %3352 = vmatpush.bf16.msra.mxu1 %v5040_v27  ;;  %v4897_v27 = vld [vmem:[%s8354_s8 + $0x254] sm:$0xf0] }
 0x37c   :  { %3320 = vmatpush.bf16.msra.mxu3 %v5064_v42  ;;  %v4900_v31 = vor.u32 %v5615_v26, %v4897_v27  ;;  %v5671_v42 = vld [vmem:[%s8354_s8 + $0x3fc] sm:$0xf]  ;;  %v4821_v27 = vld [vmem:[%s8354_s8 + $0x1b4] sm:$0xf0] }
 0x37d   :  { %3307 = vmatpush.bf16.msrb.mxu2 %v4840_v43  ;;  %v5121_v43 = vld [vmem:[%s8354_s8 + $0x414] sm:$0xf0]  ;;  %v5595_v26 = vld [vmem:[%s8354_s8 + $0x19c] sm:$0xf] }
 0x37e   :  { %3344 = vmatpush.bf16.msrb.mxu0 %v4676_v49  ;;  %v5601_v49 = vld [vmem:[%s8354_s8 + $0x1cc] sm:$0xf]  ;;  %v5124_v51 = vor.u32 %v5671_v42, %v5121_v43  ;;  %v5707_v43 = vld [vmem:[%s8354_s8 + $0x51c] sm:$0xf] }
 0x37f   :  { %3353 = vmatpush.bf16.msra.mxu1 %v5012_v41  ;;  %3321 = vmatmul.bf16.vlgmr.msra.gmra.mxu3 %v7534_v62  ;;  %v4988_v41 = vor.u32 %v5640_v32, %v4987_v34  ;;  %v4844_v63 = vor.u32 %v5601_v49, %v4841_v48  ;;  %v5183_v34 = vld [vmem:[%s8354_s8 + $0x470] sm:$0xf]  ;;  %v5689_v32 = vld [vmem:[%s8354_s8 + $0x488] sm:$0xf0] }
 0x380   :  { %3385 = vmatpush.bf16.msrb.mxu3 %v5292_v46  ;;  %3308 = vmatmul.bf16.vlgmr.msrb.gmra.mxu2 %v7532_v59  ;;  %v5633_v46 = vld [vmem:[%s8354_s8 + $0x2c8] sm:$0xf0] }
 0x381   :  { %3365 = vmatpush.bf16.msra.mxu2 %v5264_v47  ;;  %v4708_v47 = vor.u32 %v5570_v40, %v4707_v38  ;;  %v5644_v38 = vld [vmem:[%s8354_s8 + $0x324] sm:$0xf]  ;;  %v5017_v40 = vld [vmem:[%s8354_s8 + $0x33c] sm:$0xf0]  ;;  %v5605_v42 = vld [vmem:[%s8354_s8 + $0x1e8] sm:$0xf0] }
 0x382   :  { %3345 = vmatpush.bf16.msrb.mxu0 %v4648_v1  ;;  %v5626_v1 = vld [vmem:[%s8354_s8 + $0x290] sm:$0xf0]  ;;  %v5020_v49 = vor.u32 %v5644_v38, %v5017_v40 }
 0x383   :  { %3354 = vmatpush.bf16.msra.mxu1 %v4984_v55  ;;  %v4960_v55 = vor.u32 %v5633_v46, %v4959_v45  ;;  %v5184_v45 = vor.u32 %v5689_v32, %v5183_v34  ;;  %v5297_v34 = vld [vmem:[%s8354_s8 + $0x56c] sm:$0xf0]  ;;  %v5679_v32 = vld [vmem:[%s8354_s8 + $0x43c] sm:$0xf] }
 0x384   :  { %3391 = vmatpush.bf16.msra.mxu3 %v4820_v56  ;;  %v5664_v56 = vld [vmem:[%s8354_s8 + $0x3c4] sm:$0xf] }
 0x385   :  { %3366 = vmatpush.bf16.msra.mxu2 %v5236_v0  ;;  %v4931_v0 = vld [vmem:[%s8354_s8 + $0x278] sm:$0xf]  ;;  %v5096_v5 = vor.u32 %v5664_v56, %v5093_v61  ;;  %v5700_v56 = vld [vmem:[%s8354_s8 + $0x4e4] sm:$0xf]  ;;  %v5241_v61 = vld [vmem:[%s8354_s8 + $0x4fc] sm:$0xf0] }
 0x386   :  { %3346 = vmatpush.bf16.msrb.mxu0 %v4620_v15  ;;  %v4932_v58 = vor.u32 %v5626_v1, %v4931_v0  ;;  %v5717_v15 = vld [vmem:[%s8354_s8 + $0x568] sm:$0xf0]  ;;  %v5127_v1 = vld [vmem:[%s8354_s8 + $0x400] sm:$0xf]  ;;  %v5244_v6 = vor.u32 %v5700_v56, %v5241_v61  ;;  %v5602_v56 = vld [vmem:[%s8354_s8 + $0x1d4] sm:$0xf] }
 0x387   :  { %3355 = vmatpush.bf16.msra.mxu1 %v4956_v8  ;;  %v5703_v8 = vld [vmem:[%s8354_s8 + $0x4f8] sm:$0xf0]  ;;  %v4849_v61 = vld [vmem:[%s8354_s8 + $0x1ec] sm:$0xf0] }
 0x388   :  { %3392 = vmatpush.bf16.msra.mxu3 %v4792_v11  ;;  %v5065_v11 = vld [vmem:[%s8354_s8 + $0x3a4] sm:$0xf0]  ;;  %v5240_v17 = vor.u32 %v5703_v8, %v5239_v7  ;;  %v5630_v7 = vld [vmem:[%s8354_s8 + $0x2b4] sm:$0xf]  ;;  %v4961_v8 = vld [vmem:[%s8354_s8 + $0x2cc] sm:$0xf0] }
 0x389   :  { %3367 = vmatpush.bf16.msra.mxu2 %v5208_v14  ;;  %3347 = vmatmul.bf16.vlgmr.msrb.gmra.mxu0 %v7562_v16  ;;  %v5295_v14 = vld [vmem:[%s8354_s8 + $0x550] sm:$0xf]  ;;  %v5068_v19 = vor.u32 %v5657_v10, %v5065_v11  ;;  %v5213_v10 = vld [vmem:[%s8354_s8 + $0x4c4] sm:$0xf0] }
 0x38a   :  { %3404 = vmatpush.bf16.msra.mxu0 %v5044_v18  ;;  %v4623_v18 = vld [vmem:[%s8354_s8 + $0x10] sm:$0xf] }
 0x38b   :  { %3356 = vmatpush.bf16.msra.mxu1 %v4928_v22  ;;  %v5211_v22 = vld [vmem:[%s8354_s8 + $0x4a8] sm:$0xf]  ;;  %v4624_v53 = vor.u32 %v5549_v9, %v4623_v18  ;;  %v4933_v9 = vld [vmem:[%s8354_s8 + $0x294] sm:$0xf0] }
 0x38c   :  { %3393 = vmatpush.bf16.msra.mxu3 %v4764_v25  ;;  %v5296_v25 = vor.u32 %v5717_v15, %v5295_v14  ;;  %v5212_v60 = vor.u32 %v5696_v23, %v5211_v22  ;;  %v4964_v14 = vor.u32 %v5630_v7, %v4961_v8  ;;  %v5668_v15 = vld [vmem:[%s8354_s8 + $0x3e0] sm:$0xf0]  ;;  %v5686_v22 = vld [vmem:[%s8354_s8 + $0x474] sm:$0xf]  ;;  %v5185_v23 = vld [vmem:[%s8354_s8 + $0x48c] sm:$0xf0]  ;;  %v4852_v8 = vor.u32 %v5602_v56, %v4849_v61 }
 0x38d   :  { %3368 = vmatpush.bf16.msra.mxu2 %v5180_v28  ;;  %v5651_v28 = vld [vmem:[%s8354_s8 + $0x35c] sm:$0xf]  ;;  %v5620_v56 = vld [vmem:[%s8354_s8 + $0x260] sm:$0xf0]  ;;  %v5135_v61 = vld [vmem:[%s8354_s8 + $0x408] sm:$0xf] }
 0x38e   :  { %3405 = vmatpush.bf16.msra.mxu0 %v5016_v30  ;;  %v5612_v30 = vld [vmem:[%s8354_s8 + $0x220] sm:$0xf0] }
 0x38f   :  { %3357 = vmatpush.bf16.msra.mxu1 %v4900_v31  ;;  %5308 = vmatmul.msk.bf16.vlgmr.msrb.gmra.mxu3 %vm1252_vm0, %v7570_v20  ;;  %v4824_v31 = vor.u32 %v5595_v26, %v4821_v27  ;;  %v4876_v35 = vor.u32 %v5612_v30, %v4875_v29  ;;  %v5071_v26 = vld [vmem:[%s8354_s8 + $0x390] sm:$0xf]  ;;  %v5661_v27 = vld [vmem:[%s8354_s8 + $0x3a8] sm:$0xf0]  ;;  %v4681_v29 = vld [vmem:[%s8354_s8 + $0x9c] sm:$0xf0] }
 0x390   :  { %3394 = vmatpush.bf16.msra.mxu3 %v4736_v33  ;;  %v5048_v33 = vor.u32 %v5651_v28, %v5045_v21  ;;  %v5560_v21 = vld [vmem:[%s8354_s8 + $0x84] sm:$0xf] }
 0x391   :  { %3369 = vmatpush.bf16.msra.mxu2 %v5152_v37  ;;  %v4793_v37 = vld [vmem:[%s8354_s8 + $0x17c] sm:$0xf0]  ;;  %v5616_v30 = vld [vmem:[%s8354_s8 + $0x244] sm:$0xf] }
 0x392   :  { %3406 = vmatpush.bf16.msra.mxu0 %v4988_v41  ;;  %v4847_v41 = vld [vmem:[%s8354_s8 + $0x1d0] sm:$0xf]  ;;  %v4796_v46 = vor.u32 %v5588_v36, %v4793_v37  ;;  %v4684_v36 = vor.u32 %v5560_v21, %v4681_v29  ;;  %v4827_v37 = vld [vmem:[%s8354_s8 + $0x1a0] sm:$0xf]  ;;  %v5641_v29 = vld [vmem:[%s8354_s8 + $0x308] sm:$0xf0] }
 0x393   :  { %3358 = vmatpush.bf16.msra.mxu1 %v4872_v44  ;;  %v5269_v44 = vld [vmem:[%s8354_s8 + $0x534] sm:$0xf0]  ;;  %v4848_v48 = vor.u32 %v5605_v42, %v4847_v41  ;;  %v5599_v41 = vld [vmem:[%s8354_s8 + $0x1b8] sm:$0xf0]  ;;  %v5553_v42 = vld [vmem:[%s8354_s8 + $0x4c] sm:$0xf] }
 0x394   :  { %3395 = vmatpush.bf16.msra.mxu3 %v4708_v47  ;;  %v5155_v47 = vld [vmem:[%s8354_s8 + $0x438] sm:$0xf]  ;;  %v5272_v54 = vor.u32 %v5707_v43, %v5269_v44  ;;  %v4653_v43 = vld [vmem:[%s8354_s8 + $0x64] sm:$0xf0]  ;;  %v4995_v21 = vld [vmem:[%s8354_s8 + $0x2f0] sm:$0xf] }
 0x395   :  { %3370 = vmatpush.bf16.msra.mxu2 %v5124_v51  ;;  %v5581_v51 = vld [vmem:[%s8354_s8 + $0x12c] sm:$0xf] }
 0x396   :  { %3407 = vmatpush.bf16.msra.mxu0 %v4960_v55  ;;  %v4989_v55 = vld [vmem:[%s8354_s8 + $0x304] sm:$0xf0]  ;;  %v4768_v0 = vor.u32 %v5581_v51, %v4765_v52  ;;  %v5592_v52 = vld [vmem:[%s8354_s8 + $0x180] sm:$0xf0] }
 0x397   :  { %3359 = vmatpush.bf16.msra.mxu1 %v4844_v63  ;;  %v5156_v63 = vor.u32 %v5682_v50, %v5155_v47  ;;  %v5672_v47 = vld [vmem:[%s8354_s8 + $0x404] sm:$0xf]  ;;  %v4656_v50 = vor.u32 %v5553_v42, %v4653_v43  ;;  %v4799_v51 = vld [vmem:[%s8354_s8 + $0x168] sm:$0xf] }
 0x398   :  { %3396 = vmatpush.bf16.msra.mxu3 %v4680_v2  ;;  %v4992_v2 = vor.u32 %v5637_v39, %v4989_v55  ;;  %v4625_v55 = vld [vmem:[%s8354_s8 + $0x2c] sm:$0xf0]  ;;  %v4687_v43 = vld [vmem:[%s8354_s8 + $0x88] sm:$0xf] }
 0x399   :  { %3371 = vmatpush.bf16.msra.mxu2 %v5096_v5  ;;  %v4737_v5 = vld [vmem:[%s8354_s8 + $0x10c] sm:$0xf0] }
 0x39a   :  { %3360 = vmatmul.bf16.vlgmr.msra.gmra.mxu1 %v7532_v59  ;;  %3408 = vmatpush.bf16.msra.mxu0 %v4932_v58  ;;  %v5693_v58 = vld [vmem:[%s8354_s8 + $0x4ac] sm:$0xf]  ;;  %v4740_v12 = vor.u32 %v5574_v4, %v4737_v5  ;;  %v5101_v5 = vld [vmem:[%s8354_s8 + $0x3e4] sm:$0xf0] }
 0x39b   :  { %3417 = vmatpush.bf16.msrb.mxu1 %v5268_v3  ;;  %v5675_v3 = vld [vmem:[%s8354_s8 + $0x418] sm:$0xf0]  ;;  %v5216_v18 = vor.u32 %v5693_v58, %v5213_v10  ;;  %v5665_v4 = vld [vmem:[%s8354_s8 + $0x3cc] sm:$0xf]  ;;  %v4771_v10 = vld [vmem:[%s8354_s8 + $0x130] sm:$0xf] }
 0x39c   :  { %3397 = vmatpush.bf16.msra.mxu3 %v4652_v57  ;;  %v5128_v11 = vor.u32 %v5675_v3, %v5127_v1  ;;  %v5567_v57 = vld [vmem:[%s8354_s8 + $0xbc] sm:$0xf] }
 0x39d   :  { %3372 = vmatpush.bf16.msra.mxu2 %v5068_v19  ;;  %v5623_v19 = vld [vmem:[%s8354_s8 + $0x27c] sm:$0xf] }
 0x39e   :  { %3409 = vmatpush.bf16.msra.mxu0 %v4904_v24  ;;  %v5100_v24 = vor.u32 %v5668_v15, %v5099_v13  ;;  %v4936_v28 = vor.u32 %v5623_v19, %v4933_v9  ;;  %v5655_v1 = vld [vmem:[%s8354_s8 + $0x378] sm:$0xf0]  ;;  %v5104_v13 = vor.u32 %v5665_v4, %v5101_v5  ;;  %v5648_v15 = vld [vmem:[%s8354_s8 + $0x340] sm:$0xf0]  ;;  %v5073_v19 = vld [vmem:[%s8354_s8 + $0x3ac] sm:$0xf0] }
 0x39f   :  { %3418 = vmatpush.bf16.msrb.mxu1 %v5240_v17  ;;  %v4709_v17 = vld [vmem:[%s8354_s8 + $0xd4] sm:$0xf0]  ;;  %v5711_v3 = vld [vmem:[%s8354_s8 + $0x538] sm:$0xf0]  ;;  %v4883_v5 = vld [vmem:[%s8354_s8 + $0x210] sm:$0xf] }
 0x3a0   :  { %3373 = vmatmul.bf16.vlgmr.msra.gmra.mxu2 %v7534_v62  ;;  %3398 = vmatpush.bf16.msra.mxu3 %v4624_v53  ;;  %v5188_v53 = vor.u32 %v5686_v22, %v5185_v23  ;;  %v5303_v22 = vld [vmem:[%s8354_s8 + $0x558] sm:$0xf]  ;;  %v5718_v23 = vld [vmem:[%s8354_s8 + $0x570] sm:$0xf0] }
 0x3a1   :  { %3437 = vmatpush.bf16.msrb.mxu2 %v5296_v25  ;;  %v4712_v25 = vor.u32 %v5567_v57, %v4709_v17  ;;  %v5247_v57 = vld [vmem:[%s8354_s8 + $0x4e8] sm:$0xf]  ;;  %v5704_v17 = vld [vmem:[%s8354_s8 + $0x500] sm:$0xf0] }
 0x3a2   :  { %3410 = vmatpush.bf16.msra.mxu0 %v4876_v35  ;;  %v5072_v35 = vor.u32 %v5661_v27, %v5071_v26  ;;  %v5578_v26 = vld [vmem:[%s8354_s8 + $0x110] sm:$0xf0]  ;;  %v5248_v27 = vor.u32 %v5704_v17, %v5247_v57 }
 0x3a3   :  { %3419 = vmatpush.bf16.msrb.mxu1 %v5212_v60  ;;  %3399 = vmatmul.bf16.vlgmr.msra.gmra.mxu3 %v7562_v16  ;;  %v4905_v60 = vld [vmem:[%s8354_s8 + $0x25c] sm:$0xf0] }
 0x3a4   :  { %3456 = vmatpush.bf16.msrb.mxu3 %v5048_v33  ;;  %v5157_v33 = vld [vmem:[%s8354_s8 + $0x454] sm:$0xf0]  ;;  %v4908_v38 = vor.u32 %v5616_v30, %v4905_v60  ;;  %v5219_v30 = vld [vmem:[%s8354_s8 + $0x4b0] sm:$0xf]  ;;  %v5304_v60 = vor.u32 %v5718_v23, %v5303_v22 }
 0x3a5   :  { %3443 = vmatpush.bf16.msra.mxu2 %v4824_v31  ;;  %v5714_v31 = vld [vmem:[%s8354_s8 + $0x554] sm:$0xf]  ;;  %v5160_v44 = vor.u32 %v5679_v32, %v5157_v33  ;;  %v4715_v32 = vld [vmem:[%s8354_s8 + $0xc0] sm:$0xf]  ;;  %v5571_v33 = vld [vmem:[%s8354_s8 + $0xd8] sm:$0xf0] }
 0x3a6   :  { %3411 = vmatpush.bf16.msra.mxu0 %v4848_v48  ;;  %v5300_v40 = vor.u32 %v5714_v31, %v5297_v34  ;;  %v4828_v48 = vor.u32 %v5599_v41, %v4827_v37  ;;  %v4996_v34 = vor.u32 %v5641_v29, %v4995_v21  ;;  %v5634_v37 = vld [vmem:[%s8354_s8 + $0x2d0] sm:$0xf0]  ;;  %v4716_v41 = vor.u32 %v5571_v33, %v4715_v32 }
 0x3a7   :  { %3420 = vmatpush.bf16.msrb.mxu1 %v5184_v45  ;;  %v5609_v45 = vld [vmem:[%s8354_s8 + $0x20c] sm:$0xf] }
 0x3a8   :  { %3457 = vmatpush.bf16.msrb.mxu3 %v5020_v49  ;;  %v5129_v49 = vld [vmem:[%s8354_s8 + $0x41c] sm:$0xf0] }
 0x3a9   :  { %3444 = vmatpush.bf16.msra.mxu2 %v4796_v46  ;;  %3412 = vmatmul.bf16.vlgmr.msra.gmra.mxu0 %v7532_v59  ;;  %v4877_v46 = vld [vmem:[%s8354_s8 + $0x224] sm:$0xf0] }
 0x3aa   :  { %3469 = vmatpush.bf16.msrb.mxu0 %v5272_v54  ;;  %v5546_v54 = vld [vmem:[%s8354_s8 + $0x14] sm:$0xf]  ;;  %v4880_v39 = vor.u32 %v5609_v45, %v4877_v46  ;;  %v4939_v46 = vld [vmem:[%s8354_s8 + $0x280] sm:$0xf] }
 0x3ab   :  { %3421 = vmatpush.bf16.msrb.mxu1 %v5156_v63  ;;  %v5132_v63 = vor.u32 %v5672_v47, %v5129_v49  ;;  %v4628_v7 = vor.u32 %v5546_v54, %v4625_v55  ;;  %v5627_v47 = vld [vmem:[%s8354_s8 + $0x298] sm:$0xf0]  ;;  %v5163_v49 = vld [vmem:[%s8354_s8 + $0x440] sm:$0xf]  ;;  %v5557_v54 = vld [vmem:[%s8354_s8 + $0x68] sm:$0xf0] }
 0x3ac   :  { %3458 = vmatpush.bf16.msrb.mxu3 %v4992_v2  ;;  %v5275_v2 = vld [vmem:[%s8354_s8 + $0x520] sm:$0xf]  ;;  %v4911_v55 = vld [vmem:[%s8354_s8 + $0x248] sm:$0xf] }
 0x3ad   :  { %3445 = vmatpush.bf16.msra.mxu2 %v4768_v0  ;;  %v5051_v0 = vld [vmem:[%s8354_s8 + $0x360] sm:$0xf] }
 0x3ae   :  { %3470 = vmatpush.bf16.msrb.mxu0 %v5244_v6  ;;  %v4800_v6 = vor.u32 %v5592_v52, %v4799_v51  ;;  %v5052_v58 = vor.u32 %v5655_v1, %v5051_v0  ;;  %v4940_v51 = vor.u32 %v5627_v47, %v4939_v46  ;;  %v4659_v52 = vld [vmem:[%s8354_s8 + $0x50] sm:$0xf]  ;;  %v4912_v1 = vor.u32 %v5620_v56, %v4911_v55 }
 0x3af   :  { %3422 = vmatpush.bf16.msrb.mxu1 %v5128_v11  ;;  %v5585_v11 = vld [vmem:[%s8354_s8 + $0x148] sm:$0xf0]  ;;  %v4660_v0 = vor.u32 %v5557_v54, %v4659_v52 }
 0x3b0   :  { %3459 = vmatpush.bf16.msrb.mxu3 %v4964_v14  ;;  %5309 = vmatmul.msk.bf16.vlgmr.msrb.gmra.mxu2 %vm1252_vm0, %v7570_v20  ;;  %v5023_v14 = vld [vmem:[%s8354_s8 + $0x328] sm:$0xf]  ;;  %v4772_v9 = vor.u32 %v5585_v11, %v4771_v10 }
 0x3b1   :  { %3446 = vmatpush.bf16.msra.mxu2 %v4740_v12  ;;  %v5276_v12 = vor.u32 %v5711_v3, %v5275_v2  ;;  %v4631_v2 = vld [vmem:[%s8354_s8 + $0x18] sm:$0xf]  ;;  %v5550_v3 = vld [vmem:[%s8354_s8 + $0x30] sm:$0xf0] }
 0x3b2   :  { %3471 = vmatpush.bf16.msrb.mxu0 %v5216_v18  ;;  %v5658_v18 = vld [vmem:[%s8354_s8 + $0x394] sm:$0xf] }
 0x3b3   :  { %3423 = vmatpush.bf16.msrb.mxu1 %v5100_v24  ;;  %v5024_v24 = vor.u32 %v5648_v15, %v5023_v14  ;;  %v5079_v14 = vld [vmem:[%s8354_s8 + $0x398] sm:$0xf]  ;;  %v5662_v15 = vld [vmem:[%s8354_s8 + $0x3b0] sm:$0xf0] }
 0x3b4   :  { %3460 = vmatpush.bf16.msrb.mxu3 %v4936_v28  ;;  %v5076_v28 = vor.u32 %v5658_v18, %v5073_v19  ;;  %v5080_v17 = vor.u32 %v5662_v15, %v5079_v14 }
 0x3b5   :  { %3447 = vmatpush.bf16.msra.mxu2 %v4712_v25  ;;  %v4743_v25 = vld [vmem:[%s8354_s8 + $0xf8] sm:$0xf] }
 0x3b6   :  { %3472 = vmatpush.bf16.msrb.mxu0 %v5188_v53  ;;  %v5697_v53 = vld [vmem:[%s8354_s8 + $0x4c8] sm:$0xf0]  ;;  %v4744_v31 = vor.u32 %v5578_v26, %v4743_v25 }
 0x3b7   :  { %3424 = vmatpush.bf16.msrb.mxu1 %v5072_v35  ;;  %v5220_v35 = vor.u32 %v5697_v53, %v5219_v30 }
 0x3b8   :  { %3461 = vmatpush.bf16.msrb.mxu3 %v4908_v38  ;;  %v5191_v38 = vld [vmem:[%s8354_s8 + $0x478] sm:$0xf] }
 0x3b9   :  { %3448 = vmatpush.bf16.msra.mxu2 %v4684_v36  ;;  %v4967_v36 = vld [vmem:[%s8354_s8 + $0x2b8] sm:$0xf] }
 0x3ba   :  { %3473 = vmatpush.bf16.msrb.mxu0 %v5160_v44  ;;  %3425 = vmatmul.bf16.vlgmr.msrb.gmra.mxu1 %v7534_v62  ;;  %v4968_v42 = vor.u32 %v5634_v37, %v4967_v36  ;;  %v5564_v44 = vld [vmem:[%s8354_s8 + $0xa0] sm:$0xf0] }
 0x3bb   :  { %3489 = vmatpush.bf16.msra.mxu1 %v5300_v40  ;;  %v5690_v40 = vld [vmem:[%s8354_s8 + $0x490] sm:$0xf0] }
 0x3bc   :  { %3462 = vmatpush.bf16.msrb.mxu3 %v4880_v39  ;;  %v5192_v45 = vor.u32 %v5690_v40, %v5191_v38 }
 0x3bd   :  { %3449 = vmatpush.bf16.msra.mxu2 %v4656_v50  ;;  %v4688_v50 = vor.u32 %v5564_v44, %v4687_v43 }
 0x3be   :  { %3474 = vmatpush.bf16.msrb.mxu0 %v5132_v63  ;;  %v5676_v63 = vld [vmem:[%s8354_s8 + $0x420] sm:$0xf0] }
 0x3bf   :  { %3495 = vmatpush.bf16.msrb.mxu1 %v4828_v48  ;;  %v5683_v48 = vld [vmem:[%s8354_s8 + $0x458] sm:$0xf0]  ;;  %v5136_v4 = vor.u32 %v5676_v63, %v5135_v61 }
 0x3c0   :  { %3463 = vmatpush.bf16.msrb.mxu3 %v4852_v8  ;;  %v5164_v39 = vor.u32 %v5683_v48, %v5163_v49  ;;  %v5669_v8 = vld [vmem:[%s8354_s8 + $0x3e8] sm:$0xf0] }
 0x3c1   :  { %3450 = vmatpush.bf16.msra.mxu2 %v4628_v7  ;;  %v5107_v7 = vld [vmem:[%s8354_s8 + $0x3d0] sm:$0xf] }
 0x3c2   :  { %3475 = vmatpush.bf16.msrb.mxu0 %v5104_v13  ;;  %v5108_v11 = vor.u32 %v5669_v8, %v5107_v7  ;;  %v5606_v13 = vld [vmem:[%s8354_s8 + $0x1f0] sm:$0xf0] }
 0x3c3   :  { %3496 = vmatpush.bf16.msrb.mxu1 %v4800_v6  ;;  %3464 = vmatmul.bf16.vlgmr.msrb.gmra.mxu3 %v7532_v59  ;;  %v5613_v6 = vld [vmem:[%s8354_s8 + $0x228] sm:$0xf0] }
 0x3c4   :  { %3521 = vmatpush.bf16.msra.mxu3 %v5276_v12  ;;  %3451 = vmatmul.bf16.vlgmr.msra.gmra.mxu2 %v7562_v16  ;;  %v4884_v10 = vor.u32 %v5613_v6, %v4883_v5  ;;  %v4855_v12 = vld [vmem:[%s8354_s8 + $0x1d8] sm:$0xf] }
 0x3c5   :  { %3508 = vmatpush.bf16.msrb.mxu2 %v5052_v58  ;;  %v4632_v58 = vor.u32 %v5550_v3, %v4631_v2  ;;  %v4856_v57 = vor.u32 %v5606_v13, %v4855_v12 }
 0x3c6   :  { %3476 = vmatpush.bf16.msrb.mxu0 %v5076_v28 }
 0x3c7   :  { %3497 = vmatpush.bf16.msrb.mxu1 %v4772_v9  ;;  %v8316_v9 = vld [vmem:[%s8357_s9] sm:$0x7f] }
 0x3c8   :  { %3522 = vmatpush.bf16.msra.mxu3 %v5248_v27  ;;  %v2266_v23 = vperm.slane %v8316_v9, 0  ;;  %v2268_v49 = vperm.slane %v8316_v9, 2 }
 0x3c9   :  { %3509 = vmatpush.bf16.msrb.mxu2 %v5024_v24  ;;  %3477 = vmatmul.bf16.vlgmr.msrb.gmra.mxu0 %v7534_v62 }
 0x3ca   :  { %3541 = vmatpush.bf16.msra.mxu0 %v5304_v60  ;;  %5310 = vmatmul.msk.bf16.vlgmr.msra.gmra.mxu1 %vm1252_vm0, %v7570_v20 }
 0x3cb   :  { %3498 = vmatpush.bf16.msrb.mxu1 %v4744_v31  ;;  %v2267_v31 = vperm.slane %v8316_v9, 1 }
 0x3cc   :  { %3523 = vmatpush.bf16.msra.mxu3 %v5220_v35 }
 0x3cd   :  { %3510 = vmatpush.bf16.msrb.mxu2 %v4996_v34 }
 0x3cf   :  { %3499 = vmatpush.bf16.msrb.mxu1 %v4716_v41 }
 0x3d0   :  { %3524 = vmatpush.bf16.msra.mxu3 %v5192_v45 }
 0x3d1   :  { %3511 = vmatpush.bf16.msrb.mxu2 %v4968_v42 }
 0x3d3   :  { %3500 = vmatpush.bf16.msrb.mxu1 %v4688_v50 }
 0x3d4   :  { %3525 = vmatpush.bf16.msra.mxu3 %v5164_v39 }
 0x3d5   :  { %3512 = vmatpush.bf16.msrb.mxu2 %v4940_v51 }
 0x3d6   :  { %v3205_v18 = vpop.f32.mrf.mxu0 }
 0x3d7   :  { %3501 = vmatpush.bf16.msrb.mxu1 %v4660_v0  ;;  %v3218_v19 = vpop.f32.mrf.mxu1 }
 0x3d8   :  { %3526 = vmatpush.bf16.msra.mxu3 %v5136_v4 }
 0x3d9   :  { %3513 = vmatpush.bf16.msrb.mxu2 %v4912_v1  ;;  %5311 = vmatmul.msk.bf16.vlgmr.msra.gmra.mxu0 %vm1252_vm0, %v7570_v20 }
 0x3db   :  { %3502 = vmatpush.bf16.msrb.mxu1 %v4632_v58 }
 0x3dc   :  { %3527 = vmatpush.bf16.msra.mxu3 %v5108_v11 }
 0x3dd   :  { %3514 = vmatpush.bf16.msrb.mxu2 %v4884_v10 }
 0x3de   :  { %3503 = vmatmul.bf16.vlgmr.msrb.gmra.mxu1 %v7562_v16  ;;  %v3207_v22 = vpop.f32.mrf.mxu0 }
 0x3df   :  { %v3220_v20 = vpop.f32.mrf.mxu1 }
 0x3e0   :  { %3528 = vmatpush.bf16.msra.mxu3 %v5080_v17 }
 0x3e1   :  { %3515 = vmatpush.bf16.msrb.mxu2 %v4856_v57 }
 0x3e2   :  { %v3192_v24 = vpop.f32.mrf.mxu3 }
 0x3e3   :  { %3529 = vmatmul.bf16.vlgmr.msra.gmra.mxu3 %v7534_v62  ;;  %v3193_v25 = vadd.f32 %v3192_v24, %v2266_v23  ;;  %v3231_v16 = vpop.f32.mrf.mxu2 }
 0x3e4   :  { %3516 = vmatmul.bf16.vlgmr.msrb.gmra.mxu2 %v7532_v59 }
 0x3e5   :  { %v3206_v26 = vadd.f32 %v3205_v18, %v3193_v25 }
 0x3e6   :  { %v3270_v27 = vpop.f32.mrf.mxu0 }
 0x3e7   :  { %v3219_v28 = vadd.f32 %v3218_v19, %v3206_v26  ;;  %v3283_v21 = vpop.f32.mrf.mxu1 }
 0x3e9   :  { %v3232_v29 = vadd.f32 %v3231_v16, %v3219_v28 }
 0x3ea   :  { %v3194_v59 = vpop.f32.mrf.mxu3 }
 0x3eb   :  { %v5312_v30 = vmul.f32 -1.442695, %v3232_v29  ;;  %v3233_v62 = vpop.f32.mrf.mxu2 }
 0x3ed   :  { %5731 = vpow2.f32 %v5312_v30 }
 0x3ee   :  { %v3272_v53 = vpop.f32.mrf.mxu0 }
 0x3ef   :  { %v3285_v60 = vpop.f32.mrf.mxu1 }
 0x3f2   :  { %v3257_v34 = vpop.f32.mrf.mxu3 }
 0x3f3   :  { %v5732_v32 = vpop.eup %5731  ;;  %v3244_v33 = vpop.f32.mrf.mxu2 }
 0x3f4   :  { %v3568_v35 = vadd.f32 1.0, %v5732_v32  ;;  %v3245_v36 = vadd.f32 %v3244_v33, %v2267_v31 }
 0x3f6   :  { %5733 = vrcp.f32 %v3568_v35  ;;  %v3335_v37 = vpop.f32.mrf.mxu0  ;;  %v3258_v38 = vadd.f32 %v3257_v34, %v3245_v36  ;;  %v3586_v52 = vand.u32 2147483648, %v3568_v35  ;;  %v3584_v39 = vand.u32 2147483647, %v3568_v35 }
 0x3f7   :  { %v3296_v40 = vpop.f32.mrf.mxu1  ;;  %vm3580_vm8 = vweird.f32 %v3568_v35 }
 0x3f8   :  { %v3271_v41 = vadd.f32 %v3270_v27, %v3258_v38  ;;  %v3297_v55 = vadd.f32 %v3296_v40, %v2268_v49  ;;  %v3587_v0 = vor.u32 1.1754944e-38, %v3586_v52  ;;  %vm3585_vm10 = vcmp.eq.f32.partialorder %v3584_v39, 8.507059e+37 }
 0x3f9   :  { %v2269_v27 = vperm.slane %v8316_v9, 3 }
 0x3fa   :  { %v3259_v42 = vpop.f32.mrf.mxu3  ;;  %v3284_v43 = vadd.f32 %v3283_v21, %v3271_v41 }
 0x3fb   :  { %v3246_v44 = vpop.f32.mrf.mxu2 }
 0x3fc   :  { %v5734_v45 = vpop.eup %5733  ;;  %v5313_v47 = vmul.f32 -1.442695, %v3284_v43 }
 0x3fd   :  { %v3576_v46 = vmul.f32 %v5734_v45, %v3568_v35  ;;  %vm3581_vm7 = vweird.f32 %v5734_v45 }
 0x3fe   :  { %v3337_v48 = vpop.f32.mrf.mxu0  ;;  %5735 = vpow2.f32 %v5313_v47  ;;  %vm3582_vm9 = vmor %vm3580_vm8, %vm3581_vm7 }
 0x3ff   :  { %v3577_v50 = vsub.f32 1.0, %v3576_v46  ;;  %v3298_v51 = vpop.f32.mrf.mxu1 }
 0x401   :  { %v3578_v54 = vmul.f32 %v5734_v45, %v3577_v50 }
 0x402   :  { %v3322_v56 = vpop.f32.mrf.mxu3 }
 0x403   :  { %v3579_v61 = vadd.f32 %v5734_v45, %v3578_v54  ;;  %v3309_v63 = vpop.f32.mrf.mxu2 }
 0x404   :  { %v3310_v1 = vadd.f32 %v3309_v63, %v3297_v55  ;;  %v5736_v2 = vpop.eup %5735 }
 0x405   :  { %v3583_v3 = vsel %vm3582_vm9, %v5734_v45, %v3579_v61  ;;  %v3569_v5 = vadd.f32 1.0, %v5736_v2  ;;  %v2270_v45 = vperm.slane %v8316_v9, 4 }
 0x406   :  { %v3588_v4 = vsel %vm3585_vm10, %v3587_v0, %v3583_v3  ;;  %v3323_v6 = vadd.f32 %v3322_v56, %v3310_v1  ;;  %v3348_v7 = vpop.f32.mrf.mxu0 }
 0x407   :  { %3680 = vst [vmem:[%s8358_s10] sm:$0xff] %v3588_v4  ;;  %5737 = vrcp.f32 %v3569_v5  ;;  %v3601_v57 = vand.u32 2147483648, %v3569_v5  ;;  %v3599_v22 = vand.u32 2147483647, %v3569_v5  ;;  %vm3595_vm12 = vweird.f32 %v3569_v5 }
 0x408   :  { %v3336_v8 = vadd.f32 %v3335_v37, %v3323_v6  ;;  %v3349_v30 = vadd.f32 %v3348_v7, %v2269_v27  ;;  %v2271_v7 = vperm.slane %v8316_v9, 5 }
 0x409   :  { %v3602_v25 = vor.u32 1.1754944e-38, %v3601_v57  ;;  %vm3600_vm14 = vcmp.eq.f32.partialorder %v3599_v22, 8.507059e+37 }
 0x40a   :  { %v3324_v58 = vpop.f32.mrf.mxu3  ;;  %v5314_v10 = vmul.f32 -1.442695, %v3336_v8 }
 0x40b   :  { %v3311_v11 = vpop.f32.mrf.mxu2 }
 0x40c   :  { %5739 = vpow2.f32 %v5314_v10 }
 0x40d   :  { %v5738_v12 = vpop.eup %5737 }
 0x40e   :  { %v3350_v13 = vpop.f32.mrf.mxu0  ;;  %v3591_v14 = vmul.f32 %v5738_v12, %v3569_v5  ;;  %vm3596_vm11 = vweird.f32 %v5738_v12 }
 0x40f   :  { %vm3597_vm13 = vmor %vm3595_vm12, %vm3596_vm11 }
 0x410   :  { %v3592_v15 = vsub.f32 1.0, %v3591_v14 }
 0x412   :  { %v3387_v17 = vpop.f32.mrf.mxu3  ;;  %v5740_v18 = vpop.eup %5739  ;;  %v3593_v19 = vmul.f32 %v5738_v12, %v3592_v15 }
 0x413   :  { %v3570_v20 = vadd.f32 1.0, %v5740_v18 }
 0x414   :  { %v3594_v24 = vadd.f32 %v5738_v12, %v3593_v19 }
 0x415   :  { %5741 = vrcp.f32 %v3570_v20  ;;  %v3616_v60 = vand.u32 2147483648, %v3570_v20  ;;  %v3614_v32 = vand.u32 2147483647, %v3570_v20  ;;  %vm3610_vm1 = vweird.f32 %v3570_v20 }
 0x416   :  { %v3598_v16 = vsel %vm3597_vm13, %v5738_v12, %v3594_v24 }
 0x417   :  { %v3361_v23 = vpop.f32.mrf.mxu1  ;;  %v3603_v26 = vsel %vm3600_vm14, %v3602_v25, %v3598_v16  ;;  %v3617_v38 = vor.u32 1.1754944e-38, %v3616_v60  ;;  %vm3615_vm3 = vcmp.eq.f32.partialorder %v3614_v32, 8.507059e+37 }
 0x418   :  { %3681 = vst [vmem:[%s8358_s10 + $0x8] sm:$0xff] %v3603_v26  ;;  %v3362_v53 = vadd.f32 %v3361_v23, %v3349_v30 }
 0x41a   :  { %v3389_v28 = vpop.f32.mrf.mxu3 }
 0x41b   :  { %v5742_v21 = vpop.eup %5741 }
 0x41c   :  { %v3606_v59 = vmul.f32 %v5742_v21, %v3570_v20  ;;  %vm3611_vm15 = vweird.f32 %v5742_v21 }
 0x41d   :  { %vm3612_vm2 = vmor %vm3610_vm1, %vm3611_vm15 }
 0x41e   :  { %v3607_v62 = vsub.f32 1.0, %v3606_v59 }
 0x41f   :  { %v3363_v29 = vpop.f32.mrf.mxu1 }
 0x420   :  { %v3608_v34 = vmul.f32 %v5742_v21, %v3607_v62 }
 0x422   :  { %v3609_v35 = vadd.f32 %v5742_v21, %v3608_v34 }
 0x423   :  { %v3374_v31 = vpop.f32.mrf.mxu2 }
 0x424   :  { %v3375_v33 = vadd.f32 %v3374_v31, %v3362_v53  ;;  %v3613_v41 = vsel %vm3612_vm2, %v5742_v21, %v3609_v35  ;;  %v2272_v35 = vperm.slane %v8316_v9, 6 }
 0x425   :  { %v3618_v43 = vsel %vm3615_vm3, %v3617_v38, %v3613_v41 }
 0x426   :  { %v3388_v36 = vadd.f32 %v3387_v17, %v3375_v33  ;;  %v3400_v37 = vpop.f32.mrf.mxu3  ;;  %v3413_v40 = vpop.f32.mrf.mxu0  ;;  %3682 = vst [vmem:[%s8358_s10 + $0x10] sm:$0xff] %v3618_v43 }
 0x427   :  { %v3401_v48 = vadd.f32 %v3400_v37, %v2270_v45 }
 0x428   :  { %v5315_v42 = vmul.f32 -1.442695, %v3388_v36 }
 0x429   :  { %v3414_v52 = vadd.f32 %v3413_v40, %v3401_v48 }
 0x42a   :  { %5743 = vpow2.f32 %v5315_v42 }
 0x42b   :  { %v3376_v44 = vpop.f32.mrf.mxu2 }
 0x42e   :  { %v3402_v46 = vpop.f32.mrf.mxu3  ;;  %v3415_v47 = vpop.f32.mrf.mxu0 }
 0x430   :  { %v5744_v49 = vpop.eup %5743 }
 0x431   :  { %v3571_v50 = vadd.f32 1.0, %v5744_v49 }
 0x433   :  { %5745 = vrcp.f32 %v3571_v50  ;;  %v3439_v51 = vpop.f32.mrf.mxu2  ;;  %v3631_v2 = vand.u32 2147483648, %v3571_v50  ;;  %v3629_v5 = vand.u32 2147483647, %v3571_v50  ;;  %vm3625_vm5 = vweird.f32 %v3571_v50 }
 0x435   :  { %v3632_v8 = vor.u32 1.1754944e-38, %v3631_v2  ;;  %vm3630_vm7 = vcmp.eq.f32.partialorder %v3629_v5, 8.507059e+37 }
 0x437   :  { %v3426_v54 = vpop.f32.mrf.mxu1 }
 0x438   :  { %v3427_v39 = vadd.f32 %v3426_v54, %v3414_v52 }
 0x439   :  { %v5746_v56 = vpop.eup %5745 }
 0x43a   :  { %v3440_v55 = vadd.f32 %v3439_v51, %v3427_v39  ;;  %v3621_v61 = vmul.f32 %v5746_v56, %v3571_v50  ;;  %vm3626_vm4 = vweird.f32 %v5746_v56 }
 0x43b   :  { %v3441_v0 = vpop.f32.mrf.mxu2  ;;  %vm3627_vm6 = vmor %vm3625_vm5, %vm3626_vm4 }
 0x43c   :  { %v5316_v63 = vmul.f32 -1.442695, %v3440_v55  ;;  %v3622_v1 = vsub.f32 1.0, %v3621_v61 }
 0x43e   :  { %5747 = vpow2.f32 %v5316_v63  ;;  %v3623_v4 = vmul.f32 %v5746_v56, %v3622_v1 }
 0x43f   :  { %v3428_v3 = vpop.f32.mrf.mxu1 }
 0x440   :  { %v3624_v6 = vadd.f32 %v5746_v56, %v3623_v4 }
 0x442   :  { %v3628_v10 = vsel %vm3627_vm6, %v5746_v56, %v3624_v6 }
 0x443   :  { %v3633_v11 = vsel %vm3630_vm7, %v3632_v8, %v3628_v10 }
 0x444   :  { %v5748_v58 = vpop.eup %5747  ;;  %3683 = vst [vmem:[%s8358_s10 + $0x18] sm:$0xff] %v3633_v11 }
 0x445   :  { %v3572_v12 = vadd.f32 1.0, %v5748_v58 }
 0x446   :  { %v3478_v14 = vpop.f32.mrf.mxu0  ;;  %v3465_v57 = vpop.f32.mrf.mxu3 }
 0x447   :  { %v3452_v13 = vpop.f32.mrf.mxu2  ;;  %5749 = vrcp.f32 %v3572_v12  ;;  %v3491_v17 = vpop.f32.mrf.mxu1  ;;  %v3646_v21 = vand.u32 2147483648, %v3572_v12  ;;  %v3644_v59 = vand.u32 2147483647, %v3572_v12  ;;  %vm3640_vm9 = vweird.f32 %v3572_v12 }
 0x448   :  { %v3453_v15 = vadd.f32 %v3452_v13, %v2271_v7 }
 0x449   :  { %v3647_v62 = vor.u32 1.1754944e-38, %v3646_v21  ;;  %vm3645_vm11 = vcmp.eq.f32.partialorder %v3644_v59, 8.507059e+37 }
 0x44a   :  { %v3466_v18 = vadd.f32 %v3465_v57, %v3453_v15 }
 0x44c   :  { %v3479_v19 = vadd.f32 %v3478_v14, %v3466_v18 }
 0x44d   :  { %v5750_v20 = vpop.eup %5749 }
 0x44e   :  { %v3492_v22 = vadd.f32 %v3491_v17, %v3479_v19  ;;  %v3480_v24 = vpop.f32.mrf.mxu0  ;;  %v3636_v25 = vmul.f32 %v5750_v20, %v3572_v12  ;;  %v3467_v26 = vpop.f32.mrf.mxu3  ;;  %vm3641_vm8 = vweird.f32 %v5750_v20 }
 0x44f   :  { %v3454_v23 = vpop.f32.mrf.mxu2  ;;  %v3493_v27 = vpop.f32.mrf.mxu1  ;;  %vm3642_vm10 = vmor %vm3640_vm9, %vm3641_vm8 }
 0x450   :  { %v5317_v16 = vmul.f32 -1.442695, %v3492_v22  ;;  %v3637_v28 = vsub.f32 1.0, %v3636_v25 }
 0x452   :  { %5751 = vpow2.f32 %v5317_v16  ;;  %v3638_v29 = vmul.f32 %v5750_v20, %v3637_v28 }
 0x454   :  { %v3639_v30 = vadd.f32 %v5750_v20, %v3638_v29 }
 0x456   :  { %v3543_v53 = vpop.f32.mrf.mxu0  ;;  %v3643_v31 = vsel %vm3642_vm10, %v5750_v20, %v3639_v30 }
 0x457   :  { %v3648_v34 = vsel %vm3645_vm11, %v3647_v62, %v3643_v31 }
 0x458   :  { %v5752_v60 = vpop.eup %5751  ;;  %3684 = vst [vmem:[%s8358_s10 + $0x20] sm:$0xff] %v3648_v34 }
 0x459   :  { %v3573_v32 = vadd.f32 1.0, %v5752_v60 }
 0x45b   :  { %v3504_v33 = vpop.f32.mrf.mxu1  ;;  %5753 = vrcp.f32 %v3573_v32  ;;  %v3661_v44 = vand.u32 2147483648, %v3573_v32  ;;  %v3659_v49 = vand.u32 2147483647, %v3573_v32  ;;  %vm3655_vm13 = vweird.f32 %v3573_v32 }
 0x45c   :  { %v3505_v41 = vadd.f32 %v3504_v33, %v2272_v35 }
 0x45d   :  { %v3662_v51 = vor.u32 1.1754944e-38, %v3661_v44  ;;  %vm3660_vm15 = vcmp.eq.f32.partialorder %v3659_v49, 8.507059e+37 }
 0x45e   :  { %v3545_v36 = vpop.f32.mrf.mxu0 }
 0x461   :  { %v5754_v37 = vpop.eup %5753 }
 0x462   :  { %v3651_v40 = vmul.f32 %v5754_v37, %v3573_v32  ;;  %vm3656_vm12 = vweird.f32 %v5754_v37 }
 0x463   :  { %v3506_v38 = vpop.f32.mrf.mxu1  ;;  %vm3657_vm14 = vmor %vm3655_vm13, %vm3656_vm12 }
 0x464   :  { %v3652_v42 = vsub.f32 1.0, %v3651_v40 }
 0x466   :  { %v3530_v46 = vpop.f32.mrf.mxu3  ;;  %v3653_v47 = vmul.f32 %v5754_v37, %v3652_v42 }
 0x467   :  { %v3517_v43 = vpop.f32.mrf.mxu2 }
 0x468   :  { %v3518_v45 = vadd.f32 %v3517_v43, %v3505_v41  ;;  %v3654_v50 = vadd.f32 %v5754_v37, %v3653_v47 }
 0x46a   :  { %v3531_v48 = vadd.f32 %v3530_v46, %v3518_v45  ;;  %v3658_v9 = vsel %vm3657_vm14, %v5754_v37, %v3654_v50 }
 0x46b   :  { %v3663_v54 = vsel %vm3660_vm15, %v3662_v51, %v3658_v9 }
 0x46c   :  { %v3544_v52 = vadd.f32 %v3543_v53, %v3531_v48  ;;  %3685 = vst [vmem:[%s8358_s10 + $0x28] sm:$0xff] %v3663_v54 }
 0x46e   :  { %v5318_v39 = vmul.f32 -1.442695, %v3544_v52  ;;  %v3532_v56 = vpop.f32.mrf.mxu3 }
 0x46f   :  { %v3519_v55 = vpop.f32.mrf.mxu2 }
 0x470   :  { %5755 = vpow2.f32 %v5318_v39 }
 0x476   :  { %v5756_v61 = vpop.eup %5755 }
 0x477   :  { %v3574_v63 = vadd.f32 1.0, %v5756_v61 }
 0x479   :  { %5757 = vrcp.f32 %v3574_v63  ;;  %v3676_v3 = vand.u32 2147483648, %v3574_v63  ;;  %v3674_v5 = vand.u32 2147483647, %v3574_v63  ;;  %vm3670_vm2 = vweird.f32 %v3574_v63 }
 0x47b   :  { %v3677_v7 = vor.u32 1.1754944e-38, %v3676_v3  ;;  %vm3675_vm4 = vcmp.eq.f32.partialorder %v3674_v5, 8.507059e+37 }
 0x47f   :  { %v5758_v0 = vpop.eup %5757 }
 0x480   :  { %v3666_v1 = vmul.f32 %v5758_v0, %v3574_v63  ;;  %vm3671_vm1 = vweird.f32 %v5758_v0 }
 0x481   :  { %vm3672_vm3 = vmor %vm3670_vm2, %vm3671_vm1 }
 0x482   :  { %v3667_v2 = vsub.f32 1.0, %v3666_v1 }
 0x484   :  { %v3668_v4 = vmul.f32 %v5758_v0, %v3667_v2 }
 0x486   :  { %v3669_v6 = vadd.f32 %v5758_v0, %v3668_v4 }
 0x488   :  { %v3673_v8 = vsel %vm3672_vm3, %v5758_v0, %v3669_v6 }
 0x489   :  { %v3678_v58 = vsel %vm3675_vm4, %v3677_v7, %v3673_v8 }
 0x48a   :  { %3686 = vst.msk [vmem:[%s8358_s10 + $0x30] sm:$0xff] %vm1252_vm0, %v3678_v58 }

</bundles_post_ra>
